<compile_context>
chip_gen: v5e
topology: v5e:2x2
jax: 0.10.0
libtpu: 0.0.40
codegen_flags: <defaults>
</compile_context>

<pallas_src>
import functools

import jax
import jax.numpy as jnp
from jax import lax
from jax.experimental import pallas as pl
from jax.experimental.pallas import tpu as pltpu


def _sepconv3d_kernel(x_ref, wd_ref, bd_ref, wp_ref, bp_ref, o_ref, dw_ref,
                      *, K, W):
    """One batch element: depthwise K^3 conv + pointwise 1x1x1 conv.

    x_ref : (C_in, D, H*W)     VMEM  lane-dense input slab (blocked per batch)
    wd_ref: (C_in*K^3,)        SMEM  depthwise taps, flattened 1-D
    bd_ref: (C_in,)            SMEM  depthwise bias
    wp_ref: (C_out*C_in,)      SMEM  pointwise weights, flattened 1-D
    bp_ref: (C_out,)           SMEM  pointwise bias
    o_ref : (C_out, Do, H*W)   VMEM  padded-lattice output (wrapper slices it)
    dw_ref: (C_in, Do, H*W)    VMEM scratch  depthwise result per input channel
    """
    C_in, D, HW = x_ref.shape
    C_out, Do, _ = o_ref.shape
    K3 = K * K * K

    def shift_left(x, s):
        # xs[:, j] = x[:, j + s] for every j that maps to a valid output
        # position; the circular wrap only lands in lanes (h >= Ho or w >= Wo)
        # that the wrapper discards.  Unambiguous slice+concat (lane rotate).
        if s == 0:
            return x
        return jnp.concatenate([x[:, s:], x[:, :s]], axis=1)

    # ----- depthwise K^3 conv: full-width VPU MACs on (D, H*W) slabs -----
    # Static Python unrolls are fine at these channel counts; switch the c /
    # co loops to lax.fori_loop(..., unroll=True) once C_in/C_out grow.
    for c in range(C_in):
        xc = x_ref[c].astype(jnp.float32)                    # (D, HW)
        parts = [jnp.zeros((D, HW), jnp.float32) for _ in range(K)]
        for kh in range(K):
            for kw in range(K):
                xs = shift_left(xc, kh * W + kw)             # 1 lane shift / (kh,kw)
                for kd in range(K):
                    tap = (kd * K + kh) * K + kw
                    parts[kd] = parts[kd] + xs * wd_ref[c * K3 + tap]
        # Combine the kd planes: K-1 sublane-offset slices (XLU) + adds.
        acc = parts[0][0:Do, :]
        for kd in range(1, K):
            acc = acc + parts[kd][kd:kd + Do, :]
        dw_ref[c] = acc + bd_ref[c]

    # ----- pointwise 1x1x1 conv: one live accumulator per output channel -----
    # TODO(synk): when C_in/C_out reach >=64, stage dw as (spatial, C_in) and
    # replace this VPU loop with a single jnp.dot(..., preferred_element_type=
    # jnp.float32) MXU call; at C_in=4/C_out=8 the MXU would run <2% occupied.
    for co in range(C_out):
        acc = dw_ref[0] * wp_ref[co * C_in + 0]
        for c in range(1, C_in):
            acc = acc + dw_ref[c] * wp_ref[co * C_in + c]
        o_ref[co] = (acc + bp_ref[co]).astype(o_ref.dtype)


def separable_conv3d(x, w_depth, b_depth, w_point, b_point):
    """SeparableConv3d forward (module defaults: stride=1, pad=0, dilation=1).

    x       : (B, C_in, D, H, W) float32
    w_depth : (C_in, 1, K, K, K)     depthwise Conv3d weight (groups=C_in)
    b_depth : (C_in,)
    w_point : (C_out, C_in, 1, 1, 1) pointwise Conv3d weight
    b_point : (C_out,)
    returns : (B, C_out, D-K+1, H-K+1, W-K+1)
    """
    B, C_in, D, H, W = x.shape
    C_out = w_point.shape[0]
    K = w_depth.shape[-1]
    Do, Ho, Wo = D - K + 1, H - K + 1, W - K + 1
    HW = H * W

    # Lane-dense presentation of the input; pure layout plumbing in XLA.
    x_flat = x.reshape(B, C_in, D, HW)
    wd = w_depth.reshape(C_in * K * K * K).astype(jnp.float32)   # 1-D for SMEM
    wp = w_point.reshape(C_out * C_in).astype(jnp.float32)       # 1-D for SMEM

    smem = pl.BlockSpec(memory_space=pltpu.MemorySpace.SMEM)

    # Exact VMEM budget: double-buffered in/out blocks + depthwise scratch
    # + ~4 MiB margin for compiler temporaries (safe on v7x's 64 MiB VMEM).
    in_block = C_in * D * HW * 4
    out_block = C_out * Do * HW * 4
    dw_scratch = C_in * Do * HW * 4
    vmem_limit = int(2 * (in_block + out_block) + dw_scratch + (4 << 20))
    if vmem_limit > (52 << 20):
        # TODO(synk): add a D-halo grid axis (overlap K-1 planes) so blocks
        # stay small enough for v7x's 64 MiB VMEM on large volumes.
        raise ValueError(
            "per-batch volume too large for a single VMEM block; "
            "D-halo spatial tiling is required for this shape")

    flops = 2 * B * Do * Ho * Wo * (C_in * K ** 3 + C_in * C_out)
    bytes_accessed = int(4 * (x_flat.size + B * C_out * Do * HW
                              + wd.size + wp.size + b_depth.size + b_point.size))

    out_flat = pl.pallas_call(
        functools.partial(_sepconv3d_kernel, K=K, W=W),
        out_shape=jax.ShapeDtypeStruct((B, C_out, Do, HW), x.dtype),
        grid=(B,),
        in_specs=[
            pl.BlockSpec((None, C_in, D, HW), lambda b: (b, 0, 0, 0)),
            smem,  # wd (C_in*K^3,)
            smem,  # bd (C_in,)
            smem,  # wp (C_out*C_in,)
            smem,  # bp (C_out,)
        ],
        out_specs=pl.BlockSpec((None, C_out, Do, HW), lambda b: (b, 0, 0, 0)),
        scratch_shapes=[pltpu.VMEM((C_in, Do, HW), jnp.float32)],
        compiler_params=pltpu.CompilerParams(
            dimension_semantics=("parallel",),
            vmem_limit_bytes=vmem_limit,
        ),
        cost_estimate=pl.CostEstimate(
            flops=flops, transcendentals=0, bytes_accessed=bytes_accessed),
    )(x_flat, wd, b_depth.astype(jnp.float32), wp, b_point.astype(jnp.float32))

    # Drop the invalid (h >= Ho, w >= Wo) lanes of the padded lattice.
    return out_flat.reshape(B, C_out, Do, H, W)[:, :, :, :Ho, :Wo]


def reference(x, w_depth, b_depth, w_point, b_point):
    """Pure-JAX reference mirroring the PyTorch forward (Conv3d + Conv3d)."""
    C_in = x.shape[1]
    dn = ('NCDHW', 'OIDHW', 'NCDHW')
    dw = lax.conv_general_dilated(
        x, w_depth, window_strides=(1, 1, 1), padding='VALID',
        dimension_numbers=dn, feature_group_count=C_in)
    dw = dw + b_depth.reshape(1, -1, 1, 1, 1)
    out = lax.conv_general_dilated(
        dw, w_point, window_strides=(1, 1, 1), padding='VALID',
        dimension_numbers=dn)
    return out + b_point.reshape(1, -1, 1, 1, 1)


if __name__ == "__main__":
    B, C_in, C_out = 2, 4, 8
    D, H, W = 8, 16, 16
    K = 3

    key = jax.random.PRNGKey(0)
    kx, kwd, kbd, kwp, kbp = jax.random.split(key, 5)

    x = jax.random.normal(kx, (B, C_in, D, H, W), dtype=jnp.float32)
    # Deterministic synthetic parameters (shapes match the PyTorch module).
    w_depth = 0.1 * jax.random.normal(kwd, (C_in, 1, K, K, K), dtype=jnp.float32)
    b_depth = 0.1 * jax.random.normal(kbd, (C_in,), dtype=jnp.float32)
    w_point = 0.1 * jax.random.normal(kwp, (C_out, C_in, 1, 1, 1), dtype=jnp.float32)
    b_point = 0.1 * jax.random.normal(kbp, (C_out,), dtype=jnp.float32)

    out = separable_conv3d(x, w_depth, b_depth, w_point, b_point)
    out = jax.block_until_ready(out)

    ref = reference(x, w_depth, b_depth, w_point, b_point)
    assert out.shape == (B, C_out, D - K + 1, H - K + 1, W - K + 1)
    assert jnp.allclose(out, ref, rtol=1e-5, atol=1e-5), "mismatch vs reference"

    print("KERNEL_OK")
</pallas_src>

<mosaic_0001>
module attributes {stable_mosaic.version = 11 : i64} {
  func.func @_sepconv3d_kernel(%arg0: i32, %arg1: memref<1x4x8x256xf32, #tpu.memory_space<vmem>>, %arg2: memref<108xf32, #tpu.memory_space<smem>>, %arg3: memref<4xf32, #tpu.memory_space<smem>>, %arg4: memref<32xf32, #tpu.memory_space<smem>>, %arg5: memref<8xf32, #tpu.memory_space<smem>>, %arg6: memref<1x8x6x256xf32, #tpu.memory_space<vmem>>, %arg7: memref<4x6x256xf32, #tpu.memory_space<vmem>>) attributes {dimension_semantics = [#tpu.dimension_semantics<parallel>], iteration_bounds = array<i64: 2>, scalar_prefetch = 0 : i64, scratch_operands = 1 : i64, tpu.core_type = #tpu.core_type<tc>, window_params = [{transform_indices = @transform_0, window_bounds = array<i64: 1, 4, 8, 256>}, {transform_indices = @transform_1, window_bounds = array<i64: 108>}, {transform_indices = @transform_2, window_bounds = array<i64: 4>}, {transform_indices = @transform_3, window_bounds = array<i64: 32>}, {transform_indices = @transform_4, window_bounds = array<i64: 8>}, {transform_indices = @transform_5, window_bounds = array<i64: 1, 8, 6, 256>}]} {
    %c0 = arith.constant 0 : index
    %c0_0 = arith.constant 0 : index
    %c0_1 = arith.constant 0 : index
    %c0_2 = arith.constant 0 : index
    %0 = vector.load %arg1[%c0, %c0_0, %c0_1, %c0_2] : memref<1x4x8x256xf32, #tpu.memory_space<vmem>>, vector<1x1x8x256xf32>
    %1 = vector.shape_cast %0 : vector<1x1x8x256xf32> to vector<8x256xf32>
    %cst = arith.constant 0.000000e+00 : f32
    %2 = vector.broadcast %cst : f32 to vector<8x256xf32>
    %cst_3 = arith.constant 0.000000e+00 : f32
    %3 = vector.broadcast %cst_3 : f32 to vector<8x256xf32>
    %cst_4 = arith.constant 0.000000e+00 : f32
    %4 = vector.broadcast %cst_4 : f32 to vector<8x256xf32>
    %c0_5 = arith.constant 0 : index
    %5 = memref.load %arg2[%c0_5] : memref<108xf32, #tpu.memory_space<smem>>
    %6 = vector.broadcast %5 : f32 to vector<8x256xf32>
    %7 = arith.mulf %1, %6 : vector<8x256xf32>
    %8 = arith.addf %2, %7 : vector<8x256xf32>
    %c9 = arith.constant 9 : index
    %9 = memref.load %arg2[%c9] : memref<108xf32, #tpu.memory_space<smem>>
    %10 = vector.broadcast %9 : f32 to vector<8x256xf32>
    %11 = arith.mulf %1, %10 : vector<8x256xf32>
    %12 = arith.addf %3, %11 : vector<8x256xf32>
    %c18 = arith.constant 18 : index
    %13 = memref.load %arg2[%c18] : memref<108xf32, #tpu.memory_space<smem>>
    %14 = vector.broadcast %13 : f32 to vector<8x256xf32>
    %15 = arith.mulf %1, %14 : vector<8x256xf32>
    %16 = arith.addf %4, %15 : vector<8x256xf32>
    %17 = vector.extract_strided_slice %1 {offsets = [0, 1], sizes = [8, 255], strides = [1, 1]} : vector<8x256xf32> to vector<8x255xf32>
    %18 = vector.extract_strided_slice %1 {offsets = [0, 0], sizes = [8, 1], strides = [1, 1]} : vector<8x256xf32> to vector<8x1xf32>
    %19 = tpu.concatenate %17, %18 in 1 : vector<8x255xf32>, vector<8x1xf32> -> vector<8x256xf32>
    %c1 = arith.constant 1 : index
    %20 = memref.load %arg2[%c1] : memref<108xf32, #tpu.memory_space<smem>>
    %21 = vector.broadcast %20 : f32 to vector<8x256xf32>
    %22 = arith.mulf %19, %21 : vector<8x256xf32>
    %23 = arith.addf %8, %22 : vector<8x256xf32>
    %c10 = arith.constant 10 : index
    %24 = memref.load %arg2[%c10] : memref<108xf32, #tpu.memory_space<smem>>
    %25 = vector.broadcast %24 : f32 to vector<8x256xf32>
    %26 = arith.mulf %19, %25 : vector<8x256xf32>
    %27 = arith.addf %12, %26 : vector<8x256xf32>
    %c19 = arith.constant 19 : index
    %28 = memref.load %arg2[%c19] : memref<108xf32, #tpu.memory_space<smem>>
    %29 = vector.broadcast %28 : f32 to vector<8x256xf32>
    %30 = arith.mulf %19, %29 : vector<8x256xf32>
    %31 = arith.addf %16, %30 : vector<8x256xf32>
    %32 = vector.extract_strided_slice %1 {offsets = [0, 2], sizes = [8, 254], strides = [1, 1]} : vector<8x256xf32> to vector<8x254xf32>
    %33 = vector.extract_strided_slice %1 {offsets = [0, 0], sizes = [8, 2], strides = [1, 1]} : vector<8x256xf32> to vector<8x2xf32>
    %34 = tpu.concatenate %32, %33 in 1 : vector<8x254xf32>, vector<8x2xf32> -> vector<8x256xf32>
    %c2 = arith.constant 2 : index
    %35 = memref.load %arg2[%c2] : memref<108xf32, #tpu.memory_space<smem>>
    %36 = vector.broadcast %35 : f32 to vector<8x256xf32>
    %37 = arith.mulf %34, %36 : vector<8x256xf32>
    %38 = arith.addf %23, %37 : vector<8x256xf32>
    %c11 = arith.constant 11 : index
    %39 = memref.load %arg2[%c11] : memref<108xf32, #tpu.memory_space<smem>>
    %40 = vector.broadcast %39 : f32 to vector<8x256xf32>
    %41 = arith.mulf %34, %40 : vector<8x256xf32>
    %42 = arith.addf %27, %41 : vector<8x256xf32>
    %c20 = arith.constant 20 : index
    %43 = memref.load %arg2[%c20] : memref<108xf32, #tpu.memory_space<smem>>
    %44 = vector.broadcast %43 : f32 to vector<8x256xf32>
    %45 = arith.mulf %34, %44 : vector<8x256xf32>
    %46 = arith.addf %31, %45 : vector<8x256xf32>
    %47 = vector.extract_strided_slice %1 {offsets = [0, 16], sizes = [8, 240], strides = [1, 1]} : vector<8x256xf32> to vector<8x240xf32>
    %48 = vector.extract_strided_slice %1 {offsets = [0, 0], sizes = [8, 16], strides = [1, 1]} : vector<8x256xf32> to vector<8x16xf32>
    %49 = tpu.concatenate %47, %48 in 1 : vector<8x240xf32>, vector<8x16xf32> -> vector<8x256xf32>
    %c3 = arith.constant 3 : index
    %50 = memref.load %arg2[%c3] : memref<108xf32, #tpu.memory_space<smem>>
    %51 = vector.broadcast %50 : f32 to vector<8x256xf32>
    %52 = arith.mulf %49, %51 : vector<8x256xf32>
    %53 = arith.addf %38, %52 : vector<8x256xf32>
    %c12 = arith.constant 12 : index
    %54 = memref.load %arg2[%c12] : memref<108xf32, #tpu.memory_space<smem>>
    %55 = vector.broadcast %54 : f32 to vector<8x256xf32>
    %56 = arith.mulf %49, %55 : vector<8x256xf32>
    %57 = arith.addf %42, %56 : vector<8x256xf32>
    %c21 = arith.constant 21 : index
    %58 = memref.load %arg2[%c21] : memref<108xf32, #tpu.memory_space<smem>>
    %59 = vector.broadcast %58 : f32 to vector<8x256xf32>
    %60 = arith.mulf %49, %59 : vector<8x256xf32>
    %61 = arith.addf %46, %60 : vector<8x256xf32>
    %62 = vector.extract_strided_slice %1 {offsets = [0, 17], sizes = [8, 239], strides = [1, 1]} : vector<8x256xf32> to vector<8x239xf32>
    %63 = vector.extract_strided_slice %1 {offsets = [0, 0], sizes = [8, 17], strides = [1, 1]} : vector<8x256xf32> to vector<8x17xf32>
    %64 = tpu.concatenate %62, %63 in 1 : vector<8x239xf32>, vector<8x17xf32> -> vector<8x256xf32>
    %c4 = arith.constant 4 : index
    %65 = memref.load %arg2[%c4] : memref<108xf32, #tpu.memory_space<smem>>
    %66 = vector.broadcast %65 : f32 to vector<8x256xf32>
    %67 = arith.mulf %64, %66 : vector<8x256xf32>
    %68 = arith.addf %53, %67 : vector<8x256xf32>
    %c13 = arith.constant 13 : index
    %69 = memref.load %arg2[%c13] : memref<108xf32, #tpu.memory_space<smem>>
    %70 = vector.broadcast %69 : f32 to vector<8x256xf32>
    %71 = arith.mulf %64, %70 : vector<8x256xf32>
    %72 = arith.addf %57, %71 : vector<8x256xf32>
    %c22 = arith.constant 22 : index
    %73 = memref.load %arg2[%c22] : memref<108xf32, #tpu.memory_space<smem>>
    %74 = vector.broadcast %73 : f32 to vector<8x256xf32>
    %75 = arith.mulf %64, %74 : vector<8x256xf32>
    %76 = arith.addf %61, %75 : vector<8x256xf32>
    %77 = vector.extract_strided_slice %1 {offsets = [0, 18], sizes = [8, 238], strides = [1, 1]} : vector<8x256xf32> to vector<8x238xf32>
    %78 = vector.extract_strided_slice %1 {offsets = [0, 0], sizes = [8, 18], strides = [1, 1]} : vector<8x256xf32> to vector<8x18xf32>
    %79 = tpu.concatenate %77, %78 in 1 : vector<8x238xf32>, vector<8x18xf32> -> vector<8x256xf32>
    %c5 = arith.constant 5 : index
    %80 = memref.load %arg2[%c5] : memref<108xf32, #tpu.memory_space<smem>>
    %81 = vector.broadcast %80 : f32 to vector<8x256xf32>
    %82 = arith.mulf %79, %81 : vector<8x256xf32>
    %83 = arith.addf %68, %82 : vector<8x256xf32>
    %c14 = arith.constant 14 : index
    %84 = memref.load %arg2[%c14] : memref<108xf32, #tpu.memory_space<smem>>
    %85 = vector.broadcast %84 : f32 to vector<8x256xf32>
    %86 = arith.mulf %79, %85 : vector<8x256xf32>
    %87 = arith.addf %72, %86 : vector<8x256xf32>
    %c23 = arith.constant 23 : index
    %88 = memref.load %arg2[%c23] : memref<108xf32, #tpu.memory_space<smem>>
    %89 = vector.broadcast %88 : f32 to vector<8x256xf32>
    %90 = arith.mulf %79, %89 : vector<8x256xf32>
    %91 = arith.addf %76, %90 : vector<8x256xf32>
    %92 = vector.extract_strided_slice %1 {offsets = [0, 32], sizes = [8, 224], strides = [1, 1]} : vector<8x256xf32> to vector<8x224xf32>
    %93 = vector.extract_strided_slice %1 {offsets = [0, 0], sizes = [8, 32], strides = [1, 1]} : vector<8x256xf32> to vector<8x32xf32>
    %94 = tpu.concatenate %92, %93 in 1 : vector<8x224xf32>, vector<8x32xf32> -> vector<8x256xf32>
    %c6 = arith.constant 6 : index
    %95 = memref.load %arg2[%c6] : memref<108xf32, #tpu.memory_space<smem>>
    %96 = vector.broadcast %95 : f32 to vector<8x256xf32>
    %97 = arith.mulf %94, %96 : vector<8x256xf32>
    %98 = arith.addf %83, %97 : vector<8x256xf32>
    %c15 = arith.constant 15 : index
    %99 = memref.load %arg2[%c15] : memref<108xf32, #tpu.memory_space<smem>>
    %100 = vector.broadcast %99 : f32 to vector<8x256xf32>
    %101 = arith.mulf %94, %100 : vector<8x256xf32>
    %102 = arith.addf %87, %101 : vector<8x256xf32>
    %c24 = arith.constant 24 : index
    %103 = memref.load %arg2[%c24] : memref<108xf32, #tpu.memory_space<smem>>
    %104 = vector.broadcast %103 : f32 to vector<8x256xf32>
    %105 = arith.mulf %94, %104 : vector<8x256xf32>
    %106 = arith.addf %91, %105 : vector<8x256xf32>
    %107 = vector.extract_strided_slice %1 {offsets = [0, 33], sizes = [8, 223], strides = [1, 1]} : vector<8x256xf32> to vector<8x223xf32>
    %108 = vector.extract_strided_slice %1 {offsets = [0, 0], sizes = [8, 33], strides = [1, 1]} : vector<8x256xf32> to vector<8x33xf32>
    %109 = tpu.concatenate %107, %108 in 1 : vector<8x223xf32>, vector<8x33xf32> -> vector<8x256xf32>
    %c7 = arith.constant 7 : index
    %110 = memref.load %arg2[%c7] : memref<108xf32, #tpu.memory_space<smem>>
    %111 = vector.broadcast %110 : f32 to vector<8x256xf32>
    %112 = arith.mulf %109, %111 : vector<8x256xf32>
    %113 = arith.addf %98, %112 : vector<8x256xf32>
    %c16 = arith.constant 16 : index
    %114 = memref.load %arg2[%c16] : memref<108xf32, #tpu.memory_space<smem>>
    %115 = vector.broadcast %114 : f32 to vector<8x256xf32>
    %116 = arith.mulf %109, %115 : vector<8x256xf32>
    %117 = arith.addf %102, %116 : vector<8x256xf32>
    %c25 = arith.constant 25 : index
    %118 = memref.load %arg2[%c25] : memref<108xf32, #tpu.memory_space<smem>>
    %119 = vector.broadcast %118 : f32 to vector<8x256xf32>
    %120 = arith.mulf %109, %119 : vector<8x256xf32>
    %121 = arith.addf %106, %120 : vector<8x256xf32>
    %122 = vector.extract_strided_slice %1 {offsets = [0, 34], sizes = [8, 222], strides = [1, 1]} : vector<8x256xf32> to vector<8x222xf32>
    %123 = vector.extract_strided_slice %1 {offsets = [0, 0], sizes = [8, 34], strides = [1, 1]} : vector<8x256xf32> to vector<8x34xf32>
    %124 = tpu.concatenate %122, %123 in 1 : vector<8x222xf32>, vector<8x34xf32> -> vector<8x256xf32>
    %c8 = arith.constant 8 : index
    %125 = memref.load %arg2[%c8] : memref<108xf32, #tpu.memory_space<smem>>
    %126 = vector.broadcast %125 : f32 to vector<8x256xf32>
    %127 = arith.mulf %124, %126 : vector<8x256xf32>
    %128 = arith.addf %113, %127 : vector<8x256xf32>
    %c17 = arith.constant 17 : index
    %129 = memref.load %arg2[%c17] : memref<108xf32, #tpu.memory_space<smem>>
    %130 = vector.broadcast %129 : f32 to vector<8x256xf32>
    %131 = arith.mulf %124, %130 : vector<8x256xf32>
    %132 = arith.addf %117, %131 : vector<8x256xf32>
    %c26 = arith.constant 26 : index
    %133 = memref.load %arg2[%c26] : memref<108xf32, #tpu.memory_space<smem>>
    %134 = vector.broadcast %133 : f32 to vector<8x256xf32>
    %135 = arith.mulf %124, %134 : vector<8x256xf32>
    %136 = arith.addf %121, %135 : vector<8x256xf32>
    %137 = vector.extract_strided_slice %128 {offsets = [0, 0], sizes = [6, 256], strides = [1, 1]} : vector<8x256xf32> to vector<6x256xf32>
    %138 = vector.extract_strided_slice %132 {offsets = [1, 0], sizes = [6, 256], strides = [1, 1]} : vector<8x256xf32> to vector<6x256xf32>
    %139 = arith.addf %137, %138 : vector<6x256xf32>
    %140 = vector.extract_strided_slice %136 {offsets = [2, 0], sizes = [6, 256], strides = [1, 1]} : vector<8x256xf32> to vector<6x256xf32>
    %141 = arith.addf %139, %140 : vector<6x256xf32>
    %c0_6 = arith.constant 0 : index
    %142 = memref.load %arg3[%c0_6] : memref<4xf32, #tpu.memory_space<smem>>
    %143 = vector.broadcast %142 : f32 to vector<6x256xf32>
    %144 = arith.addf %141, %143 : vector<6x256xf32>
    %c0_7 = arith.constant 0 : index
    %c0_8 = arith.constant 0 : index
    %c0_9 = arith.constant 0 : index
    %145 = vector.load %arg7[%c0_7, %c0_8, %c0_9] : memref<4x6x256xf32, #tpu.memory_space<vmem>>, vector<1x6x256xf32>
    %146 = vector.shape_cast %145 : vector<1x6x256xf32> to vector<6x256xf32>
    %147 = vector.shape_cast %144 : vector<6x256xf32> to vector<1x6x256xf32>
    tpu.vector_store %arg7[%c0_7, %c0_8, %c0_9], %147 {strides = array<i32>} : memref<4x6x256xf32, #tpu.memory_space<vmem>>, vector<1x6x256xf32>,
    %c0_10 = arith.constant 0 : index
    %c1_11 = arith.constant 1 : index
    %c0_12 = arith.constant 0 : index
    %c0_13 = arith.constant 0 : index
    %148 = vector.load %arg1[%c0_10, %c1_11, %c0_12, %c0_13] : memref<1x4x8x256xf32, #tpu.memory_space<vmem>>, vector<1x1x8x256xf32>
    %149 = vector.shape_cast %148 : vector<1x1x8x256xf32> to vector<8x256xf32>
    %cst_14 = arith.constant 0.000000e+00 : f32
    %150 = vector.broadcast %cst_14 : f32 to vector<8x256xf32>
    %cst_15 = arith.constant 0.000000e+00 : f32
    %151 = vector.broadcast %cst_15 : f32 to vector<8x256xf32>
    %cst_16 = arith.constant 0.000000e+00 : f32
    %152 = vector.broadcast %cst_16 : f32 to vector<8x256xf32>
    %c27 = arith.constant 27 : index
    %153 = memref.load %arg2[%c27] : memref<108xf32, #tpu.memory_space<smem>>
    %154 = vector.broadcast %153 : f32 to vector<8x256xf32>
    %155 = arith.mulf %149, %154 : vector<8x256xf32>
    %156 = arith.addf %150, %155 : vector<8x256xf32>
    %c36 = arith.constant 36 : index
    %157 = memref.load %arg2[%c36] : memref<108xf32, #tpu.memory_space<smem>>
    %158 = vector.broadcast %157 : f32 to vector<8x256xf32>
    %159 = arith.mulf %149, %158 : vector<8x256xf32>
    %160 = arith.addf %151, %159 : vector<8x256xf32>
    %c45 = arith.constant 45 : index
    %161 = memref.load %arg2[%c45] : memref<108xf32, #tpu.memory_space<smem>>
    %162 = vector.broadcast %161 : f32 to vector<8x256xf32>
    %163 = arith.mulf %149, %162 : vector<8x256xf32>
    %164 = arith.addf %152, %163 : vector<8x256xf32>
    %165 = vector.extract_strided_slice %149 {offsets = [0, 1], sizes = [8, 255], strides = [1, 1]} : vector<8x256xf32> to vector<8x255xf32>
    %166 = vector.extract_strided_slice %149 {offsets = [0, 0], sizes = [8, 1], strides = [1, 1]} : vector<8x256xf32> to vector<8x1xf32>
    %167 = tpu.concatenate %165, %166 in 1 : vector<8x255xf32>, vector<8x1xf32> -> vector<8x256xf32>
    %c28 = arith.constant 28 : index
    %168 = memref.load %arg2[%c28] : memref<108xf32, #tpu.memory_space<smem>>
    %169 = vector.broadcast %168 : f32 to vector<8x256xf32>
    %170 = arith.mulf %167, %169 : vector<8x256xf32>
    %171 = arith.addf %156, %170 : vector<8x256xf32>
    %c37 = arith.constant 37 : index
    %172 = memref.load %arg2[%c37] : memref<108xf32, #tpu.memory_space<smem>>
    %173 = vector.broadcast %172 : f32 to vector<8x256xf32>
    %174 = arith.mulf %167, %173 : vector<8x256xf32>
    %175 = arith.addf %160, %174 : vector<8x256xf32>
    %c46 = arith.constant 46 : index
    %176 = memref.load %arg2[%c46] : memref<108xf32, #tpu.memory_space<smem>>
    %177 = vector.broadcast %176 : f32 to vector<8x256xf32>
    %178 = arith.mulf %167, %177 : vector<8x256xf32>
    %179 = arith.addf %164, %178 : vector<8x256xf32>
    %180 = vector.extract_strided_slice %149 {offsets = [0, 2], sizes = [8, 254], strides = [1, 1]} : vector<8x256xf32> to vector<8x254xf32>
    %181 = vector.extract_strided_slice %149 {offsets = [0, 0], sizes = [8, 2], strides = [1, 1]} : vector<8x256xf32> to vector<8x2xf32>
    %182 = tpu.concatenate %180, %181 in 1 : vector<8x254xf32>, vector<8x2xf32> -> vector<8x256xf32>
    %c29 = arith.constant 29 : index
    %183 = memref.load %arg2[%c29] : memref<108xf32, #tpu.memory_space<smem>>
    %184 = vector.broadcast %183 : f32 to vector<8x256xf32>
    %185 = arith.mulf %182, %184 : vector<8x256xf32>
    %186 = arith.addf %171, %185 : vector<8x256xf32>
    %c38 = arith.constant 38 : index
    %187 = memref.load %arg2[%c38] : memref<108xf32, #tpu.memory_space<smem>>
    %188 = vector.broadcast %187 : f32 to vector<8x256xf32>
    %189 = arith.mulf %182, %188 : vector<8x256xf32>
    %190 = arith.addf %175, %189 : vector<8x256xf32>
    %c47 = arith.constant 47 : index
    %191 = memref.load %arg2[%c47] : memref<108xf32, #tpu.memory_space<smem>>
    %192 = vector.broadcast %191 : f32 to vector<8x256xf32>
    %193 = arith.mulf %182, %192 : vector<8x256xf32>
    %194 = arith.addf %179, %193 : vector<8x256xf32>
    %195 = vector.extract_strided_slice %149 {offsets = [0, 16], sizes = [8, 240], strides = [1, 1]} : vector<8x256xf32> to vector<8x240xf32>
    %196 = vector.extract_strided_slice %149 {offsets = [0, 0], sizes = [8, 16], strides = [1, 1]} : vector<8x256xf32> to vector<8x16xf32>
    %197 = tpu.concatenate %195, %196 in 1 : vector<8x240xf32>, vector<8x16xf32> -> vector<8x256xf32>
    %c30 = arith.constant 30 : index
    %198 = memref.load %arg2[%c30] : memref<108xf32, #tpu.memory_space<smem>>
    %199 = vector.broadcast %198 : f32 to vector<8x256xf32>
    %200 = arith.mulf %197, %199 : vector<8x256xf32>
    %201 = arith.addf %186, %200 : vector<8x256xf32>
    %c39 = arith.constant 39 : index
    %202 = memref.load %arg2[%c39] : memref<108xf32, #tpu.memory_space<smem>>
    %203 = vector.broadcast %202 : f32 to vector<8x256xf32>
    %204 = arith.mulf %197, %203 : vector<8x256xf32>
    %205 = arith.addf %190, %204 : vector<8x256xf32>
    %c48 = arith.constant 48 : index
    %206 = memref.load %arg2[%c48] : memref<108xf32, #tpu.memory_space<smem>>
    %207 = vector.broadcast %206 : f32 to vector<8x256xf32>
    %208 = arith.mulf %197, %207 : vector<8x256xf32>
    %209 = arith.addf %194, %208 : vector<8x256xf32>
    %210 = vector.extract_strided_slice %149 {offsets = [0, 17], sizes = [8, 239], strides = [1, 1]} : vector<8x256xf32> to vector<8x239xf32>
    %211 = vector.extract_strided_slice %149 {offsets = [0, 0], sizes = [8, 17], strides = [1, 1]} : vector<8x256xf32> to vector<8x17xf32>
    %212 = tpu.concatenate %210, %211 in 1 : vector<8x239xf32>, vector<8x17xf32> -> vector<8x256xf32>
    %c31 = arith.constant 31 : index
    %213 = memref.load %arg2[%c31] : memref<108xf32, #tpu.memory_space<smem>>
    %214 = vector.broadcast %213 : f32 to vector<8x256xf32>
    %215 = arith.mulf %212, %214 : vector<8x256xf32>
    %216 = arith.addf %201, %215 : vector<8x256xf32>
    %c40 = arith.constant 40 : index
    %217 = memref.load %arg2[%c40] : memref<108xf32, #tpu.memory_space<smem>>
    %218 = vector.broadcast %217 : f32 to vector<8x256xf32>
    %219 = arith.mulf %212, %218 : vector<8x256xf32>
    %220 = arith.addf %205, %219 : vector<8x256xf32>
    %c49 = arith.constant 49 : index
    %221 = memref.load %arg2[%c49] : memref<108xf32, #tpu.memory_space<smem>>
    %222 = vector.broadcast %221 : f32 to vector<8x256xf32>
    %223 = arith.mulf %212, %222 : vector<8x256xf32>
    %224 = arith.addf %209, %223 : vector<8x256xf32>
    %225 = vector.extract_strided_slice %149 {offsets = [0, 18], sizes = [8, 238], strides = [1, 1]} : vector<8x256xf32> to vector<8x238xf32>
    %226 = vector.extract_strided_slice %149 {offsets = [0, 0], sizes = [8, 18], strides = [1, 1]} : vector<8x256xf32> to vector<8x18xf32>
    %227 = tpu.concatenate %225, %226 in 1 : vector<8x238xf32>, vector<8x18xf32> -> vector<8x256xf32>
    %c32 = arith.constant 32 : index
    %228 = memref.load %arg2[%c32] : memref<108xf32, #tpu.memory_space<smem>>
    %229 = vector.broadcast %228 : f32 to vector<8x256xf32>
    %230 = arith.mulf %227, %229 : vector<8x256xf32>
    %231 = arith.addf %216, %230 : vector<8x256xf32>
    %c41 = arith.constant 41 : index
    %232 = memref.load %arg2[%c41] : memref<108xf32, #tpu.memory_space<smem>>
    %233 = vector.broadcast %232 : f32 to vector<8x256xf32>
    %234 = arith.mulf %227, %233 : vector<8x256xf32>
    %235 = arith.addf %220, %234 : vector<8x256xf32>
    %c50 = arith.constant 50 : index
    %236 = memref.load %arg2[%c50] : memref<108xf32, #tpu.memory_space<smem>>
    %237 = vector.broadcast %236 : f32 to vector<8x256xf32>
    %238 = arith.mulf %227, %237 : vector<8x256xf32>
    %239 = arith.addf %224, %238 : vector<8x256xf32>
    %240 = vector.extract_strided_slice %149 {offsets = [0, 32], sizes = [8, 224], strides = [1, 1]} : vector<8x256xf32> to vector<8x224xf32>
    %241 = vector.extract_strided_slice %149 {offsets = [0, 0], sizes = [8, 32], strides = [1, 1]} : vector<8x256xf32> to vector<8x32xf32>
    %242 = tpu.concatenate %240, %241 in 1 : vector<8x224xf32>, vector<8x32xf32> -> vector<8x256xf32>
    %c33 = arith.constant 33 : index
    %243 = memref.load %arg2[%c33] : memref<108xf32, #tpu.memory_space<smem>>
    %244 = vector.broadcast %243 : f32 to vector<8x256xf32>
    %245 = arith.mulf %242, %244 : vector<8x256xf32>
    %246 = arith.addf %231, %245 : vector<8x256xf32>
    %c42 = arith.constant 42 : index
    %247 = memref.load %arg2[%c42] : memref<108xf32, #tpu.memory_space<smem>>
    %248 = vector.broadcast %247 : f32 to vector<8x256xf32>
    %249 = arith.mulf %242, %248 : vector<8x256xf32>
    %250 = arith.addf %235, %249 : vector<8x256xf32>
    %c51 = arith.constant 51 : index
    %251 = memref.load %arg2[%c51] : memref<108xf32, #tpu.memory_space<smem>>
    %252 = vector.broadcast %251 : f32 to vector<8x256xf32>
    %253 = arith.mulf %242, %252 : vector<8x256xf32>
    %254 = arith.addf %239, %253 : vector<8x256xf32>
    %255 = vector.extract_strided_slice %149 {offsets = [0, 33], sizes = [8, 223], strides = [1, 1]} : vector<8x256xf32> to vector<8x223xf32>
    %256 = vector.extract_strided_slice %149 {offsets = [0, 0], sizes = [8, 33], strides = [1, 1]} : vector<8x256xf32> to vector<8x33xf32>
    %257 = tpu.concatenate %255, %256 in 1 : vector<8x223xf32>, vector<8x33xf32> -> vector<8x256xf32>
    %c34 = arith.constant 34 : index
    %258 = memref.load %arg2[%c34] : memref<108xf32, #tpu.memory_space<smem>>
    %259 = vector.broadcast %258 : f32 to vector<8x256xf32>
    %260 = arith.mulf %257, %259 : vector<8x256xf32>
    %261 = arith.addf %246, %260 : vector<8x256xf32>
    %c43 = arith.constant 43 : index
    %262 = memref.load %arg2[%c43] : memref<108xf32, #tpu.memory_space<smem>>
    %263 = vector.broadcast %262 : f32 to vector<8x256xf32>
    %264 = arith.mulf %257, %263 : vector<8x256xf32>
    %265 = arith.addf %250, %264 : vector<8x256xf32>
    %c52 = arith.constant 52 : index
    %266 = memref.load %arg2[%c52] : memref<108xf32, #tpu.memory_space<smem>>
    %267 = vector.broadcast %266 : f32 to vector<8x256xf32>
    %268 = arith.mulf %257, %267 : vector<8x256xf32>
    %269 = arith.addf %254, %268 : vector<8x256xf32>
    %270 = vector.extract_strided_slice %149 {offsets = [0, 34], sizes = [8, 222], strides = [1, 1]} : vector<8x256xf32> to vector<8x222xf32>
    %271 = vector.extract_strided_slice %149 {offsets = [0, 0], sizes = [8, 34], strides = [1, 1]} : vector<8x256xf32> to vector<8x34xf32>
    %272 = tpu.concatenate %270, %271 in 1 : vector<8x222xf32>, vector<8x34xf32> -> vector<8x256xf32>
    %c35 = arith.constant 35 : index
    %273 = memref.load %arg2[%c35] : memref<108xf32, #tpu.memory_space<smem>>
    %274 = vector.broadcast %273 : f32 to vector<8x256xf32>
    %275 = arith.mulf %272, %274 : vector<8x256xf32>
    %276 = arith.addf %261, %275 : vector<8x256xf32>
    %c44 = arith.constant 44 : index
    %277 = memref.load %arg2[%c44] : memref<108xf32, #tpu.memory_space<smem>>
    %278 = vector.broadcast %277 : f32 to vector<8x256xf32>
    %279 = arith.mulf %272, %278 : vector<8x256xf32>
    %280 = arith.addf %265, %279 : vector<8x256xf32>
    %c53 = arith.constant 53 : index
    %281 = memref.load %arg2[%c53] : memref<108xf32, #tpu.memory_space<smem>>
    %282 = vector.broadcast %281 : f32 to vector<8x256xf32>
    %283 = arith.mulf %272, %282 : vector<8x256xf32>
    %284 = arith.addf %269, %283 : vector<8x256xf32>
    %285 = vector.extract_strided_slice %276 {offsets = [0, 0], sizes = [6, 256], strides = [1, 1]} : vector<8x256xf32> to vector<6x256xf32>
    %286 = vector.extract_strided_slice %280 {offsets = [1, 0], sizes = [6, 256], strides = [1, 1]} : vector<8x256xf32> to vector<6x256xf32>
    %287 = arith.addf %285, %286 : vector<6x256xf32>
    %288 = vector.extract_strided_slice %284 {offsets = [2, 0], sizes = [6, 256], strides = [1, 1]} : vector<8x256xf32> to vector<6x256xf32>
    %289 = arith.addf %287, %288 : vector<6x256xf32>
    %c1_17 = arith.constant 1 : index
    %290 = memref.load %arg3[%c1_17] : memref<4xf32, #tpu.memory_space<smem>>
    %291 = vector.broadcast %290 : f32 to vector<6x256xf32>
    %292 = arith.addf %289, %291 : vector<6x256xf32>
    %c1_18 = arith.constant 1 : index
    %c0_19 = arith.constant 0 : index
    %c0_20 = arith.constant 0 : index
    %293 = vector.load %arg7[%c1_18, %c0_19, %c0_20] : memref<4x6x256xf32, #tpu.memory_space<vmem>>, vector<1x6x256xf32>
    %294 = vector.shape_cast %293 : vector<1x6x256xf32> to vector<6x256xf32>
    %295 = vector.shape_cast %292 : vector<6x256xf32> to vector<1x6x256xf32>
    tpu.vector_store %arg7[%c1_18, %c0_19, %c0_20], %295 {strides = array<i32>} : memref<4x6x256xf32, #tpu.memory_space<vmem>>, vector<1x6x256xf32>,
    %c0_21 = arith.constant 0 : index
    %c2_22 = arith.constant 2 : index
    %c0_23 = arith.constant 0 : index
    %c0_24 = arith.constant 0 : index
    %296 = vector.load %arg1[%c0_21, %c2_22, %c0_23, %c0_24] : memref<1x4x8x256xf32, #tpu.memory_space<vmem>>, vector<1x1x8x256xf32>
    %297 = vector.shape_cast %296 : vector<1x1x8x256xf32> to vector<8x256xf32>
    %cst_25 = arith.constant 0.000000e+00 : f32
    %298 = vector.broadcast %cst_25 : f32 to vector<8x256xf32>
    %cst_26 = arith.constant 0.000000e+00 : f32
    %299 = vector.broadcast %cst_26 : f32 to vector<8x256xf32>
    %cst_27 = arith.constant 0.000000e+00 : f32
    %300 = vector.broadcast %cst_27 : f32 to vector<8x256xf32>
    %c54 = arith.constant 54 : index
    %301 = memref.load %arg2[%c54] : memref<108xf32, #tpu.memory_space<smem>>
    %302 = vector.broadcast %301 : f32 to vector<8x256xf32>
    %303 = arith.mulf %297, %302 : vector<8x256xf32>
    %304 = arith.addf %298, %303 : vector<8x256xf32>
    %c63 = arith.constant 63 : index
    %305 = memref.load %arg2[%c63] : memref<108xf32, #tpu.memory_space<smem>>
    %306 = vector.broadcast %305 : f32 to vector<8x256xf32>
    %307 = arith.mulf %297, %306 : vector<8x256xf32>
    %308 = arith.addf %299, %307 : vector<8x256xf32>
    %c72 = arith.constant 72 : index
    %309 = memref.load %arg2[%c72] : memref<108xf32, #tpu.memory_space<smem>>
    %310 = vector.broadcast %309 : f32 to vector<8x256xf32>
    %311 = arith.mulf %297, %310 : vector<8x256xf32>
    %312 = arith.addf %300, %311 : vector<8x256xf32>
    %313 = vector.extract_strided_slice %297 {offsets = [0, 1], sizes = [8, 255], strides = [1, 1]} : vector<8x256xf32> to vector<8x255xf32>
    %314 = vector.extract_strided_slice %297 {offsets = [0, 0], sizes = [8, 1], strides = [1, 1]} : vector<8x256xf32> to vector<8x1xf32>
    %315 = tpu.concatenate %313, %314 in 1 : vector<8x255xf32>, vector<8x1xf32> -> vector<8x256xf32>
    %c55 = arith.constant 55 : index
    %316 = memref.load %arg2[%c55] : memref<108xf32, #tpu.memory_space<smem>>
    %317 = vector.broadcast %316 : f32 to vector<8x256xf32>
    %318 = arith.mulf %315, %317 : vector<8x256xf32>
    %319 = arith.addf %304, %318 : vector<8x256xf32>
    %c64 = arith.constant 64 : index
    %320 = memref.load %arg2[%c64] : memref<108xf32, #tpu.memory_space<smem>>
    %321 = vector.broadcast %320 : f32 to vector<8x256xf32>
    %322 = arith.mulf %315, %321 : vector<8x256xf32>
    %323 = arith.addf %308, %322 : vector<8x256xf32>
    %c73 = arith.constant 73 : index
    %324 = memref.load %arg2[%c73] : memref<108xf32, #tpu.memory_space<smem>>
    %325 = vector.broadcast %324 : f32 to vector<8x256xf32>
    %326 = arith.mulf %315, %325 : vector<8x256xf32>
    %327 = arith.addf %312, %326 : vector<8x256xf32>
    %328 = vector.extract_strided_slice %297 {offsets = [0, 2], sizes = [8, 254], strides = [1, 1]} : vector<8x256xf32> to vector<8x254xf32>
    %329 = vector.extract_strided_slice %297 {offsets = [0, 0], sizes = [8, 2], strides = [1, 1]} : vector<8x256xf32> to vector<8x2xf32>
    %330 = tpu.concatenate %328, %329 in 1 : vector<8x254xf32>, vector<8x2xf32> -> vector<8x256xf32>
    %c56 = arith.constant 56 : index
    %331 = memref.load %arg2[%c56] : memref<108xf32, #tpu.memory_space<smem>>
    %332 = vector.broadcast %331 : f32 to vector<8x256xf32>
    %333 = arith.mulf %330, %332 : vector<8x256xf32>
    %334 = arith.addf %319, %333 : vector<8x256xf32>
    %c65 = arith.constant 65 : index
    %335 = memref.load %arg2[%c65] : memref<108xf32, #tpu.memory_space<smem>>
    %336 = vector.broadcast %335 : f32 to vector<8x256xf32>
    %337 = arith.mulf %330, %336 : vector<8x256xf32>
    %338 = arith.addf %323, %337 : vector<8x256xf32>
    %c74 = arith.constant 74 : index
    %339 = memref.load %arg2[%c74] : memref<108xf32, #tpu.memory_space<smem>>
    %340 = vector.broadcast %339 : f32 to vector<8x256xf32>
    %341 = arith.mulf %330, %340 : vector<8x256xf32>
    %342 = arith.addf %327, %341 : vector<8x256xf32>
    %343 = vector.extract_strided_slice %297 {offsets = [0, 16], sizes = [8, 240], strides = [1, 1]} : vector<8x256xf32> to vector<8x240xf32>
    %344 = vector.extract_strided_slice %297 {offsets = [0, 0], sizes = [8, 16], strides = [1, 1]} : vector<8x256xf32> to vector<8x16xf32>
    %345 = tpu.concatenate %343, %344 in 1 : vector<8x240xf32>, vector<8x16xf32> -> vector<8x256xf32>
    %c57 = arith.constant 57 : index
    %346 = memref.load %arg2[%c57] : memref<108xf32, #tpu.memory_space<smem>>
    %347 = vector.broadcast %346 : f32 to vector<8x256xf32>
    %348 = arith.mulf %345, %347 : vector<8x256xf32>
    %349 = arith.addf %334, %348 : vector<8x256xf32>
    %c66 = arith.constant 66 : index
    %350 = memref.load %arg2[%c66] : memref<108xf32, #tpu.memory_space<smem>>
    %351 = vector.broadcast %350 : f32 to vector<8x256xf32>
    %352 = arith.mulf %345, %351 : vector<8x256xf32>
    %353 = arith.addf %338, %352 : vector<8x256xf32>
    %c75 = arith.constant 75 : index
    %354 = memref.load %arg2[%c75] : memref<108xf32, #tpu.memory_space<smem>>
    %355 = vector.broadcast %354 : f32 to vector<8x256xf32>
    %356 = arith.mulf %345, %355 : vector<8x256xf32>
    %357 = arith.addf %342, %356 : vector<8x256xf32>
    %358 = vector.extract_strided_slice %297 {offsets = [0, 17], sizes = [8, 239], strides = [1, 1]} : vector<8x256xf32> to vector<8x239xf32>
    %359 = vector.extract_strided_slice %297 {offsets = [0, 0], sizes = [8, 17], strides = [1, 1]} : vector<8x256xf32> to vector<8x17xf32>
    %360 = tpu.concatenate %358, %359 in 1 : vector<8x239xf32>, vector<8x17xf32> -> vector<8x256xf32>
    %c58 = arith.constant 58 : index
    %361 = memref.load %arg2[%c58] : memref<108xf32, #tpu.memory_space<smem>>
    %362 = vector.broadcast %361 : f32 to vector<8x256xf32>
    %363 = arith.mulf %360, %362 : vector<8x256xf32>
    %364 = arith.addf %349, %363 : vector<8x256xf32>
    %c67 = arith.constant 67 : index
    %365 = memref.load %arg2[%c67] : memref<108xf32, #tpu.memory_space<smem>>
    %366 = vector.broadcast %365 : f32 to vector<8x256xf32>
    %367 = arith.mulf %360, %366 : vector<8x256xf32>
    %368 = arith.addf %353, %367 : vector<8x256xf32>
    %c76 = arith.constant 76 : index
    %369 = memref.load %arg2[%c76] : memref<108xf32, #tpu.memory_space<smem>>
    %370 = vector.broadcast %369 : f32 to vector<8x256xf32>
    %371 = arith.mulf %360, %370 : vector<8x256xf32>
    %372 = arith.addf %357, %371 : vector<8x256xf32>
    %373 = vector.extract_strided_slice %297 {offsets = [0, 18], sizes = [8, 238], strides = [1, 1]} : vector<8x256xf32> to vector<8x238xf32>
    %374 = vector.extract_strided_slice %297 {offsets = [0, 0], sizes = [8, 18], strides = [1, 1]} : vector<8x256xf32> to vector<8x18xf32>
    %375 = tpu.concatenate %373, %374 in 1 : vector<8x238xf32>, vector<8x18xf32> -> vector<8x256xf32>
    %c59 = arith.constant 59 : index
    %376 = memref.load %arg2[%c59] : memref<108xf32, #tpu.memory_space<smem>>
    %377 = vector.broadcast %376 : f32 to vector<8x256xf32>
    %378 = arith.mulf %375, %377 : vector<8x256xf32>
    %379 = arith.addf %364, %378 : vector<8x256xf32>
    %c68 = arith.constant 68 : index
    %380 = memref.load %arg2[%c68] : memref<108xf32, #tpu.memory_space<smem>>
    %381 = vector.broadcast %380 : f32 to vector<8x256xf32>
    %382 = arith.mulf %375, %381 : vector<8x256xf32>
    %383 = arith.addf %368, %382 : vector<8x256xf32>
    %c77 = arith.constant 77 : index
    %384 = memref.load %arg2[%c77] : memref<108xf32, #tpu.memory_space<smem>>
    %385 = vector.broadcast %384 : f32 to vector<8x256xf32>
    %386 = arith.mulf %375, %385 : vector<8x256xf32>
    %387 = arith.addf %372, %386 : vector<8x256xf32>
    %388 = vector.extract_strided_slice %297 {offsets = [0, 32], sizes = [8, 224], strides = [1, 1]} : vector<8x256xf32> to vector<8x224xf32>
    %389 = vector.extract_strided_slice %297 {offsets = [0, 0], sizes = [8, 32], strides = [1, 1]} : vector<8x256xf32> to vector<8x32xf32>
    %390 = tpu.concatenate %388, %389 in 1 : vector<8x224xf32>, vector<8x32xf32> -> vector<8x256xf32>
    %c60 = arith.constant 60 : index
    %391 = memref.load %arg2[%c60] : memref<108xf32, #tpu.memory_space<smem>>
    %392 = vector.broadcast %391 : f32 to vector<8x256xf32>
    %393 = arith.mulf %390, %392 : vector<8x256xf32>
    %394 = arith.addf %379, %393 : vector<8x256xf32>
    %c69 = arith.constant 69 : index
    %395 = memref.load %arg2[%c69] : memref<108xf32, #tpu.memory_space<smem>>
    %396 = vector.broadcast %395 : f32 to vector<8x256xf32>
    %397 = arith.mulf %390, %396 : vector<8x256xf32>
    %398 = arith.addf %383, %397 : vector<8x256xf32>
    %c78 = arith.constant 78 : index
    %399 = memref.load %arg2[%c78] : memref<108xf32, #tpu.memory_space<smem>>
    %400 = vector.broadcast %399 : f32 to vector<8x256xf32>
    %401 = arith.mulf %390, %400 : vector<8x256xf32>
    %402 = arith.addf %387, %401 : vector<8x256xf32>
    %403 = vector.extract_strided_slice %297 {offsets = [0, 33], sizes = [8, 223], strides = [1, 1]} : vector<8x256xf32> to vector<8x223xf32>
    %404 = vector.extract_strided_slice %297 {offsets = [0, 0], sizes = [8, 33], strides = [1, 1]} : vector<8x256xf32> to vector<8x33xf32>
    %405 = tpu.concatenate %403, %404 in 1 : vector<8x223xf32>, vector<8x33xf32> -> vector<8x256xf32>
    %c61 = arith.constant 61 : index
    %406 = memref.load %arg2[%c61] : memref<108xf32, #tpu.memory_space<smem>>
    %407 = vector.broadcast %406 : f32 to vector<8x256xf32>
    %408 = arith.mulf %405, %407 : vector<8x256xf32>
    %409 = arith.addf %394, %408 : vector<8x256xf32>
    %c70 = arith.constant 70 : index
    %410 = memref.load %arg2[%c70] : memref<108xf32, #tpu.memory_space<smem>>
    %411 = vector.broadcast %410 : f32 to vector<8x256xf32>
    %412 = arith.mulf %405, %411 : vector<8x256xf32>
    %413 = arith.addf %398, %412 : vector<8x256xf32>
    %c79 = arith.constant 79 : index
    %414 = memref.load %arg2[%c79] : memref<108xf32, #tpu.memory_space<smem>>
    %415 = vector.broadcast %414 : f32 to vector<8x256xf32>
    %416 = arith.mulf %405, %415 : vector<8x256xf32>
    %417 = arith.addf %402, %416 : vector<8x256xf32>
    %418 = vector.extract_strided_slice %297 {offsets = [0, 34], sizes = [8, 222], strides = [1, 1]} : vector<8x256xf32> to vector<8x222xf32>
    %419 = vector.extract_strided_slice %297 {offsets = [0, 0], sizes = [8, 34], strides = [1, 1]} : vector<8x256xf32> to vector<8x34xf32>
    %420 = tpu.concatenate %418, %419 in 1 : vector<8x222xf32>, vector<8x34xf32> -> vector<8x256xf32>
    %c62 = arith.constant 62 : index
    %421 = memref.load %arg2[%c62] : memref<108xf32, #tpu.memory_space<smem>>
    %422 = vector.broadcast %421 : f32 to vector<8x256xf32>
    %423 = arith.mulf %420, %422 : vector<8x256xf32>
    %424 = arith.addf %409, %423 : vector<8x256xf32>
    %c71 = arith.constant 71 : index
    %425 = memref.load %arg2[%c71] : memref<108xf32, #tpu.memory_space<smem>>
    %426 = vector.broadcast %425 : f32 to vector<8x256xf32>
    %427 = arith.mulf %420, %426 : vector<8x256xf32>
    %428 = arith.addf %413, %427 : vector<8x256xf32>
    %c80 = arith.constant 80 : index
    %429 = memref.load %arg2[%c80] : memref<108xf32, #tpu.memory_space<smem>>
    %430 = vector.broadcast %429 : f32 to vector<8x256xf32>
    %431 = arith.mulf %420, %430 : vector<8x256xf32>
    %432 = arith.addf %417, %431 : vector<8x256xf32>
    %433 = vector.extract_strided_slice %424 {offsets = [0, 0], sizes = [6, 256], strides = [1, 1]} : vector<8x256xf32> to vector<6x256xf32>
    %434 = vector.extract_strided_slice %428 {offsets = [1, 0], sizes = [6, 256], strides = [1, 1]} : vector<8x256xf32> to vector<6x256xf32>
    %435 = arith.addf %433, %434 : vector<6x256xf32>
    %436 = vector.extract_strided_slice %432 {offsets = [2, 0], sizes = [6, 256], strides = [1, 1]} : vector<8x256xf32> to vector<6x256xf32>
    %437 = arith.addf %435, %436 : vector<6x256xf32>
    %c2_28 = arith.constant 2 : index
    %438 = memref.load %arg3[%c2_28] : memref<4xf32, #tpu.memory_space<smem>>
    %439 = vector.broadcast %438 : f32 to vector<6x256xf32>
    %440 = arith.addf %437, %439 : vector<6x256xf32>
    %c2_29 = arith.constant 2 : index
    %c0_30 = arith.constant 0 : index
    %c0_31 = arith.constant 0 : index
    %441 = vector.load %arg7[%c2_29, %c0_30, %c0_31] : memref<4x6x256xf32, #tpu.memory_space<vmem>>, vector<1x6x256xf32>
    %442 = vector.shape_cast %441 : vector<1x6x256xf32> to vector<6x256xf32>
    %443 = vector.shape_cast %440 : vector<6x256xf32> to vector<1x6x256xf32>
    tpu.vector_store %arg7[%c2_29, %c0_30, %c0_31], %443 {strides = array<i32>} : memref<4x6x256xf32, #tpu.memory_space<vmem>>, vector<1x6x256xf32>,
    %c0_32 = arith.constant 0 : index
    %c3_33 = arith.constant 3 : index
    %c0_34 = arith.constant 0 : index
    %c0_35 = arith.constant 0 : index
    %444 = vector.load %arg1[%c0_32, %c3_33, %c0_34, %c0_35] : memref<1x4x8x256xf32, #tpu.memory_space<vmem>>, vector<1x1x8x256xf32>
    %445 = vector.shape_cast %444 : vector<1x1x8x256xf32> to vector<8x256xf32>
    %cst_36 = arith.constant 0.000000e+00 : f32
    %446 = vector.broadcast %cst_36 : f32 to vector<8x256xf32>
    %cst_37 = arith.constant 0.000000e+00 : f32
    %447 = vector.broadcast %cst_37 : f32 to vector<8x256xf32>
    %cst_38 = arith.constant 0.000000e+00 : f32
    %448 = vector.broadcast %cst_38 : f32 to vector<8x256xf32>
    %c81 = arith.constant 81 : index
    %449 = memref.load %arg2[%c81] : memref<108xf32, #tpu.memory_space<smem>>
    %450 = vector.broadcast %449 : f32 to vector<8x256xf32>
    %451 = arith.mulf %445, %450 : vector<8x256xf32>
    %452 = arith.addf %446, %451 : vector<8x256xf32>
    %c90 = arith.constant 90 : index
    %453 = memref.load %arg2[%c90] : memref<108xf32, #tpu.memory_space<smem>>
    %454 = vector.broadcast %453 : f32 to vector<8x256xf32>
    %455 = arith.mulf %445, %454 : vector<8x256xf32>
    %456 = arith.addf %447, %455 : vector<8x256xf32>
    %c99 = arith.constant 99 : index
    %457 = memref.load %arg2[%c99] : memref<108xf32, #tpu.memory_space<smem>>
    %458 = vector.broadcast %457 : f32 to vector<8x256xf32>
    %459 = arith.mulf %445, %458 : vector<8x256xf32>
    %460 = arith.addf %448, %459 : vector<8x256xf32>
    %461 = vector.extract_strided_slice %445 {offsets = [0, 1], sizes = [8, 255], strides = [1, 1]} : vector<8x256xf32> to vector<8x255xf32>
    %462 = vector.extract_strided_slice %445 {offsets = [0, 0], sizes = [8, 1], strides = [1, 1]} : vector<8x256xf32> to vector<8x1xf32>
    %463 = tpu.concatenate %461, %462 in 1 : vector<8x255xf32>, vector<8x1xf32> -> vector<8x256xf32>
    %c82 = arith.constant 82 : index
    %464 = memref.load %arg2[%c82] : memref<108xf32, #tpu.memory_space<smem>>
    %465 = vector.broadcast %464 : f32 to vector<8x256xf32>
    %466 = arith.mulf %463, %465 : vector<8x256xf32>
    %467 = arith.addf %452, %466 : vector<8x256xf32>
    %c91 = arith.constant 91 : index
    %468 = memref.load %arg2[%c91] : memref<108xf32, #tpu.memory_space<smem>>
    %469 = vector.broadcast %468 : f32 to vector<8x256xf32>
    %470 = arith.mulf %463, %469 : vector<8x256xf32>
    %471 = arith.addf %456, %470 : vector<8x256xf32>
    %c100 = arith.constant 100 : index
    %472 = memref.load %arg2[%c100] : memref<108xf32, #tpu.memory_space<smem>>
    %473 = vector.broadcast %472 : f32 to vector<8x256xf32>
    %474 = arith.mulf %463, %473 : vector<8x256xf32>
    %475 = arith.addf %460, %474 : vector<8x256xf32>
    %476 = vector.extract_strided_slice %445 {offsets = [0, 2], sizes = [8, 254], strides = [1, 1]} : vector<8x256xf32> to vector<8x254xf32>
    %477 = vector.extract_strided_slice %445 {offsets = [0, 0], sizes = [8, 2], strides = [1, 1]} : vector<8x256xf32> to vector<8x2xf32>
    %478 = tpu.concatenate %476, %477 in 1 : vector<8x254xf32>, vector<8x2xf32> -> vector<8x256xf32>
    %c83 = arith.constant 83 : index
    %479 = memref.load %arg2[%c83] : memref<108xf32, #tpu.memory_space<smem>>
    %480 = vector.broadcast %479 : f32 to vector<8x256xf32>
    %481 = arith.mulf %478, %480 : vector<8x256xf32>
    %482 = arith.addf %467, %481 : vector<8x256xf32>
    %c92 = arith.constant 92 : index
    %483 = memref.load %arg2[%c92] : memref<108xf32, #tpu.memory_space<smem>>
    %484 = vector.broadcast %483 : f32 to vector<8x256xf32>
    %485 = arith.mulf %478, %484 : vector<8x256xf32>
    %486 = arith.addf %471, %485 : vector<8x256xf32>
    %c101 = arith.constant 101 : index
    %487 = memref.load %arg2[%c101] : memref<108xf32, #tpu.memory_space<smem>>
    %488 = vector.broadcast %487 : f32 to vector<8x256xf32>
    %489 = arith.mulf %478, %488 : vector<8x256xf32>
    %490 = arith.addf %475, %489 : vector<8x256xf32>
    %491 = vector.extract_strided_slice %445 {offsets = [0, 16], sizes = [8, 240], strides = [1, 1]} : vector<8x256xf32> to vector<8x240xf32>
    %492 = vector.extract_strided_slice %445 {offsets = [0, 0], sizes = [8, 16], strides = [1, 1]} : vector<8x256xf32> to vector<8x16xf32>
    %493 = tpu.concatenate %491, %492 in 1 : vector<8x240xf32>, vector<8x16xf32> -> vector<8x256xf32>
    %c84 = arith.constant 84 : index
    %494 = memref.load %arg2[%c84] : memref<108xf32, #tpu.memory_space<smem>>
    %495 = vector.broadcast %494 : f32 to vector<8x256xf32>
    %496 = arith.mulf %493, %495 : vector<8x256xf32>
    %497 = arith.addf %482, %496 : vector<8x256xf32>
    %c93 = arith.constant 93 : index
    %498 = memref.load %arg2[%c93] : memref<108xf32, #tpu.memory_space<smem>>
    %499 = vector.broadcast %498 : f32 to vector<8x256xf32>
    %500 = arith.mulf %493, %499 : vector<8x256xf32>
    %501 = arith.addf %486, %500 : vector<8x256xf32>
    %c102 = arith.constant 102 : index
    %502 = memref.load %arg2[%c102] : memref<108xf32, #tpu.memory_space<smem>>
    %503 = vector.broadcast %502 : f32 to vector<8x256xf32>
    %504 = arith.mulf %493, %503 : vector<8x256xf32>
    %505 = arith.addf %490, %504 : vector<8x256xf32>
    %506 = vector.extract_strided_slice %445 {offsets = [0, 17], sizes = [8, 239], strides = [1, 1]} : vector<8x256xf32> to vector<8x239xf32>
    %507 = vector.extract_strided_slice %445 {offsets = [0, 0], sizes = [8, 17], strides = [1, 1]} : vector<8x256xf32> to vector<8x17xf32>
    %508 = tpu.concatenate %506, %507 in 1 : vector<8x239xf32>, vector<8x17xf32> -> vector<8x256xf32>
    %c85 = arith.constant 85 : index
    %509 = memref.load %arg2[%c85] : memref<108xf32, #tpu.memory_space<smem>>
    %510 = vector.broadcast %509 : f32 to vector<8x256xf32>
    %511 = arith.mulf %508, %510 : vector<8x256xf32>
    %512 = arith.addf %497, %511 : vector<8x256xf32>
    %c94 = arith.constant 94 : index
    %513 = memref.load %arg2[%c94] : memref<108xf32, #tpu.memory_space<smem>>
    %514 = vector.broadcast %513 : f32 to vector<8x256xf32>
    %515 = arith.mulf %508, %514 : vector<8x256xf32>
    %516 = arith.addf %501, %515 : vector<8x256xf32>
    %c103 = arith.constant 103 : index
    %517 = memref.load %arg2[%c103] : memref<108xf32, #tpu.memory_space<smem>>
    %518 = vector.broadcast %517 : f32 to vector<8x256xf32>
    %519 = arith.mulf %508, %518 : vector<8x256xf32>
    %520 = arith.addf %505, %519 : vector<8x256xf32>
    %521 = vector.extract_strided_slice %445 {offsets = [0, 18], sizes = [8, 238], strides = [1, 1]} : vector<8x256xf32> to vector<8x238xf32>
    %522 = vector.extract_strided_slice %445 {offsets = [0, 0], sizes = [8, 18], strides = [1, 1]} : vector<8x256xf32> to vector<8x18xf32>
    %523 = tpu.concatenate %521, %522 in 1 : vector<8x238xf32>, vector<8x18xf32> -> vector<8x256xf32>
    %c86 = arith.constant 86 : index
    %524 = memref.load %arg2[%c86] : memref<108xf32, #tpu.memory_space<smem>>
    %525 = vector.broadcast %524 : f32 to vector<8x256xf32>
    %526 = arith.mulf %523, %525 : vector<8x256xf32>
    %527 = arith.addf %512, %526 : vector<8x256xf32>
    %c95 = arith.constant 95 : index
    %528 = memref.load %arg2[%c95] : memref<108xf32, #tpu.memory_space<smem>>
    %529 = vector.broadcast %528 : f32 to vector<8x256xf32>
    %530 = arith.mulf %523, %529 : vector<8x256xf32>
    %531 = arith.addf %516, %530 : vector<8x256xf32>
    %c104 = arith.constant 104 : index
    %532 = memref.load %arg2[%c104] : memref<108xf32, #tpu.memory_space<smem>>
    %533 = vector.broadcast %532 : f32 to vector<8x256xf32>
    %534 = arith.mulf %523, %533 : vector<8x256xf32>
    %535 = arith.addf %520, %534 : vector<8x256xf32>
    %536 = vector.extract_strided_slice %445 {offsets = [0, 32], sizes = [8, 224], strides = [1, 1]} : vector<8x256xf32> to vector<8x224xf32>
    %537 = vector.extract_strided_slice %445 {offsets = [0, 0], sizes = [8, 32], strides = [1, 1]} : vector<8x256xf32> to vector<8x32xf32>
    %538 = tpu.concatenate %536, %537 in 1 : vector<8x224xf32>, vector<8x32xf32> -> vector<8x256xf32>
    %c87 = arith.constant 87 : index
    %539 = memref.load %arg2[%c87] : memref<108xf32, #tpu.memory_space<smem>>
    %540 = vector.broadcast %539 : f32 to vector<8x256xf32>
    %541 = arith.mulf %538, %540 : vector<8x256xf32>
    %542 = arith.addf %527, %541 : vector<8x256xf32>
    %c96 = arith.constant 96 : index
    %543 = memref.load %arg2[%c96] : memref<108xf32, #tpu.memory_space<smem>>
    %544 = vector.broadcast %543 : f32 to vector<8x256xf32>
    %545 = arith.mulf %538, %544 : vector<8x256xf32>
    %546 = arith.addf %531, %545 : vector<8x256xf32>
    %c105 = arith.constant 105 : index
    %547 = memref.load %arg2[%c105] : memref<108xf32, #tpu.memory_space<smem>>
    %548 = vector.broadcast %547 : f32 to vector<8x256xf32>
    %549 = arith.mulf %538, %548 : vector<8x256xf32>
    %550 = arith.addf %535, %549 : vector<8x256xf32>
    %551 = vector.extract_strided_slice %445 {offsets = [0, 33], sizes = [8, 223], strides = [1, 1]} : vector<8x256xf32> to vector<8x223xf32>
    %552 = vector.extract_strided_slice %445 {offsets = [0, 0], sizes = [8, 33], strides = [1, 1]} : vector<8x256xf32> to vector<8x33xf32>
    %553 = tpu.concatenate %551, %552 in 1 : vector<8x223xf32>, vector<8x33xf32> -> vector<8x256xf32>
    %c88 = arith.constant 88 : index
    %554 = memref.load %arg2[%c88] : memref<108xf32, #tpu.memory_space<smem>>
    %555 = vector.broadcast %554 : f32 to vector<8x256xf32>
    %556 = arith.mulf %553, %555 : vector<8x256xf32>
    %557 = arith.addf %542, %556 : vector<8x256xf32>
    %c97 = arith.constant 97 : index
    %558 = memref.load %arg2[%c97] : memref<108xf32, #tpu.memory_space<smem>>
    %559 = vector.broadcast %558 : f32 to vector<8x256xf32>
    %560 = arith.mulf %553, %559 : vector<8x256xf32>
    %561 = arith.addf %546, %560 : vector<8x256xf32>
    %c106 = arith.constant 106 : index
    %562 = memref.load %arg2[%c106] : memref<108xf32, #tpu.memory_space<smem>>
    %563 = vector.broadcast %562 : f32 to vector<8x256xf32>
    %564 = arith.mulf %553, %563 : vector<8x256xf32>
    %565 = arith.addf %550, %564 : vector<8x256xf32>
    %566 = vector.extract_strided_slice %445 {offsets = [0, 34], sizes = [8, 222], strides = [1, 1]} : vector<8x256xf32> to vector<8x222xf32>
    %567 = vector.extract_strided_slice %445 {offsets = [0, 0], sizes = [8, 34], strides = [1, 1]} : vector<8x256xf32> to vector<8x34xf32>
    %568 = tpu.concatenate %566, %567 in 1 : vector<8x222xf32>, vector<8x34xf32> -> vector<8x256xf32>
    %c89 = arith.constant 89 : index
    %569 = memref.load %arg2[%c89] : memref<108xf32, #tpu.memory_space<smem>>
    %570 = vector.broadcast %569 : f32 to vector<8x256xf32>
    %571 = arith.mulf %568, %570 : vector<8x256xf32>
    %572 = arith.addf %557, %571 : vector<8x256xf32>
    %c98 = arith.constant 98 : index
    %573 = memref.load %arg2[%c98] : memref<108xf32, #tpu.memory_space<smem>>
    %574 = vector.broadcast %573 : f32 to vector<8x256xf32>
    %575 = arith.mulf %568, %574 : vector<8x256xf32>
    %576 = arith.addf %561, %575 : vector<8x256xf32>
    %c107 = arith.constant 107 : index
    %577 = memref.load %arg2[%c107] : memref<108xf32, #tpu.memory_space<smem>>
    %578 = vector.broadcast %577 : f32 to vector<8x256xf32>
    %579 = arith.mulf %568, %578 : vector<8x256xf32>
    %580 = arith.addf %565, %579 : vector<8x256xf32>
    %581 = vector.extract_strided_slice %572 {offsets = [0, 0], sizes = [6, 256], strides = [1, 1]} : vector<8x256xf32> to vector<6x256xf32>
    %582 = vector.extract_strided_slice %576 {offsets = [1, 0], sizes = [6, 256], strides = [1, 1]} : vector<8x256xf32> to vector<6x256xf32>
    %583 = arith.addf %581, %582 : vector<6x256xf32>
    %584 = vector.extract_strided_slice %580 {offsets = [2, 0], sizes = [6, 256], strides = [1, 1]} : vector<8x256xf32> to vector<6x256xf32>
    %585 = arith.addf %583, %584 : vector<6x256xf32>
    %c3_39 = arith.constant 3 : index
    %586 = memref.load %arg3[%c3_39] : memref<4xf32, #tpu.memory_space<smem>>
    %587 = vector.broadcast %586 : f32 to vector<6x256xf32>
    %588 = arith.addf %585, %587 : vector<6x256xf32>
    %c3_40 = arith.constant 3 : index
    %c0_41 = arith.constant 0 : index
    %c0_42 = arith.constant 0 : index
    %589 = vector.load %arg7[%c3_40, %c0_41, %c0_42] : memref<4x6x256xf32, #tpu.memory_space<vmem>>, vector<1x6x256xf32>
    %590 = vector.shape_cast %589 : vector<1x6x256xf32> to vector<6x256xf32>
    %591 = vector.shape_cast %588 : vector<6x256xf32> to vector<1x6x256xf32>
    tpu.vector_store %arg7[%c3_40, %c0_41, %c0_42], %591 {strides = array<i32>} : memref<4x6x256xf32, #tpu.memory_space<vmem>>, vector<1x6x256xf32>,
    %c0_43 = arith.constant 0 : index
    %c0_44 = arith.constant 0 : index
    %c0_45 = arith.constant 0 : index
    %592 = vector.load %arg7[%c0_43, %c0_44, %c0_45] : memref<4x6x256xf32, #tpu.memory_space<vmem>>, vector<1x6x256xf32>
    %593 = vector.shape_cast %592 : vector<1x6x256xf32> to vector<6x256xf32>
    %c0_46 = arith.constant 0 : index
    %594 = memref.load %arg4[%c0_46] : memref<32xf32, #tpu.memory_space<smem>>
    %595 = vector.broadcast %594 : f32 to vector<6x256xf32>
    %596 = arith.mulf %593, %595 : vector<6x256xf32>
    %c1_47 = arith.constant 1 : index
    %c0_48 = arith.constant 0 : index
    %c0_49 = arith.constant 0 : index
    %597 = vector.load %arg7[%c1_47, %c0_48, %c0_49] : memref<4x6x256xf32, #tpu.memory_space<vmem>>, vector<1x6x256xf32>
    %598 = vector.shape_cast %597 : vector<1x6x256xf32> to vector<6x256xf32>
    %c1_50 = arith.constant 1 : index
    %599 = memref.load %arg4[%c1_50] : memref<32xf32, #tpu.memory_space<smem>>
    %600 = vector.broadcast %599 : f32 to vector<6x256xf32>
    %601 = arith.mulf %598, %600 : vector<6x256xf32>
    %602 = arith.addf %596, %601 : vector<6x256xf32>
    %c2_51 = arith.constant 2 : index
    %c0_52 = arith.constant 0 : index
    %c0_53 = arith.constant 0 : index
    %603 = vector.load %arg7[%c2_51, %c0_52, %c0_53] : memref<4x6x256xf32, #tpu.memory_space<vmem>>, vector<1x6x256xf32>
    %604 = vector.shape_cast %603 : vector<1x6x256xf32> to vector<6x256xf32>
    %c2_54 = arith.constant 2 : index
    %605 = memref.load %arg4[%c2_54] : memref<32xf32, #tpu.memory_space<smem>>
    %606 = vector.broadcast %605 : f32 to vector<6x256xf32>
    %607 = arith.mulf %604, %606 : vector<6x256xf32>
    %608 = arith.addf %602, %607 : vector<6x256xf32>
    %c3_55 = arith.constant 3 : index
    %c0_56 = arith.constant 0 : index
    %c0_57 = arith.constant 0 : index
    %609 = vector.load %arg7[%c3_55, %c0_56, %c0_57] : memref<4x6x256xf32, #tpu.memory_space<vmem>>, vector<1x6x256xf32>
    %610 = vector.shape_cast %609 : vector<1x6x256xf32> to vector<6x256xf32>
    %c3_58 = arith.constant 3 : index
    %611 = memref.load %arg4[%c3_58] : memref<32xf32, #tpu.memory_space<smem>>
    %612 = vector.broadcast %611 : f32 to vector<6x256xf32>
    %613 = arith.mulf %610, %612 : vector<6x256xf32>
    %614 = arith.addf %608, %613 : vector<6x256xf32>
    %c0_59 = arith.constant 0 : index
    %615 = memref.load %arg5[%c0_59] : memref<8xf32, #tpu.memory_space<smem>>
    %616 = vector.broadcast %615 : f32 to vector<6x256xf32>
    %617 = arith.addf %614, %616 : vector<6x256xf32>
    %c0_60 = arith.constant 0 : index
    %c0_61 = arith.constant 0 : index
    %c0_62 = arith.constant 0 : index
    %c0_63 = arith.constant 0 : index
    %618 = vector.load %arg6[%c0_60, %c0_61, %c0_62, %c0_63] : memref<1x8x6x256xf32, #tpu.memory_space<vmem>>, vector<1x1x6x256xf32>
    %619 = vector.shape_cast %618 : vector<1x1x6x256xf32> to vector<6x256xf32>
    %620 = vector.shape_cast %617 : vector<6x256xf32> to vector<1x1x6x256xf32>
    tpu.vector_store %arg6[%c0_60, %c0_61, %c0_62, %c0_63], %620 {strides = array<i32>} : memref<1x8x6x256xf32, #tpu.memory_space<vmem>>, vector<1x1x6x256xf32>,
    %c0_64 = arith.constant 0 : index
    %c0_65 = arith.constant 0 : index
    %c0_66 = arith.constant 0 : index
    %621 = vector.load %arg7[%c0_64, %c0_65, %c0_66] : memref<4x6x256xf32, #tpu.memory_space<vmem>>, vector<1x6x256xf32>
    %622 = vector.shape_cast %621 : vector<1x6x256xf32> to vector<6x256xf32>
    %c4_67 = arith.constant 4 : index
    %623 = memref.load %arg4[%c4_67] : memref<32xf32, #tpu.memory_space<smem>>
    %624 = vector.broadcast %623 : f32 to vector<6x256xf32>
    %625 = arith.mulf %622, %624 : vector<6x256xf32>
    %c1_68 = arith.constant 1 : index
    %c0_69 = arith.constant 0 : index
    %c0_70 = arith.constant 0 : index
    %626 = vector.load %arg7[%c1_68, %c0_69, %c0_70] : memref<4x6x256xf32, #tpu.memory_space<vmem>>, vector<1x6x256xf32>
    %627 = vector.shape_cast %626 : vector<1x6x256xf32> to vector<6x256xf32>
    %c5_71 = arith.constant 5 : index
    %628 = memref.load %arg4[%c5_71] : memref<32xf32, #tpu.memory_space<smem>>
    %629 = vector.broadcast %628 : f32 to vector<6x256xf32>
    %630 = arith.mulf %627, %629 : vector<6x256xf32>
    %631 = arith.addf %625, %630 : vector<6x256xf32>
    %c2_72 = arith.constant 2 : index
    %c0_73 = arith.constant 0 : index
    %c0_74 = arith.constant 0 : index
    %632 = vector.load %arg7[%c2_72, %c0_73, %c0_74] : memref<4x6x256xf32, #tpu.memory_space<vmem>>, vector<1x6x256xf32>
    %633 = vector.shape_cast %632 : vector<1x6x256xf32> to vector<6x256xf32>
    %c6_75 = arith.constant 6 : index
    %634 = memref.load %arg4[%c6_75] : memref<32xf32, #tpu.memory_space<smem>>
    %635 = vector.broadcast %634 : f32 to vector<6x256xf32>
    %636 = arith.mulf %633, %635 : vector<6x256xf32>
    %637 = arith.addf %631, %636 : vector<6x256xf32>
    %c3_76 = arith.constant 3 : index
    %c0_77 = arith.constant 0 : index
    %c0_78 = arith.constant 0 : index
    %638 = vector.load %arg7[%c3_76, %c0_77, %c0_78] : memref<4x6x256xf32, #tpu.memory_space<vmem>>, vector<1x6x256xf32>
    %639 = vector.shape_cast %638 : vector<1x6x256xf32> to vector<6x256xf32>
    %c7_79 = arith.constant 7 : index
    %640 = memref.load %arg4[%c7_79] : memref<32xf32, #tpu.memory_space<smem>>
    %641 = vector.broadcast %640 : f32 to vector<6x256xf32>
    %642 = arith.mulf %639, %641 : vector<6x256xf32>
    %643 = arith.addf %637, %642 : vector<6x256xf32>
    %c1_80 = arith.constant 1 : index
    %644 = memref.load %arg5[%c1_80] : memref<8xf32, #tpu.memory_space<smem>>
    %645 = vector.broadcast %644 : f32 to vector<6x256xf32>
    %646 = arith.addf %643, %645 : vector<6x256xf32>
    %c0_81 = arith.constant 0 : index
    %c1_82 = arith.constant 1 : index
    %c0_83 = arith.constant 0 : index
    %c0_84 = arith.constant 0 : index
    %647 = vector.load %arg6[%c0_81, %c1_82, %c0_83, %c0_84] : memref<1x8x6x256xf32, #tpu.memory_space<vmem>>, vector<1x1x6x256xf32>
    %648 = vector.shape_cast %647 : vector<1x1x6x256xf32> to vector<6x256xf32>
    %649 = vector.shape_cast %646 : vector<6x256xf32> to vector<1x1x6x256xf32>
    tpu.vector_store %arg6[%c0_81, %c1_82, %c0_83, %c0_84], %649 {strides = array<i32>} : memref<1x8x6x256xf32, #tpu.memory_space<vmem>>, vector<1x1x6x256xf32>,
    %c0_85 = arith.constant 0 : index
    %c0_86 = arith.constant 0 : index
    %c0_87 = arith.constant 0 : index
    %650 = vector.load %arg7[%c0_85, %c0_86, %c0_87] : memref<4x6x256xf32, #tpu.memory_space<vmem>>, vector<1x6x256xf32>
    %651 = vector.shape_cast %650 : vector<1x6x256xf32> to vector<6x256xf32>
    %c8_88 = arith.constant 8 : index
    %652 = memref.load %arg4[%c8_88] : memref<32xf32, #tpu.memory_space<smem>>
    %653 = vector.broadcast %652 : f32 to vector<6x256xf32>
    %654 = arith.mulf %651, %653 : vector<6x256xf32>
    %c1_89 = arith.constant 1 : index
    %c0_90 = arith.constant 0 : index
    %c0_91 = arith.constant 0 : index
    %655 = vector.load %arg7[%c1_89, %c0_90, %c0_91] : memref<4x6x256xf32, #tpu.memory_space<vmem>>, vector<1x6x256xf32>
    %656 = vector.shape_cast %655 : vector<1x6x256xf32> to vector<6x256xf32>
    %c9_92 = arith.constant 9 : index
    %657 = memref.load %arg4[%c9_92] : memref<32xf32, #tpu.memory_space<smem>>
    %658 = vector.broadcast %657 : f32 to vector<6x256xf32>
    %659 = arith.mulf %656, %658 : vector<6x256xf32>
    %660 = arith.addf %654, %659 : vector<6x256xf32>
    %c2_93 = arith.constant 2 : index
    %c0_94 = arith.constant 0 : index
    %c0_95 = arith.constant 0 : index
    %661 = vector.load %arg7[%c2_93, %c0_94, %c0_95] : memref<4x6x256xf32, #tpu.memory_space<vmem>>, vector<1x6x256xf32>
    %662 = vector.shape_cast %661 : vector<1x6x256xf32> to vector<6x256xf32>
    %c10_96 = arith.constant 10 : index
    %663 = memref.load %arg4[%c10_96] : memref<32xf32, #tpu.memory_space<smem>>
    %664 = vector.broadcast %663 : f32 to vector<6x256xf32>
    %665 = arith.mulf %662, %664 : vector<6x256xf32>
    %666 = arith.addf %660, %665 : vector<6x256xf32>
    %c3_97 = arith.constant 3 : index
    %c0_98 = arith.constant 0 : index
    %c0_99 = arith.constant 0 : index
    %667 = vector.load %arg7[%c3_97, %c0_98, %c0_99] : memref<4x6x256xf32, #tpu.memory_space<vmem>>, vector<1x6x256xf32>
    %668 = vector.shape_cast %667 : vector<1x6x256xf32> to vector<6x256xf32>
    %c11_100 = arith.constant 11 : index
    %669 = memref.load %arg4[%c11_100] : memref<32xf32, #tpu.memory_space<smem>>
    %670 = vector.broadcast %669 : f32 to vector<6x256xf32>
    %671 = arith.mulf %668, %670 : vector<6x256xf32>
    %672 = arith.addf %666, %671 : vector<6x256xf32>
    %c2_101 = arith.constant 2 : index
    %673 = memref.load %arg5[%c2_101] : memref<8xf32, #tpu.memory_space<smem>>
    %674 = vector.broadcast %673 : f32 to vector<6x256xf32>
    %675 = arith.addf %672, %674 : vector<6x256xf32>
    %c0_102 = arith.constant 0 : index
    %c2_103 = arith.constant 2 : index
    %c0_104 = arith.constant 0 : index
    %c0_105 = arith.constant 0 : index
    %676 = vector.load %arg6[%c0_102, %c2_103, %c0_104, %c0_105] : memref<1x8x6x256xf32, #tpu.memory_space<vmem>>, vector<1x1x6x256xf32>
    %677 = vector.shape_cast %676 : vector<1x1x6x256xf32> to vector<6x256xf32>
    %678 = vector.shape_cast %675 : vector<6x256xf32> to vector<1x1x6x256xf32>
    tpu.vector_store %arg6[%c0_102, %c2_103, %c0_104, %c0_105], %678 {strides = array<i32>} : memref<1x8x6x256xf32, #tpu.memory_space<vmem>>, vector<1x1x6x256xf32>,
    %c0_106 = arith.constant 0 : index
    %c0_107 = arith.constant 0 : index
    %c0_108 = arith.constant 0 : index
    %679 = vector.load %arg7[%c0_106, %c0_107, %c0_108] : memref<4x6x256xf32, #tpu.memory_space<vmem>>, vector<1x6x256xf32>
    %680 = vector.shape_cast %679 : vector<1x6x256xf32> to vector<6x256xf32>
    %c12_109 = arith.constant 12 : index
    %681 = memref.load %arg4[%c12_109] : memref<32xf32, #tpu.memory_space<smem>>
    %682 = vector.broadcast %681 : f32 to vector<6x256xf32>
    %683 = arith.mulf %680, %682 : vector<6x256xf32>
    %c1_110 = arith.constant 1 : index
    %c0_111 = arith.constant 0 : index
    %c0_112 = arith.constant 0 : index
    %684 = vector.load %arg7[%c1_110, %c0_111, %c0_112] : memref<4x6x256xf32, #tpu.memory_space<vmem>>, vector<1x6x256xf32>
    %685 = vector.shape_cast %684 : vector<1x6x256xf32> to vector<6x256xf32>
    %c13_113 = arith.constant 13 : index
    %686 = memref.load %arg4[%c13_113] : memref<32xf32, #tpu.memory_space<smem>>
    %687 = vector.broadcast %686 : f32 to vector<6x256xf32>
    %688 = arith.mulf %685, %687 : vector<6x256xf32>
    %689 = arith.addf %683, %688 : vector<6x256xf32>
    %c2_114 = arith.constant 2 : index
    %c0_115 = arith.constant 0 : index
    %c0_116 = arith.constant 0 : index
    %690 = vector.load %arg7[%c2_114, %c0_115, %c0_116] : memref<4x6x256xf32, #tpu.memory_space<vmem>>, vector<1x6x256xf32>
    %691 = vector.shape_cast %690 : vector<1x6x256xf32> to vector<6x256xf32>
    %c14_117 = arith.constant 14 : index
    %692 = memref.load %arg4[%c14_117] : memref<32xf32, #tpu.memory_space<smem>>
    %693 = vector.broadcast %692 : f32 to vector<6x256xf32>
    %694 = arith.mulf %691, %693 : vector<6x256xf32>
    %695 = arith.addf %689, %694 : vector<6x256xf32>
    %c3_118 = arith.constant 3 : index
    %c0_119 = arith.constant 0 : index
    %c0_120 = arith.constant 0 : index
    %696 = vector.load %arg7[%c3_118, %c0_119, %c0_120] : memref<4x6x256xf32, #tpu.memory_space<vmem>>, vector<1x6x256xf32>
    %697 = vector.shape_cast %696 : vector<1x6x256xf32> to vector<6x256xf32>
    %c15_121 = arith.constant 15 : index
    %698 = memref.load %arg4[%c15_121] : memref<32xf32, #tpu.memory_space<smem>>
    %699 = vector.broadcast %698 : f32 to vector<6x256xf32>
    %700 = arith.mulf %697, %699 : vector<6x256xf32>
    %701 = arith.addf %695, %700 : vector<6x256xf32>
    %c3_122 = arith.constant 3 : index
    %702 = memref.load %arg5[%c3_122] : memref<8xf32, #tpu.memory_space<smem>>
    %703 = vector.broadcast %702 : f32 to vector<6x256xf32>
    %704 = arith.addf %701, %703 : vector<6x256xf32>
    %c0_123 = arith.constant 0 : index
    %c3_124 = arith.constant 3 : index
    %c0_125 = arith.constant 0 : index
    %c0_126 = arith.constant 0 : index
    %705 = vector.load %arg6[%c0_123, %c3_124, %c0_125, %c0_126] : memref<1x8x6x256xf32, #tpu.memory_space<vmem>>, vector<1x1x6x256xf32>
    %706 = vector.shape_cast %705 : vector<1x1x6x256xf32> to vector<6x256xf32>
    %707 = vector.shape_cast %704 : vector<6x256xf32> to vector<1x1x6x256xf32>
    tpu.vector_store %arg6[%c0_123, %c3_124, %c0_125, %c0_126], %707 {strides = array<i32>} : memref<1x8x6x256xf32, #tpu.memory_space<vmem>>, vector<1x1x6x256xf32>,
    %c0_127 = arith.constant 0 : index
    %c0_128 = arith.constant 0 : index
    %c0_129 = arith.constant 0 : index
    %708 = vector.load %arg7[%c0_127, %c0_128, %c0_129] : memref<4x6x256xf32, #tpu.memory_space<vmem>>, vector<1x6x256xf32>
    %709 = vector.shape_cast %708 : vector<1x6x256xf32> to vector<6x256xf32>
    %c16_130 = arith.constant 16 : index
    %710 = memref.load %arg4[%c16_130] : memref<32xf32, #tpu.memory_space<smem>>
    %711 = vector.broadcast %710 : f32 to vector<6x256xf32>
    %712 = arith.mulf %709, %711 : vector<6x256xf32>
    %c1_131 = arith.constant 1 : index
    %c0_132 = arith.constant 0 : index
    %c0_133 = arith.constant 0 : index
    %713 = vector.load %arg7[%c1_131, %c0_132, %c0_133] : memref<4x6x256xf32, #tpu.memory_space<vmem>>, vector<1x6x256xf32>
    %714 = vector.shape_cast %713 : vector<1x6x256xf32> to vector<6x256xf32>
    %c17_134 = arith.constant 17 : index
    %715 = memref.load %arg4[%c17_134] : memref<32xf32, #tpu.memory_space<smem>>
    %716 = vector.broadcast %715 : f32 to vector<6x256xf32>
    %717 = arith.mulf %714, %716 : vector<6x256xf32>
    %718 = arith.addf %712, %717 : vector<6x256xf32>
    %c2_135 = arith.constant 2 : index
    %c0_136 = arith.constant 0 : index
    %c0_137 = arith.constant 0 : index
    %719 = vector.load %arg7[%c2_135, %c0_136, %c0_137] : memref<4x6x256xf32, #tpu.memory_space<vmem>>, vector<1x6x256xf32>
    %720 = vector.shape_cast %719 : vector<1x6x256xf32> to vector<6x256xf32>
    %c18_138 = arith.constant 18 : index
    %721 = memref.load %arg4[%c18_138] : memref<32xf32, #tpu.memory_space<smem>>
    %722 = vector.broadcast %721 : f32 to vector<6x256xf32>
    %723 = arith.mulf %720, %722 : vector<6x256xf32>
    %724 = arith.addf %718, %723 : vector<6x256xf32>
    %c3_139 = arith.constant 3 : index
    %c0_140 = arith.constant 0 : index
    %c0_141 = arith.constant 0 : index
    %725 = vector.load %arg7[%c3_139, %c0_140, %c0_141] : memref<4x6x256xf32, #tpu.memory_space<vmem>>, vector<1x6x256xf32>
    %726 = vector.shape_cast %725 : vector<1x6x256xf32> to vector<6x256xf32>
    %c19_142 = arith.constant 19 : index
    %727 = memref.load %arg4[%c19_142] : memref<32xf32, #tpu.memory_space<smem>>
    %728 = vector.broadcast %727 : f32 to vector<6x256xf32>
    %729 = arith.mulf %726, %728 : vector<6x256xf32>
    %730 = arith.addf %724, %729 : vector<6x256xf32>
    %c4_143 = arith.constant 4 : index
    %731 = memref.load %arg5[%c4_143] : memref<8xf32, #tpu.memory_space<smem>>
    %732 = vector.broadcast %731 : f32 to vector<6x256xf32>
    %733 = arith.addf %730, %732 : vector<6x256xf32>
    %c0_144 = arith.constant 0 : index
    %c4_145 = arith.constant 4 : index
    %c0_146 = arith.constant 0 : index
    %c0_147 = arith.constant 0 : index
    %734 = vector.load %arg6[%c0_144, %c4_145, %c0_146, %c0_147] : memref<1x8x6x256xf32, #tpu.memory_space<vmem>>, vector<1x1x6x256xf32>
    %735 = vector.shape_cast %734 : vector<1x1x6x256xf32> to vector<6x256xf32>
    %736 = vector.shape_cast %733 : vector<6x256xf32> to vector<1x1x6x256xf32>
    tpu.vector_store %arg6[%c0_144, %c4_145, %c0_146, %c0_147], %736 {strides = array<i32>} : memref<1x8x6x256xf32, #tpu.memory_space<vmem>>, vector<1x1x6x256xf32>,
    %c0_148 = arith.constant 0 : index
    %c0_149 = arith.constant 0 : index
    %c0_150 = arith.constant 0 : index
    %737 = vector.load %arg7[%c0_148, %c0_149, %c0_150] : memref<4x6x256xf32, #tpu.memory_space<vmem>>, vector<1x6x256xf32>
    %738 = vector.shape_cast %737 : vector<1x6x256xf32> to vector<6x256xf32>
    %c20_151 = arith.constant 20 : index
    %739 = memref.load %arg4[%c20_151] : memref<32xf32, #tpu.memory_space<smem>>
    %740 = vector.broadcast %739 : f32 to vector<6x256xf32>
    %741 = arith.mulf %738, %740 : vector<6x256xf32>
    %c1_152 = arith.constant 1 : index
    %c0_153 = arith.constant 0 : index
    %c0_154 = arith.constant 0 : index
    %742 = vector.load %arg7[%c1_152, %c0_153, %c0_154] : memref<4x6x256xf32, #tpu.memory_space<vmem>>, vector<1x6x256xf32>
    %743 = vector.shape_cast %742 : vector<1x6x256xf32> to vector<6x256xf32>
    %c21_155 = arith.constant 21 : index
    %744 = memref.load %arg4[%c21_155] : memref<32xf32, #tpu.memory_space<smem>>
    %745 = vector.broadcast %744 : f32 to vector<6x256xf32>
    %746 = arith.mulf %743, %745 : vector<6x256xf32>
    %747 = arith.addf %741, %746 : vector<6x256xf32>
    %c2_156 = arith.constant 2 : index
    %c0_157 = arith.constant 0 : index
    %c0_158 = arith.constant 0 : index
    %748 = vector.load %arg7[%c2_156, %c0_157, %c0_158] : memref<4x6x256xf32, #tpu.memory_space<vmem>>, vector<1x6x256xf32>
    %749 = vector.shape_cast %748 : vector<1x6x256xf32> to vector<6x256xf32>
    %c22_159 = arith.constant 22 : index
    %750 = memref.load %arg4[%c22_159] : memref<32xf32, #tpu.memory_space<smem>>
    %751 = vector.broadcast %750 : f32 to vector<6x256xf32>
    %752 = arith.mulf %749, %751 : vector<6x256xf32>
    %753 = arith.addf %747, %752 : vector<6x256xf32>
    %c3_160 = arith.constant 3 : index
    %c0_161 = arith.constant 0 : index
    %c0_162 = arith.constant 0 : index
    %754 = vector.load %arg7[%c3_160, %c0_161, %c0_162] : memref<4x6x256xf32, #tpu.memory_space<vmem>>, vector<1x6x256xf32>
    %755 = vector.shape_cast %754 : vector<1x6x256xf32> to vector<6x256xf32>
    %c23_163 = arith.constant 23 : index
    %756 = memref.load %arg4[%c23_163] : memref<32xf32, #tpu.memory_space<smem>>
    %757 = vector.broadcast %756 : f32 to vector<6x256xf32>
    %758 = arith.mulf %755, %757 : vector<6x256xf32>
    %759 = arith.addf %753, %758 : vector<6x256xf32>
    %c5_164 = arith.constant 5 : index
    %760 = memref.load %arg5[%c5_164] : memref<8xf32, #tpu.memory_space<smem>>
    %761 = vector.broadcast %760 : f32 to vector<6x256xf32>
    %762 = arith.addf %759, %761 : vector<6x256xf32>
    %c0_165 = arith.constant 0 : index
    %c5_166 = arith.constant 5 : index
    %c0_167 = arith.constant 0 : index
    %c0_168 = arith.constant 0 : index
    %763 = vector.load %arg6[%c0_165, %c5_166, %c0_167, %c0_168] : memref<1x8x6x256xf32, #tpu.memory_space<vmem>>, vector<1x1x6x256xf32>
    %764 = vector.shape_cast %763 : vector<1x1x6x256xf32> to vector<6x256xf32>
    %765 = vector.shape_cast %762 : vector<6x256xf32> to vector<1x1x6x256xf32>
    tpu.vector_store %arg6[%c0_165, %c5_166, %c0_167, %c0_168], %765 {strides = array<i32>} : memref<1x8x6x256xf32, #tpu.memory_space<vmem>>, vector<1x1x6x256xf32>,
    %c0_169 = arith.constant 0 : index
    %c0_170 = arith.constant 0 : index
    %c0_171 = arith.constant 0 : index
    %766 = vector.load %arg7[%c0_169, %c0_170, %c0_171] : memref<4x6x256xf32, #tpu.memory_space<vmem>>, vector<1x6x256xf32>
    %767 = vector.shape_cast %766 : vector<1x6x256xf32> to vector<6x256xf32>
    %c24_172 = arith.constant 24 : index
    %768 = memref.load %arg4[%c24_172] : memref<32xf32, #tpu.memory_space<smem>>
    %769 = vector.broadcast %768 : f32 to vector<6x256xf32>
    %770 = arith.mulf %767, %769 : vector<6x256xf32>
    %c1_173 = arith.constant 1 : index
    %c0_174 = arith.constant 0 : index
    %c0_175 = arith.constant 0 : index
    %771 = vector.load %arg7[%c1_173, %c0_174, %c0_175] : memref<4x6x256xf32, #tpu.memory_space<vmem>>, vector<1x6x256xf32>
    %772 = vector.shape_cast %771 : vector<1x6x256xf32> to vector<6x256xf32>
    %c25_176 = arith.constant 25 : index
    %773 = memref.load %arg4[%c25_176] : memref<32xf32, #tpu.memory_space<smem>>
    %774 = vector.broadcast %773 : f32 to vector<6x256xf32>
    %775 = arith.mulf %772, %774 : vector<6x256xf32>
    %776 = arith.addf %770, %775 : vector<6x256xf32>
    %c2_177 = arith.constant 2 : index
    %c0_178 = arith.constant 0 : index
    %c0_179 = arith.constant 0 : index
    %777 = vector.load %arg7[%c2_177, %c0_178, %c0_179] : memref<4x6x256xf32, #tpu.memory_space<vmem>>, vector<1x6x256xf32>
    %778 = vector.shape_cast %777 : vector<1x6x256xf32> to vector<6x256xf32>
    %c26_180 = arith.constant 26 : index
    %779 = memref.load %arg4[%c26_180] : memref<32xf32, #tpu.memory_space<smem>>
    %780 = vector.broadcast %779 : f32 to vector<6x256xf32>
    %781 = arith.mulf %778, %780 : vector<6x256xf32>
    %782 = arith.addf %776, %781 : vector<6x256xf32>
    %c3_181 = arith.constant 3 : index
    %c0_182 = arith.constant 0 : index
    %c0_183 = arith.constant 0 : index
    %783 = vector.load %arg7[%c3_181, %c0_182, %c0_183] : memref<4x6x256xf32, #tpu.memory_space<vmem>>, vector<1x6x256xf32>
    %784 = vector.shape_cast %783 : vector<1x6x256xf32> to vector<6x256xf32>
    %c27_184 = arith.constant 27 : index
    %785 = memref.load %arg4[%c27_184] : memref<32xf32, #tpu.memory_space<smem>>
    %786 = vector.broadcast %785 : f32 to vector<6x256xf32>
    %787 = arith.mulf %784, %786 : vector<6x256xf32>
    %788 = arith.addf %782, %787 : vector<6x256xf32>
    %c6_185 = arith.constant 6 : index
    %789 = memref.load %arg5[%c6_185] : memref<8xf32, #tpu.memory_space<smem>>
    %790 = vector.broadcast %789 : f32 to vector<6x256xf32>
    %791 = arith.addf %788, %790 : vector<6x256xf32>
    %c0_186 = arith.constant 0 : index
    %c6_187 = arith.constant 6 : index
    %c0_188 = arith.constant 0 : index
    %c0_189 = arith.constant 0 : index
    %792 = vector.load %arg6[%c0_186, %c6_187, %c0_188, %c0_189] : memref<1x8x6x256xf32, #tpu.memory_space<vmem>>, vector<1x1x6x256xf32>
    %793 = vector.shape_cast %792 : vector<1x1x6x256xf32> to vector<6x256xf32>
    %794 = vector.shape_cast %791 : vector<6x256xf32> to vector<1x1x6x256xf32>
    tpu.vector_store %arg6[%c0_186, %c6_187, %c0_188, %c0_189], %794 {strides = array<i32>} : memref<1x8x6x256xf32, #tpu.memory_space<vmem>>, vector<1x1x6x256xf32>,
    %c0_190 = arith.constant 0 : index
    %c0_191 = arith.constant 0 : index
    %c0_192 = arith.constant 0 : index
    %795 = vector.load %arg7[%c0_190, %c0_191, %c0_192] : memref<4x6x256xf32, #tpu.memory_space<vmem>>, vector<1x6x256xf32>
    %796 = vector.shape_cast %795 : vector<1x6x256xf32> to vector<6x256xf32>
    %c28_193 = arith.constant 28 : index
    %797 = memref.load %arg4[%c28_193] : memref<32xf32, #tpu.memory_space<smem>>
    %798 = vector.broadcast %797 : f32 to vector<6x256xf32>
    %799 = arith.mulf %796, %798 : vector<6x256xf32>
    %c1_194 = arith.constant 1 : index
    %c0_195 = arith.constant 0 : index
    %c0_196 = arith.constant 0 : index
    %800 = vector.load %arg7[%c1_194, %c0_195, %c0_196] : memref<4x6x256xf32, #tpu.memory_space<vmem>>, vector<1x6x256xf32>
    %801 = vector.shape_cast %800 : vector<1x6x256xf32> to vector<6x256xf32>
    %c29_197 = arith.constant 29 : index
    %802 = memref.load %arg4[%c29_197] : memref<32xf32, #tpu.memory_space<smem>>
    %803 = vector.broadcast %802 : f32 to vector<6x256xf32>
    %804 = arith.mulf %801, %803 : vector<6x256xf32>
    %805 = arith.addf %799, %804 : vector<6x256xf32>
    %c2_198 = arith.constant 2 : index
    %c0_199 = arith.constant 0 : index
    %c0_200 = arith.constant 0 : index
    %806 = vector.load %arg7[%c2_198, %c0_199, %c0_200] : memref<4x6x256xf32, #tpu.memory_space<vmem>>, vector<1x6x256xf32>
    %807 = vector.shape_cast %806 : vector<1x6x256xf32> to vector<6x256xf32>
    %c30_201 = arith.constant 30 : index
    %808 = memref.load %arg4[%c30_201] : memref<32xf32, #tpu.memory_space<smem>>
    %809 = vector.broadcast %808 : f32 to vector<6x256xf32>
    %810 = arith.mulf %807, %809 : vector<6x256xf32>
    %811 = arith.addf %805, %810 : vector<6x256xf32>
    %c3_202 = arith.constant 3 : index
    %c0_203 = arith.constant 0 : index
    %c0_204 = arith.constant 0 : index
    %812 = vector.load %arg7[%c3_202, %c0_203, %c0_204] : memref<4x6x256xf32, #tpu.memory_space<vmem>>, vector<1x6x256xf32>
    %813 = vector.shape_cast %812 : vector<1x6x256xf32> to vector<6x256xf32>
    %c31_205 = arith.constant 31 : index
    %814 = memref.load %arg4[%c31_205] : memref<32xf32, #tpu.memory_space<smem>>
    %815 = vector.broadcast %814 : f32 to vector<6x256xf32>
    %816 = arith.mulf %813, %815 : vector<6x256xf32>
    %817 = arith.addf %811, %816 : vector<6x256xf32>
    %c7_206 = arith.constant 7 : index
    %818 = memref.load %arg5[%c7_206] : memref<8xf32, #tpu.memory_space<smem>>
    %819 = vector.broadcast %818 : f32 to vector<6x256xf32>
    %820 = arith.addf %817, %819 : vector<6x256xf32>
    %c0_207 = arith.constant 0 : index
    %c7_208 = arith.constant 7 : index
    %c0_209 = arith.constant 0 : index
    %c0_210 = arith.constant 0 : index
    %821 = vector.load %arg6[%c0_207, %c7_208, %c0_209, %c0_210] : memref<1x8x6x256xf32, #tpu.memory_space<vmem>>, vector<1x1x6x256xf32>
    %822 = vector.shape_cast %821 : vector<1x1x6x256xf32> to vector<6x256xf32>
    %823 = vector.shape_cast %820 : vector<6x256xf32> to vector<1x1x6x256xf32>
    tpu.vector_store %arg6[%c0_207, %c7_208, %c0_209, %c0_210], %823 {strides = array<i32>} : memref<1x8x6x256xf32, #tpu.memory_space<vmem>>, vector<1x1x6x256xf32>,
    return
  }
  func.func @transform_0(%arg0: i32) -> (i32, i32, i32, i32) {
    %c0_i32 = arith.constant 0 : i32
    %c0_i32_0 = arith.constant 0 : i32
    %c0_i32_1 = arith.constant 0 : i32
    %c0_i32_2 = arith.constant 0 : i32
    return %arg0, %c0_i32, %c0_i32_0, %c0_i32_1 : i32, i32, i32, i32
  }
  func.func @transform_1(%arg0: i32) -> i32 {
    %c0_i32 = arith.constant 0 : i32
    %c0_i32_0 = arith.constant 0 : i32
    return %c0_i32 : i32
  }
  func.func @transform_2(%arg0: i32) -> i32 {
    %c0_i32 = arith.constant 0 : i32
    %c0_i32_0 = arith.constant 0 : i32
    return %c0_i32 : i32
  }
  func.func @transform_3(%arg0: i32) -> i32 {
    %c0_i32 = arith.constant 0 : i32
    %c0_i32_0 = arith.constant 0 : i32
    return %c0_i32 : i32
  }
  func.func @transform_4(%arg0: i32) -> i32 {
    %c0_i32 = arith.constant 0 : i32
    %c0_i32_0 = arith.constant 0 : i32
    return %c0_i32 : i32
  }
  func.func @transform_5(%arg0: i32) -> (i32, i32, i32, i32) {
    %c0_i32 = arith.constant 0 : i32
    %c0_i32_0 = arith.constant 0 : i32
    %c0_i32_1 = arith.constant 0 : i32
    %c0_i32_2 = arith.constant 0 : i32
    return %arg0, %c0_i32, %c0_i32_0, %c0_i32_1 : i32, i32, i32, i32
  }
}

</mosaic_0001>

<bundles_post_ra>
// kernel: tpu_custom_call.1
= control target key start
LH: loop header
LB: loop body
LE: loop exit
PB: predicated region body
PF: predicated region fallthrough
CT: control target
= control target key end

     0   :  { %s3597_s0 = inlined_call_operand.hbm [shape: f32[2,4,8,256], index: 0, kind: input, shape index: {}]   ;;  %s3598_s1 = inlined_call_operand.hbm [shape: f32[108], index: 1, kind: input, shape index: {}]   ;;  %s3599_s2 = inlined_call_operand.vmem [shape: f32[4], index: 2, kind: input, shape index: {}]   ;;  %s3600_s3 = inlined_call_operand.vmem [shape: f32[32], index: 3, kind: input, shape index: {}]   ;;  %s3601_s4 = inlined_call_operand.vmem [shape: f32[8], index: 4, kind: input, shape index: {}]   ;;  %s3602_s5 = inlined_call_operand.vmem [shape: f32[2,8,6,256], index: 5, kind: output, shape index: {}]  }
   0x1   :  { %3613 = sst [smem:[#allocation27_spill]] %s3597_s0 }
   0x2   :  { %3614 = sst [smem:[#allocation28_spill]] %s3598_s1 }
   0x3   :  { %3615 = sst [smem:[#allocation29_spill]] %s3599_s2 }
   0x4   :  { %3616 = sst [smem:[#allocation30_spill]] %s3600_s3 }
   0x5   :  { %10 = vsyncpa [#allocation4], 0 }
   0x6   :  { %12 = vsyncpa [#allocation4 + $0x1], 0 }
   0x7   :  { %13 = vsyncpa [#allocation5], 0 }
   0x8   :  { %14 = vsyncpa [#allocation6], 0 }
   0x9   :  { %15 = vsyncpa [#allocation10], 0  ;;  %s2224_s18 = smov 0   ;;  %s2226_s19 = smov 0  }
   0xa   :  { %s2228_s20 = smov 0   ;;  %s2230_s21 = smov 0  }
   0xb LB: > { %s2243_s22 = sadd.s32 4294967295, %s2178_s21   ;;  %p41_p0 = scmp.ne.s32.totalorder %s2170_s19, %s2166_s18  ;;  %s2178_s21 = sphi %s2230_s21, %s3656_s21   ;;  %s2174_s20 = sphi %s2228_s20, %s3655_s20   ;;  %s2170_s19 = sphi %s2226_s19, %s3654_s19   ;;  %s2166_s18 = sphi %s2224_s18, %s3653_s18  }
   0xc   : > { %p42_p1 = scmp.eq.s32.totalorder %s2243_s22, 0  ;;  %p1759_p2 = scmp.ge.s32.totalorder %s2178_s21, 1 }
   0xd   : > { %p162_p3 = scmp.lt.s32.totalorder %s2178_s21, 3  ;;  %s3618_s3 = sld [smem:[#allocation30_spill]] }
   0xe   : > { %p2251_p4 = por %p42_p1, %p41_p0  ;;  %s3620_s1 = sld [smem:[#allocation28_spill]] }
   0xf   : > { %p2258_p5 = pnand %p1759_p2, %p162_p3  ;;  %s3621_s2 = sld [smem:[#allocation29_spill]] }
  0x10   : > { %s204_s11 = sshll.u32 %s3601_s4, 4  ;;  %s2180_s12 = smov [#allocation9]   ;;  %s205_s11 = int_to_ptr.vmem [resolvable:$true] %s204_s11 }
  0x11   : > { %p1966_p6 = pneg %p2258_p5  ;;  %s2181_s13 = smov [#allocation7]  }
  0x12   : > { %s2182_s14 = smov [#allocation8]   ;;  %s2183_s15 = smov [#allocation11]  }
  0x13   : > { %s194_s26 = sshll.u32 %s3618_s3, 4  ;;  %p1967_p7 = pnand %p1966_p6, %p42_p1  ;;  %s195_s26 = int_to_ptr.vmem [resolvable:$true] %s194_s26 }
  0x14   : > { %s174_s30 = sshll.u32 %s3620_s1, 4  ;;  %s2276_s16 = sadd.s32 1, %s2178_s21   ;;  %s175_s30 = int_to_ptr.hbm [resolvable:$true] %s174_s30 }
  0x15   : > { %s184_s8 = sshll.u32 %s3621_s2, 4  ;;  %s25_s17 = ssub.s32 %s2178_s21, %s2276_s16  ;;  %s185_s8 = int_to_ptr.vmem [resolvable:$true] %s184_s8 }
  0x16   : > { %1975 = dma.vmem_to_smem (!%p1967_p7), %s195_s26, 16, %s2180_s12, [#allocation10]  }
  0x17   : > { %1969 = dma.hbm_to_smem (!%p1967_p7), %s175_s30, 16, %s2181_s13, [#allocation5]  }
  0x18   : > { %1972 = dma.vmem_to_smem (!%p1967_p7), %s185_s8, 16, %s2182_s14, [#allocation6]  }
  0x19   : > { %1978 = dma.vmem_to_smem (!%p1967_p7), %s205_s11, 16, %s2183_s15, [#allocation10]  }
  0x1a   : > { %p26_p8 = scmp.eq.s32.totalorder %s25_s17, 0  ;;  %s28_s18 = sadd.s32 1, %s2174_s20 }
  0x1b   : > { %p35_p9 = scmp.ne.s32.totalorder %s2174_s20, %s2170_s19  ;;  %p36_p10 = scmp.eq.s32.totalorder %s2178_s21, 0 }
  0x1c   : > { %s2285_s24 = scalar_select %p26_p8, %s2174_s20, %s28_s18  }
  0x1d   : > { %p37_p11 = por %p36_p10, %p35_p9  ;;  %p1987_p12 = scmp.lt.s32.totalorder %s2178_s21, 2 }
  0x1e   : > { %s215_s25 = sand.u32 1, %s2174_s20   ;;  %s1946_s26 = sshll.u32 %s2178_s21, 6 }
  0x1f   : > { %s1765_s28 = sshll.u32 %s215_s25, 6  ;;  %s3622_s0 = sld [smem:[#allocation27_spill]] }
  0x20   : > { %s219_s8 = scalar_lea.vmem [#allocation3], %s1765_s28  ;;  %p2293_p13 = pnand %p1987_p12, %p37_p11 }
  0x21   : > { %s227_s9 = sshll.u32 %s219_s8, 4  ;;  %s216_s11 = scalar_lea.sflag [#allocation4], %s215_s25  ;;  %s228_s9 = int_to_ptr.vmem [resolvable:$true] %s227_s9 }
  0x22   : > { %p2106_p2 = pneg %p2293_p13 }
  0x25   : > { %s224_s6 = scalar_lea.hbm %s3622_s0, %s1946_s26  ;;  %s2109_s15 = scalar_lea.hbm %s3622_s0, 128 }
  0x26   : > { %s225_s7 = sshll.u32 %s224_s6, 4  ;;  %s226_s7 = int_to_ptr.hbm [resolvable:$true] %s225_s7 }
  0x27   : > { %s2102_s12 = sshra.s32 %s226_s7, 4  ;;  %s2103_s12 = int_to_ptr.hbm [resolvable:$true] %s2102_s12 }
  0x28   : > { %s2104_s13 = scalar_lea.hbm %s2103_s12, 64  ;;  %p2110_p7 = scmp.lt.s32.totalorder %s2103_s12, %s3622_s0 }
  0x29   : > { %p2105_p0 = scmp.ne.s32.totalorder %s2103_s12, %s2104_s13  ;;  %p2111_p8 = scmp.lt.s32.totalorder %s2109_s15, %s2104_s13 }
  0x2b   : > { %p2107_p3 = pnand %p2106_p2, %p2105_p0  ;;  %p2112_p9 = por %p2111_p8, %p2110_p7 }
  0x2d   : > { %p2108_p6 = pneg %p2107_p3 }
  0x2f   : > { %p2113_p10 = pnand %p2112_p9, %p2108_p6 }
  0x31   : > { %2116 = shalt.err (!%p2113_p10)
}
  0x32   : > { %s2184_s25 = smov 256   ;;  %s2185_s26 = smov 16  }
  0x33   : > { %1982 = dma.hbm_to_vmem [thread:$0]  (!%p2293_p13), %s226_s7, 1024, %s228_s9, %s216_s11, %s2184_s25, %s2184_s25, %s2185_s26  }
  0x34   : > { %239 = sbr.rel (%p2258_p5) target bundleno = 401 (0x191), region = 40 }
  0x39   : > { %s241_s28 = sand.u32 1, %s2170_s19  }
  0x3a   : > { %s1769_s29 = sshll.u32 %s241_s28, 6  ;;  %s242_s30 = scalar_lea.sflag [#allocation4], %s241_s28 }
  0x3b   : > { %s2310_s6 = scalar_lea.vmem [#allocation3], %s1769_s29 }
  0x3c   : > { %2149 = dma.done.wait (%p2251_p4), %s242_s30, 1024  }
  0x3d   : > { %2151 = vsyncadd (%p2251_p4), %s242_s30, 4294966272 }
  0x3e   : > { %2153 = dma.done.wait (%p42_p1), [#allocation5], 16  }
  0x3f   : > { %2155 = vsyncadd (%p42_p1), [#allocation5], 4294967280 }
  0x40   : > { %2157 = dma.done.wait (%p42_p1), [#allocation6], 16  }
  0x41   : > { %2159 = vsyncadd (%p42_p1), [#allocation6], 4294967280 }
  0x42   : > { %2161 = dma.done.wait (%p42_p1), [#allocation10], 32  }
  0x43   : > { %2163 = vsyncadd (%p42_p1), [#allocation10], 4294967264 }
  0x44   : > { %271 = sfence }
  0x45   : > { %v2329_v0 = vld [vmem:[%s2310_s6] sm:$0xff]  ;;  %s2186_s23 = smov 126   ;;  %s2187_s27 = smov 127   ;;  %v2338_v1 = vld [vmem:[%s2310_s6 + $0x8] sm:$0xff]  ;;  %v2365_v2 = vld [vmem:[%s2310_s6 + $0x10] sm:$0xff]  ;;  %vm381_vm0 = vcmask 916480  }
  0x46   : > { %349 = vrot.lane.b32.xlu1 %v2329_v0, %s2186_s23  ;;  %321 = vrot.lane.b32.xlu0 %v2329_v0, %s2187_s27  ;;  %s2188_s7 = smov 112   ;;  %s3609_s8 = smov 111   ;;  %v2372_v3 = vld [vmem:[%s2310_s6 + $0x18] sm:$0xff]  ;;  %v2405_v4 = vld [vmem:[%s2310_s6 + $0x20] sm:$0xff]  ;;  %vm353_vm1 = vcmask 1031168   ;;  %vm325_vm2 = vcmask 1039360  }
  0x47   : > { %377 = vrot.lane.b32.xlu2 %v2329_v0, %s2188_s7  ;;  %s3611_s9 = smov 110   ;;  %s3607_s10 = smov 96   ;;  %v2410_v5 = vld [vmem:[%s2310_s6 + $0x28] sm:$0xff]  ;;  %v2423_v7 = vld [vmem:[%s2310_s6 + $0x30] sm:$0xff]  ;;  %v2428_v9 = vld [vmem:[%s2310_s6 + $0x38] sm:$0xff]  ;;  %vm409_vm3 = vcmask 908288  }
  0x48   : > { %s3605_s11 = smov 95   ;;  %s3603_s12 = smov 94   ;;  %vm437_vm4 = vcmask 900096   ;;  %vm465_vm5 = vcmask 785408   ;;  %vm493_vm6 = vcmask 777216   ;;  %vm521_vm7 = vcmask 769024  }
  0x49   : > { %s2434_s13 = sld [smem:[#allocation7 + $0x3]]  ;;  %p294_p1 = scmp.lt.s32.totalorder %s2243_s22, 1 }
  0x4a   : > { %s2438_s21 = sld [smem:[#allocation7 + $0xc]] }
  0x4b   : > { %s2440_s14 = sld [smem:[#allocation7 + $0x15]]  ;;  %s3658_s22 = smov (!%p294_p1, %s2243_s22), 1 }
  0x4c   : > { %s2444_s15 = sld [smem:[#allocation7 + $0x2]] }
  0x4d   : > { %s2446_s17 = sld [smem:[#allocation7 + $0xb]] }
  0x4e   : > { %351 = vrot.lane.b32.xlu1 %v2338_v1, %s2186_s23  ;;  %323 = vrot.lane.b32.xlu0 %v2338_v1, %s2187_s27  ;;  %s2448_s18 = sld [smem:[#allocation7 + $0x14]] }
  0x4f   : > { %379 = vrot.lane.b32.xlu2 %v2338_v1, %s2188_s7  ;;  %s2450_s25 = sld [smem:[#allocation7]]  ;;  %v388_v18 = vstv %s2434_s13 }
  0x50   : > { %s2456_s26 = sld [smem:[#allocation7 + $0x9]]  ;;  %v394_v19 = vstv %s2438_s21  ;;  %s3624_s21 = smov 111  }
  0x51   : > { %s2458_s28 = sld [smem:[#allocation7 + $0x12]]  ;;  %v400_v22 = vstv %s2440_s14 }
  0x52   : > { %s2464_s29 = sld [smem:[#allocation7 + $0x1]]  ;;  %v360_v23 = vstv %s2444_s15  ;;  %s3625_s15 = smov 96  }
  0x53   : > { %s2466_s30 = sld [smem:[#allocation7 + $0xa]]  ;;  %v366_v24 = vstv %s2446_s17 }
  0x54   : > { %s2488_s0 = sld [smem:[#allocation7 + $0x18]]  ;;  %v372_v25 = vstv %s2448_s18  ;;  %s3627_s18 = smov 95  }
  0x55   : > { %v302_v16 = vstv %s2450_s25  ;;  %s2491_s1 = sld [smem:[#allocation7 + $0x5]] }
  0x56   : > { %407 = vrot.lane.b32.xlu1 %v2338_v1, %s3609_s8  ;;  %405 = vrot.lane.b32.xlu0 %v2329_v0, %s3609_s8  ;;  %v308_v20 = vstv %s2456_s26  ;;  %v304_v26 = vmul.f32 %v302_v16, %v2338_v1  ;;  %s2509_s25 = sld [smem:[#allocation7 + $0x7]]  ;;  %v303_v34 = vmul.f32 %v302_v16, %v2329_v0 }
  0x57   : > { %433 = vrot.lane.b32.xlu2 %v2329_v0, %s3611_s9  ;;  %v314_v21 = vstv %s2458_s28  ;;  %v310_v30 = vmul.f32 %v308_v20, %v2338_v1  ;;  %s2515_s13 = sld [smem:[#allocation7 + $0x10]]  ;;  %v309_v36 = vmul.f32 %v308_v20, %v2329_v0 }
  0x58   : > { %v332_v27 = vstv %s2464_s29  ;;  %v316_v31 = vmul.f32 %v314_v21, %v2338_v1  ;;  %s2523_s14 = sld [smem:[#allocation7 + $0x1b]]  ;;  %v315_v37 = vmul.f32 %v314_v21, %v2329_v0 }
  0x59   : > { %v338_v32 = vstv %s2466_s30  ;;  %s2532_s26 = sld [smem:[#allocation7 + $0x24]]  ;;  %s3626_s30 = smov 110  }
  0x5a   : > { %s2551_s28 = sld [smem:[#allocation7 + $0x19]]  ;;  %v484_v57 = vstv %s2488_s0 }
  0x5b   : > { %s2558_s29 = sld [smem:[#allocation7 + $0x2d]]  ;;  %v444_v63 = vstv %s2491_s1  ;;  %s3628_s1 = smov 94  }
  0x5c   : > { %s2598_s17 = sld [smem:[#allocation7 + $0x8]] }
  0x5d   : > { %s2699_s0 = sld [smem:[#allocation7 + $0x2f]] }
  0x5e   : > { %461 = vrot.lane.b32.xlu1 %v2329_v0, %s3607_s10  ;;  %435 = vrot.lane.b32.xlu0 %v2338_v1, %s3611_s9  ;;  %v571_v16 = vstv %s2523_s14  ;;  %s2717_s14 = sld [smem:[#allocation7 + $0x1e]] }
  0x5f   : > { %463 = vrot.lane.b32.xlu2 %v2338_v1, %s3607_s10  ;;  %s2908_s2 = sld [smem:[#allocation7 + $0x37]] }
  0x60   : > { %s2910_s3 = sld [smem:[#allocation7 + $0x40]] }
  0x66   : > { %491 = vrot.lane.b32.xlu1 %v2338_v1, %s3605_s11  ;;  %489 = vrot.lane.b32.xlu0 %v2329_v0, %s3605_s11 }
  0x67   : > { %517 = vrot.lane.b32.xlu2 %v2329_v0, %s3603_s12 }
  0x6e   : > { %590 = vrot.lane.b32.xlu1 %v2365_v2, %s2187_s27  ;;  %519 = vrot.lane.b32.xlu0 %v2338_v1, %s3603_s12 }
  0x6f   : > { %592 = vrot.lane.b32.xlu2 %v2372_v3, %s2187_s27 }
  0x76   : > { %619 = vrot.lane.b32.xlu1 %v2372_v3, %s2186_s23  ;;  %617 = vrot.lane.b32.xlu0 %v2365_v2, %s2186_s23 }
  0x77   : > { %644 = vrot.lane.b32.xlu2 %v2365_v2, %s2188_s7 }
  0x7e   : > { %671 = vrot.lane.b32.xlu1 %v2365_v2, %s3609_s8  ;;  %646 = vrot.lane.b32.xlu0 %v2372_v3, %s2188_s7 }
  0x7f   : > { %673 = vrot.lane.b32.xlu2 %v2372_v3, %s3609_s8 }
  0x86   : > { %700 = vrot.lane.b32.xlu1 %v2372_v3, %s3611_s9  ;;  %698 = vrot.lane.b32.xlu0 %v2365_v2, %s3611_s9 }
  0x87   : > { %725 = vrot.lane.b32.xlu2 %v2365_v2, %s3607_s10 }
  0x8e   : > { %752 = vrot.lane.b32.xlu1 %v2365_v2, %s3605_s11  ;;  %727 = vrot.lane.b32.xlu0 %v2372_v3, %s3607_s10  ;;  %s2482_s10 = sld [smem:[#allocation7 + $0x6]] }
  0x8f   : > { %754 = vrot.lane.b32.xlu2 %v2372_v3, %s3605_s11  ;;  %s2476_s11 = sld [smem:[#allocation7 + $0x16]] }
  0x94   : > { %v472_v55 = vstv %s2482_s10  ;;  %s2677_s10 = sld [smem:[#allocation8]] }
  0x95   : > { %v428_v53 = vstv %s2476_s11  ;;  %s2654_s11 = sld [smem:[#allocation7 + $0x1c]] }
  0x96   : > { %781 = vrot.lane.b32.xlu1 %v2372_v3, %s3603_s12  ;;  %779 = vrot.lane.b32.xlu0 %v2365_v2, %s3603_s12  ;;  %s2474_s12 = sld [smem:[#allocation7 + $0xd]] }
  0x97   : > { %852 = vrot.lane.b32.xlu2 %v2405_v4, %s2187_s27 }
  0x9c   : > { %v422_v52 = vstv %s2474_s12  ;;  %s2634_s12 = sld [smem:[#allocation7 + $0x11]] }
  0x9e   : > { %879 = vrot.lane.b32.xlu1 %v2405_v4, %s2186_s23  ;;  %854 = vrot.lane.b32.xlu0 %v2410_v5, %s2187_s27 }
  0x9f   : > { %881 = vrot.lane.b32.xlu2 %v2410_v5, %s2186_s23 }
  0xa1   : > { %v378_v6 = vpop.permute.xlu2 %377 }
  0xa6   : > { %908 = vrot.lane.b32.xlu1 %v2410_v5, %s2188_s7  ;;  %906 = vrot.lane.b32.xlu0 %v2405_v4, %s2188_s7 }
  0xa7   : > { %1114 = vrot.lane.b32.xlu2 %v2423_v7, %s2187_s27 }
  0xa9   : > { %v380_v8 = vpop.permute.xlu2 %379 }
  0xaa   : > { %v382_v28 = vsel %vm381_vm0, %v378_v6, %v380_v8  ;;  %v386_v29 = vsel %vm381_vm0, %v380_v8, %v378_v6 }
  0xab   : > { %v2534_v39 = vmul.f32 %v388_v18, %v382_v28  ;;  %v2536_v40 = vmul.f32 %v388_v18, %v386_v29  ;;  %v2538_v41 = vmul.f32 %v394_v19, %v382_v28  ;;  %v2541_v45 = vmul.f32 %v394_v19, %v386_v29 }
  0xac   : > { %v2543_v46 = vmul.f32 %v400_v22, %v382_v28  ;;  %v2545_v47 = vmul.f32 %v400_v22, %v386_v29  ;;  %v577_v18 = vstv %s2532_s26  ;;  %s2733_s26 = sld [smem:[#allocation7 + $0x30]] }
  0xae   : > { %1141 = vrot.lane.b32.xlu1 %v2423_v7, %s2186_s23  ;;  %1116 = vrot.lane.b32.xlu0 %v2428_v9, %s2187_s27  ;;  %s2472_s27 = sld [smem:[#allocation7 + $0x4]] }
  0xaf   : > { %1143 = vrot.lane.b32.xlu2 %v2428_v9, %s2186_s23  ;;  %s2470_s23 = sld [smem:[#allocation7 + $0x13]] }
  0xb1   : > { %v2442_v10 = vpop.permute.xlu2 %433 }
  0xb4   : > { %v416_v43 = vstv %s2472_s27  ;;  %s2660_s27 = sld [smem:[#allocation7 + $0x25]] }
  0xb5   : > { %v344_v33 = vstv %s2470_s23  ;;  %s2636_s23 = sld [smem:[#allocation7 + $0x1a]] }
  0xb6   : > { %935 = vrot.lane.b32.xlu1 %v2410_v5, %s3609_s8  ;;  %933 = vrot.lane.b32.xlu0 %v2405_v4, %s3609_s8  ;;  %s2484_s8 = sld [smem:[#allocation7 + $0xf]] }
  0xb7   : > { %1168 = vrot.lane.b32.xlu2 %v2423_v7, %s2188_s7 }
  0xb8   : > { %v2462_v11 = vpop.permute.xlu1 %349  ;;  %v322_v12 = vpop.permute.xlu0 %321 }
  0xb9   : > { %v2468_v13 = vpop.permute.xlu2 %463 }
  0xbc   : > { %v478_v56 = vstv %s2484_s8  ;;  %s2685_s8 = sld [smem:[#allocation7 + $0x1d]] }
  0xbe   : > { %960 = vrot.lane.b32.xlu1 %v2405_v4, %s3611_s9  ;;  %1170 = vrot.lane.b32.xlu0 %v2428_v9, %s2188_s7  ;;  %s2499_s7 = sld [smem:[#allocation7 + $0xe]] }
  0xbf   : > { %962 = vrot.lane.b32.xlu2 %v2410_v5, %s3611_s9  ;;  %s2503_s9 = sld [smem:[#allocation7 + $0x17]] }
  0xc0   : > { %v352_v14 = vpop.permute.xlu1 %351  ;;  %v324_v15 = vpop.permute.xlu0 %323 }
  0xc1   : > { %v2493_v17 = vpop.permute.xlu2 %517  ;;  %v326_v35 = vsel %vm325_vm2, %v322_v12, %v324_v15  ;;  %v330_v38 = vsel %vm325_vm2, %v324_v15, %v322_v12  ;;  %v354_v54 = vsel %vm353_vm1, %v2462_v11, %v352_v14  ;;  %v358_v58 = vsel %vm353_vm1, %v352_v14, %v2462_v11 }
  0xc2   : > { %v333_v48 = vmul.f32 %v332_v27, %v326_v35  ;;  %v334_v50 = vmul.f32 %v332_v27, %v330_v38  ;;  %v339_v51 = vmul.f32 %v338_v32, %v326_v35  ;;  %v340_v59 = vmul.f32 %v338_v32, %v330_v38 }
  0xc3   : > { %v345_v60 = vmul.f32 %v344_v33, %v326_v35  ;;  %v346_v61 = vmul.f32 %v344_v33, %v330_v38  ;;  %v500_v12 = vstv %s2509_s25  ;;  %v506_v11 = vstv %s2515_s13  ;;  %s2709_s13 = sld [smem:[#allocation7 + $0x1f]] }
  0xc4   : > { %v335_v62 = vadd.f32 %v333_v48, %v303_v34  ;;  %v450_v0 = vstv %s2499_s7  ;;  %v336_v6 = vadd.f32 %v334_v50, %v304_v26  ;;  %v341_v8 = vadd.f32 %v339_v51, %v309_v36  ;;  %s2691_s7 = sld [smem:[#allocation7 + $0x26]] }
  0xc5   : > { %v456_v1 = vstv %s2503_s9  ;;  %v361_v14 = vmul.f32 %v360_v23, %v354_v54  ;;  %v362_v15 = vmul.f32 %v360_v23, %v358_v58  ;;  %v367_v19 = vmul.f32 %v366_v24, %v354_v54  ;;  %s2669_s9 = sld [smem:[#allocation7 + $0x2e]] }
  0xc6   : > { %1197 = vrot.lane.b32.xlu1 %v2428_v9, %s3624_s21  ;;  %1195 = vrot.lane.b32.xlu0 %v2423_v7, %s3624_s21  ;;  %v342_v20 = vadd.f32 %v340_v59, %v310_v30  ;;  %v347_v21 = vadd.f32 %v345_v60, %v315_v37  ;;  %v348_v22 = vadd.f32 %v346_v61, %v316_v31  ;;  %v583_v37 = vstv %s2558_s29  ;;  %s2715_s21 = sld [smem:[#allocation7 + $0x28]] }
  0xc7   : > { %987 = vrot.lane.b32.xlu2 %v2405_v4, %s3625_s15  ;;  %v368_v28 = vmul.f32 %v366_v24, %v358_v58  ;;  %v373_v29 = vmul.f32 %v372_v25, %v354_v54  ;;  %v374_v23 = vmul.f32 %v372_v25, %v358_v58  ;;  %v363_v32 = vadd.f32 %v361_v14, %v335_v62  ;;  %s2723_s25 = sld [smem:[#allocation7 + $0x31]] }
  0xc8   : > { %v408_v42 = vpop.permute.xlu1 %407  ;;  %v406_v44 = vpop.permute.xlu0 %405  ;;  %v364_v30 = vadd.f32 %v362_v15, %v336_v6  ;;  %v369_v31 = vadd.f32 %v367_v19, %v341_v8  ;;  %v512_v24 = vstv %s2551_s28  ;;  %v2589_v36 = vmul.f32 %v2365_v2, %v571_v16  ;;  %s2735_s28 = sld [smem:[#allocation7 + $0x20]] }
  0xc9   : > { %v2547_v49 = vpop.permute.xlu2 %592  ;;  %v410_v34 = vsel %vm409_vm3, %v406_v44, %v408_v42  ;;  %v414_v35 = vsel %vm409_vm3, %v408_v42, %v406_v44  ;;  %v2592_v25 = vmul.f32 %v2372_v3, %v571_v16  ;;  %v370_v38 = vadd.f32 %v368_v28, %v342_v20  ;;  %s2742_s29 = sld [smem:[#allocation7 + $0x29]] }
  0xca   : > { %v375_v48 = vadd.f32 %v373_v29, %v347_v21  ;;  %v376_v50 = vadd.f32 %v374_v23, %v348_v22  ;;  %v2596_v51 = vmul.f32 %v2365_v2, %v577_v18  ;;  %v417_v42 = vmul.f32 %v416_v43, %v410_v34 }
  0xcb   : > { %v418_v44 = vmul.f32 %v416_v43, %v414_v35  ;;  %v423_v54 = vmul.f32 %v422_v52, %v410_v34  ;;  %v2607_v58 = vmul.f32 %v2372_v3, %v577_v18  ;;  %v392_v59 = vadd.f32 %v2536_v40, %v364_v30 }
  0xcc   : > { %v391_v60 = vadd.f32 %v2534_v39, %v363_v32  ;;  %v397_v61 = vadd.f32 %v2538_v41, %v369_v31  ;;  %v2617_v62 = vmul.f32 %v2365_v2, %v583_v37  ;;  %v424_v43 = vmul.f32 %v422_v52, %v414_v35 }
  0xcd   : > { %v429_v6 = vmul.f32 %v428_v53, %v410_v34  ;;  %v398_v39 = vadd.f32 %v2541_v45, %v370_v38  ;;  %v404_v41 = vadd.f32 %v2545_v47, %v376_v50  ;;  %v403_v2 = vadd.f32 %v2543_v46, %v375_v48 }
  0xce   : > { %1222 = vrot.lane.b32.xlu1 %v2423_v7, %s3626_s30  ;;  %989 = vrot.lane.b32.xlu0 %v2410_v5, %s3625_s15  ;;  %v430_v52 = vmul.f32 %v428_v53, %v414_v35  ;;  %v420_v16 = vadd.f32 %v418_v44, %v392_v59  ;;  %v425_v18 = vadd.f32 %v423_v54, %v397_v61  ;;  %v540_v61 = vstv %s2636_s23  ;;  %s2775_s23 = sld [smem:[#allocation7 + $0x21]] }
  0xcf   : > { %1224 = vrot.lane.b32.xlu2 %v2428_v9, %s3626_s30  ;;  %v426_v20 = vadd.f32 %v424_v43, %v398_v39  ;;  %v431_v21 = vadd.f32 %v429_v6, %v403_v2  ;;  %s2753_s30 = sld [smem:[#allocation7 + $0x32]] }
  0xd0   : > { %v462_v26 = vpop.permute.xlu1 %461  ;;  %v436_v27 = vpop.permute.xlu0 %435  ;;  %v432_v28 = vadd.f32 %v430_v52, %v404_v41 }
  0xd1   : > { %v2583_v33 = vpop.permute.xlu2 %644  ;;  %v438_v8 = vsel %vm437_vm4, %v2442_v10, %v436_v27  ;;  %v442_v40 = vsel %vm437_vm4, %v436_v27, %v2442_v10  ;;  %v419_v10 = vadd.f32 %v417_v42, %v391_v60  ;;  %v466_v46 = vsel %vm465_vm5, %v462_v26, %v2468_v13 }
  0xd2   : > { %v470_v47 = vsel %vm465_vm5, %v2468_v13, %v462_v26  ;;  %v451_v53 = vmul.f32 %v450_v0, %v438_v8  ;;  %v452_v19 = vmul.f32 %v450_v0, %v442_v40  ;;  %v457_v22 = vmul.f32 %v456_v1, %v438_v8 }
  0xd3   : > { %v458_v27 = vmul.f32 %v456_v1, %v442_v40  ;;  %v445_v29 = vmul.f32 %v444_v63, %v438_v8  ;;  %v446_v13 = vmul.f32 %v444_v63, %v442_v40  ;;  %v528_v0 = vstv %s2598_s17  ;;  %s2755_s17 = sld [smem:[#allocation7 + $0x22]] }
  0xd4   : > { %v473_v26 = vmul.f32 %v472_v55, %v466_v46  ;;  %v474_v23 = vmul.f32 %v472_v55, %v470_v47  ;;  %v479_v30 = vmul.f32 %v478_v56, %v466_v46  ;;  %v480_v31 = vmul.f32 %v478_v56, %v470_v47 }
  0xd5   : > { %v453_v63 = vadd.f32 %v451_v53, %v425_v18  ;;  %v454_v34 = vadd.f32 %v452_v19, %v426_v20  ;;  %v485_v55 = vmul.f32 %v484_v57, %v466_v46  ;;  %v486_v35 = vmul.f32 %v484_v57, %v470_v47 }
  0xd6   : > { %1016 = vrot.lane.b32.xlu1 %v2410_v5, %s3627_s18  ;;  %1014 = vrot.lane.b32.xlu0 %v2405_v4, %s3627_s18  ;;  %v459_v38 = vadd.f32 %v457_v22, %v431_v21  ;;  %v460_v48 = vadd.f32 %v458_v27, %v432_v28  ;;  %v447_v56 = vadd.f32 %v445_v29, %v419_v10  ;;  %v534_v60 = vstv %s2634_s12  ;;  %s2762_s12 = sld [smem:[#allocation7 + $0x34]] }
  0xd7   : > { %1249 = vrot.lane.b32.xlu2 %v2423_v7, %s3625_s15  ;;  %v448_v50 = vadd.f32 %v446_v13, %v420_v16  ;;  %v481_v6 = vadd.f32 %v479_v30, %v453_v63  ;;  %v2728_v21 = vmul.f32 %v2372_v3, %v583_v37  ;;  %v600_v22 = vstv %s2654_s11  ;;  %s2781_s11 = sld [smem:[#allocation7 + $0x2a]] }
  0xd8   : > { %v492_v14 = vpop.permute.xlu1 %491  ;;  %v490_v15 = vpop.permute.xlu0 %489  ;;  %v487_v39 = vadd.f32 %v485_v55, %v459_v38  ;;  %v475_v52 = vadd.f32 %v473_v26, %v447_v56  ;;  %v612_v3 = vstv %s2669_s9  ;;  %v633_v38 = vstv %s2691_s7  ;;  %s2793_s9 = sld [smem:[#allocation7 + $0x23]] }
  0xd9   : > { %v2640_v45 = vpop.permute.xlu2 %673  ;;  %v494_v32 = vsel %vm493_vm6, %v490_v15, %v492_v14  ;;  %v498_v1 = vsel %vm493_vm6, %v492_v14, %v490_v15  ;;  %s2817_s7 = sld [smem:[#allocation9 + $0x8]] }
  0xda   : > { %v508_v42 = vmul.f32 %v506_v11, %v498_v1  ;;  %v513_v57 = vmul.f32 %v512_v24, %v494_v32  ;;  %v514_v59 = vmul.f32 %v512_v24, %v498_v1  ;;  %v488_v24 = vadd.f32 %v486_v35, %v460_v48 }
  0xdb   : > { %v501_v41 = vmul.f32 %v500_v12, %v494_v32  ;;  %v502_v2 = vmul.f32 %v500_v12, %v498_v1  ;;  %v627_v35 = vstv %s2685_s8  ;;  %v639_v48 = vstv %s2699_s0  ;;  %s2811_s8 = sld [smem:[#allocation9 + $0x4]] }
  0xdc   : > { %v515_v10 = vadd.f32 %v513_v57, %v487_v39  ;;  %v654_v57 = vstv %s2717_s14  ;;  %s2826_s0 = sld [smem:[#allocation7 + $0x35]] }
  0xdd   : > { %v503_v19 = vadd.f32 %v501_v41, %v475_v52  ;;  %s2838_s14 = sld [smem:[#allocation9 + $0x14]] }
  0xde   : > { %1041 = vrot.lane.b32.xlu1 %v2405_v4, %s3628_s1  ;;  %1251 = vrot.lane.b32.xlu0 %v2428_v9, %s3625_s15  ;;  %v507_v4 = vmul.f32 %v506_v11, %v494_v32  ;;  %v482_v11 = vadd.f32 %v480_v31, %v454_v34  ;;  %s2719_s15 = sld [smem:[#allocation7 + $0x27]]  ;;  %v562_v32 = vstv %s2677_s10 }
  0xdf   : > { %1043 = vrot.lane.b32.xlu2 %v2410_v5, %s3628_s1  ;;  %v476_v5 = vadd.f32 %v474_v23, %v448_v50  ;;  %v606_v23 = vstv %s2660_s27  ;;  %s2790_s27 = sld [smem:[#allocation7 + $0x33]] }
  0xe0   : > { %v591_v44 = vpop.permute.xlu1 %590  ;;  %v520_v54 = vpop.permute.xlu0 %519  ;;  %v509_v14 = vadd.f32 %v507_v4, %v481_v6  ;;  %v510_v15 = vadd.f32 %v508_v42, %v482_v11  ;;  %s2808_s10 = sld [smem:[#allocation9]] }
  0xe1   : > { %v2703_v43 = vpop.permute.xlu2 %725  ;;  %v522_v8 = vsel %vm521_vm7, %v2493_v17, %v520_v54  ;;  %v526_v40 = vsel %vm521_vm7, %v520_v54, %v2493_v17  ;;  %v516_v17 = vadd.f32 %v514_v59, %v488_v24  ;;  %v504_v20 = vadd.f32 %v502_v2, %v476_v5 }
  0xe2   : > { %v529_v16 = vmul.f32 %v528_v0, %v522_v8  ;;  %v530_v18 = vmul.f32 %v528_v0, %v526_v40  ;;  %v535_v46 = vmul.f32 %v534_v60, %v522_v8  ;;  %v536_v47 = vmul.f32 %v534_v60, %v526_v40 }
  0xe3   : > { %v541_v53 = vmul.f32 %v540_v61, %v522_v8  ;;  %v542_v12 = vmul.f32 %v540_v61, %v526_v40  ;;  %v594_v37 = vsel %vm325_vm2, %v591_v44, %v2547_v49  ;;  %v598_v55 = vsel %vm325_vm2, %v2547_v49, %v591_v44 }
  0xe4   : > { %v537_v27 = vadd.f32 %v535_v46, %v509_v14  ;;  %v538_v28 = vadd.f32 %v536_v47, %v510_v15  ;;  %v531_v30 = vadd.f32 %v529_v16, %v503_v19  ;;  %v532_v31 = vadd.f32 %v530_v18, %v504_v20 }
  0xe5   : > { %v543_v29 = vadd.f32 %v541_v53, %v515_v10  ;;  %v544_v13 = vadd.f32 %v542_v12, %v516_v17  ;;  %v681_v54 = vstv %s2709_s13  ;;  %v660_v59 = vstv %s2719_s15  ;;  %s2828_s13 = sld [smem:[#allocation9 + $0xc]] }
  0xe6   : > { %1278 = vrot.lane.b32.xlu1 %v2428_v9, %s3627_s18  ;;  %1276 = vrot.lane.b32.xlu0 %v2423_v7, %s3627_s18  ;;  %v547_v63 = vrot.slane %v537_v27, 1  ;;  %v548_v34 = vrot.slane %v538_v28, 1  ;;  %s2760_s18 = sld [smem:[#allocation7 + $0x2b]]  ;;  %v602_v60 = vmul.f32 %v600_v22, %v598_v55  ;;  %v607_v49 = vmul.f32 %v606_v23, %v594_v37 }
  0xe7   : > { %1303 = vrot.lane.b32.xlu2 %v2423_v7, %s3628_s1  ;;  %v555_v4 = vrot.slane %v543_v29, 2  ;;  %v556_v42 = vrot.slane %v544_v13, 2  ;;  %v601_v7 = vmul.f32 %v600_v22, %v594_v37  ;;  %v608_v11 = vmul.f32 %v606_v23, %v598_v55  ;;  %s2842_s15 = sld [smem:[#allocation9 + $0x18]] }
  0xe8   : > { %v620_v0 = vpop.permute.xlu1 %619  ;;  %v618_v26 = vpop.permute.xlu0 %617  ;;  %v551_v56 = vadd.f32 %v547_v63, %v531_v30  ;;  %v552_v50 = vadd.f32 %v548_v34, %v532_v31  ;;  %v613_v6 = vmul.f32 %v612_v3, %v594_v37  ;;  %v614_v24 = vmul.f32 %v612_v3, %v598_v55 }
  0xe9   : > { %v2744_v1 = vpop.permute.xlu2 %754  ;;  %v621_v8 = vsel %vm353_vm1, %v618_v26, %v620_v0  ;;  %v625_v40 = vsel %vm353_vm1, %v620_v0, %v618_v26  ;;  %v687_v2 = vstv %s2715_s21  ;;  %v693_v14 = vstv %s2723_s25  ;;  %s2830_s21 = sld [smem:[#allocation9 + $0x10]] }
  0xea   : > { %v559_v44 = vadd.f32 %v555_v4, %v551_v56  ;;  %v560_v61 = vadd.f32 %v556_v42, %v552_v50  ;;  %v666_v15 = vstv %s2733_s26  ;;  %v708_v10 = vstv %s2735_s28  ;;  %s2850_s25 = sld [smem:[#allocation9 + $0x1c]] }
  0xeb   : > { %v714_v17 = vstv %s2742_s29  ;;  %v603_v16 = vadd.f32 %v601_v7, %v2589_v36  ;;  %v604_v18 = vadd.f32 %v602_v60, %v2592_v25  ;;  %v628_v46 = vmul.f32 %v627_v35, %v621_v8  ;;  %s2856_s26 = sld [smem:[#allocation8 + $0x1]] }
  0xec   : > { %v563_v39 = vadd.f32 %v562_v32, %v559_v44  ;;  %v564_v41 = vadd.f32 %v562_v32, %v560_v61  ;;  %v629_v47 = vmul.f32 %v627_v35, %v625_v40  ;;  %v610_v53 = vadd.f32 %v608_v11, %v2607_v58  ;;  %s2858_s28 = sld [smem:[#allocation9 + $0x1]] }
  0xed   : > { %v615_v12 = vadd.f32 %v613_v6, %v2617_v62  ;;  %v720_v19 = vstv %s2753_s30  ;;  %v616_v25 = vadd.f32 %v614_v24, %v2728_v21  ;;  %v634_v20 = vmul.f32 %v633_v38, %v621_v8  ;;  %s2863_s29 = sld [smem:[#allocation9 + $0x5]] }
  0xee   : > { %1305 = vrot.lane.b32.xlu0 %v2428_v9, %s3628_s1  ;;  %565 = vst [vmem:[#allocation2 + $0x30] sm:$0x3f] %v563_v39  ;;  %v609_v9 = vadd.f32 %v607_v49, %v2596_v51  ;;  %v635_v58 = vmul.f32 %v633_v38, %v625_v40  ;;  %v640_v62 = vmul.f32 %v639_v48, %v621_v8  ;;  %v762_v28 = vstv %s2755_s17  ;;  %s2797_s1 = sld [smem:[#allocation7 + $0x2c]] }
  0xef   : > { %566 = vst [vmem:[#allocation2] sm:$0x3f] %v564_v41  ;;  %v641_v27 = vmul.f32 %v639_v48, %v625_v40  ;;  %v630_v29 = vadd.f32 %v628_v46, %v603_v16  ;;  %v631_v13 = vadd.f32 %v629_v47, %v604_v18  ;;  %v768_v0 = vstv %s2760_s18  ;;  %s2871_s30 = sld [smem:[#allocation9 + $0x9]] }
  0xf0   : > { %v672_v5 = vpop.permute.xlu1 %671  ;;  %v647_v52 = vpop.permute.xlu0 %646  ;;  %v774_v26 = vstv %s2762_s12  ;;  %v636_v37 = vadd.f32 %v634_v20, %v609_v9  ;;  %v637_v55 = vadd.f32 %v635_v58, %v610_v53  ;;  %v642_v35 = vadd.f32 %v640_v62, %v615_v12  ;;  %s2873_s18 = sld [smem:[#allocation9 + $0xd]] }
  0xf1   : > { %v2783_v36 = vpop.permute.xlu2 %852  ;;  %v648_v22 = vsel %vm381_vm0, %v2583_v33, %v647_v52  ;;  %v652_v51 = vsel %vm381_vm0, %v647_v52, %v2583_v33  ;;  %v675_v21 = vsel %vm409_vm3, %v672_v5, %v2640_v45  ;;  %v679_v33 = vsel %vm409_vm3, %v2640_v45, %v672_v5  ;;  %s2876_s12 = sld [smem:[#allocation9 + $0x11]] }
  0xf2   : > { %v655_v23 = vmul.f32 %v654_v57, %v648_v22  ;;  %v656_v3 = vmul.f32 %v654_v57, %v652_v51  ;;  %v661_v32 = vmul.f32 %v660_v59, %v648_v22  ;;  %v662_v30 = vmul.f32 %v660_v59, %v652_v51  ;;  %s2883_s17 = sld [smem:[#allocation9 + $0x15]] }
  0xf3   : > { %v667_v31 = vmul.f32 %v666_v15, %v648_v22  ;;  %v643_v38 = vadd.f32 %v641_v27, %v616_v25  ;;  %v668_v48 = vmul.f32 %v666_v15, %v652_v51  ;;  %v682_v56 = vmul.f32 %v681_v54, %v675_v21 }
  0xf4   : > { %v683_v50 = vmul.f32 %v681_v54, %v679_v33  ;;  %v688_v4 = vmul.f32 %v687_v2, %v675_v21  ;;  %v689_v45 = vmul.f32 %v687_v2, %v679_v33  ;;  %v694_v42 = vmul.f32 %v693_v14, %v675_v21 }
  0xf5   : > { %v657_v7 = vadd.f32 %v655_v23, %v630_v29  ;;  %v658_v57 = vadd.f32 %v656_v3, %v631_v13  ;;  %v663_v60 = vadd.f32 %v661_v32, %v636_v37  ;;  %v664_v49 = vadd.f32 %v662_v30, %v637_v55 }
  0xf6   : > { %v669_v44 = vadd.f32 %v667_v31, %v642_v35  ;;  %v695_v61 = vmul.f32 %v693_v14, %v679_v33  ;;  %v670_v11 = vadd.f32 %v668_v48, %v643_v38  ;;  %v735_v6 = vstv %s2775_s23  ;;  %s2889_s23 = sld [smem:[#allocation7 + $0x36]] }
  0xf7   : > { %v741_v8 = vstv %s2781_s11  ;;  %v747_v39 = vstv %s2790_s27  ;;  %v789_v41 = vstv %s2793_s9  ;;  %v795_v2 = vstv %s2797_s1  ;;  %s2891_s11 = sld [smem:[#allocation7 + $0x38]] }
  0xf8   : > { %v701_v63 = vpop.permute.xlu1 %700  ;;  %v699_v34 = vpop.permute.xlu0 %698  ;;  %v684_v5 = vadd.f32 %v682_v56, %v657_v7  ;;  %v685_v14 = vadd.f32 %v683_v50, %v658_v57  ;;  %v690_v18 = vadd.f32 %v688_v4, %v663_v60  ;;  %v691_v46 = vadd.f32 %v689_v45, %v664_v49  ;;  %s2893_s27 = sld [smem:[#allocation7 + $0x41]] }
  0xf9   : > { %v702_v59 = vsel %vm437_vm4, %v699_v34, %v701_v63  ;;  %v706_v54 = vsel %vm437_vm4, %v701_v63, %v699_v34  ;;  %v2815_v40 = vpop.permute.xlu2 %881  ;;  %v696_v47 = vadd.f32 %v694_v42, %v669_v44  ;;  %v697_v12 = vadd.f32 %v695_v61, %v670_v11  ;;  %s2895_s9 = sld [smem:[#allocation7 + $0x4a]] }
  0xfa   : > { %v715_v24 = vmul.f32 %v714_v17, %v702_v59  ;;  %v716_v52 = vmul.f32 %v714_v17, %v706_v54  ;;  %v721_v15 = vmul.f32 %v720_v19, %v702_v59  ;;  %v722_v16 = vmul.f32 %v720_v19, %v706_v54  ;;  %s2899_s1 = sld [smem:[#allocation7 + $0x3f]] }
  0xfb   : > { %v709_v25 = vmul.f32 %v708_v10, %v702_v59  ;;  %v710_v17 = vmul.f32 %v708_v10, %v706_v54  ;;  %v801_v38 = vstv %s2826_s0  ;;  %s2904_s0 = sld [smem:[#allocation7 + $0x48]] }
  0xfc   : > { %v717_v20 = vadd.f32 %v715_v24, %v690_v18  ;;  %v718_v22 = vadd.f32 %v716_v52, %v691_v46  ;;  %v723_v51 = vadd.f32 %v721_v15, %v696_v47  ;;  %v724_v62 = vadd.f32 %v722_v16, %v697_v12 }
  0xfd   : > { %v711_v30 = vadd.f32 %v709_v25, %v684_v5  ;;  %v712_v31 = vadd.f32 %v710_v17, %v685_v14 }
 0x100   : > { %v753_v9 = vpop.permute.xlu1 %752  ;;  %v728_v53 = vpop.permute.xlu0 %727 }
 0x101   : > { %v756_v19 = vsel %vm493_vm6, %v753_v9, %v2744_v1  ;;  %v760_v58 = vsel %vm493_vm6, %v2744_v1, %v753_v9  ;;  %v729_v10 = vsel %vm465_vm5, %v2703_v43, %v728_v53  ;;  %v733_v13 = vsel %vm465_vm5, %v728_v53, %v2703_v43 }
 0x102   : > { %v769_v27 = vmul.f32 %v768_v0, %v756_v19  ;;  %v775_v29 = vmul.f32 %v774_v26, %v756_v19  ;;  %v736_v21 = vmul.f32 %v735_v6, %v729_v10  ;;  %v742_v33 = vmul.f32 %v741_v8, %v729_v10 }
 0x103   : > { %v748_v1 = vmul.f32 %v747_v39, %v729_v10  ;;  %v770_v23 = vmul.f32 %v768_v0, %v760_v58  ;;  %v737_v3 = vmul.f32 %v735_v6, %v733_v13  ;;  %v743_v37 = vmul.f32 %v741_v8, %v733_v13  ;;  %v2865_v0 = vpop.permute.xlu2 %1114 }
 0x104   : > { %v749_v32 = vmul.f32 %v747_v39, %v733_v13  ;;  %v744_v63 = vadd.f32 %v742_v33, %v717_v20  ;;  %v776_v43 = vmul.f32 %v774_v26, %v760_v58  ;;  %v763_v48 = vmul.f32 %v762_v28, %v756_v19  ;;  %v1354_v33 = vld [vmem:[#allocation2] sm:$0x3f] }
 0x105   : > { %v750_v34 = vadd.f32 %v748_v1, %v723_v51  ;;  %v745_v55 = vadd.f32 %v743_v37, %v718_v22  ;;  %v764_v56 = vmul.f32 %v762_v28, %v760_v58  ;;  %v738_v50 = vadd.f32 %v736_v21, %v711_v30  ;;  %v1353_v51 = vld [vmem:[#allocation2 + $0x30] sm:$0x3f]  ;;  %v1390_v1 = vld [vmem:[#allocation2] sm:$0x3f] }
 0x106   : > { %v751_v35 = vadd.f32 %v749_v32, %v724_v62  ;;  %v739_v4 = vadd.f32 %v737_v3, %v712_v31  ;;  %v771_v42 = vadd.f32 %v769_v27, %v744_v63  ;;  %v823_v53 = vstv %s2856_s26  ;;  %s2912_s26 = sld [smem:[#allocation7 + $0x49]]  ;;  %v1389_v58 = vld [vmem:[#allocation2 + $0x30] sm:$0x3f]  ;;  %v1427_v30 = vld [vmem:[#allocation2] sm:$0x3f] }
 0x107   : > { %v772_v7 = vadd.f32 %v770_v23, %v745_v55  ;;  %v777_v57 = vadd.f32 %v775_v29, %v750_v34  ;;  %v765_v8 = vadd.f32 %v763_v48, %v738_v50  ;;  %v1426_v62 = vld [vmem:[#allocation2 + $0x30] sm:$0x3f]  ;;  %v1356_v29 = vstv %s2808_s10  ;;  %v1464_v63 = vld [vmem:[#allocation2] sm:$0x3f]  ;;  %s2952_s10 = sld [smem:[#allocation7 + $0x39]] }
 0x108   : > { %v782_v45 = vpop.permute.xlu1 %781  ;;  %v780_v26 = vpop.permute.xlu0 %779  ;;  %v778_v54 = vadd.f32 %v776_v43, %v751_v35  ;;  %v766_v5 = vadd.f32 %v764_v56, %v739_v4  ;;  %v1392_v10 = vstv %s2811_s8  ;;  %v1429_v13 = vstv %s2817_s7  ;;  %v1463_v31 = vld [vmem:[#allocation2 + $0x30] sm:$0x3f]  ;;  %v1501_v43 = vld [vmem:[#allocation2] sm:$0x3f]  ;;  %s2965_s8 = sld [smem:[#allocation7 + $0x42]] }
 0x109   : > { %v783_v59 = vsel %vm521_vm7, %v780_v26, %v782_v45  ;;  %v787_v60 = vsel %vm521_vm7, %v782_v45, %v780_v26  ;;  %v1466_v21 = vstv %s2828_s13  ;;  %v1503_v23 = vstv %s2830_s21  ;;  %v1500_v34 = vld [vmem:[#allocation2 + $0x30] sm:$0x3f]  ;;  %s2977_s7 = sld [smem:[#allocation9 + $0x19]] }
 0x10a   : > { %v790_v28 = vmul.f32 %v789_v41, %v783_v59  ;;  %v796_v49 = vmul.f32 %v795_v2, %v783_v59  ;;  %v802_v44 = vmul.f32 %v801_v38, %v783_v59  ;;  %v791_v61 = vmul.f32 %v789_v41, %v787_v60  ;;  %v1537_v26 = vld [vmem:[#allocation2 + $0x30] sm:$0x3f]  ;;  %s2999_s13 = sld [smem:[#allocation7 + $0x53]] }
 0x10b   : > { %v797_v11 = vmul.f32 %v795_v2, %v787_v60  ;;  %v803_v6 = vmul.f32 %v801_v38, %v787_v60  ;;  %v2906_v17 = vpop.permute.xlu2 %1143  ;;  %v1540_v3 = vstv %s2838_s14  ;;  %v1577_v37 = vstv %s2842_s15  ;;  %s3006_s21 = sld [smem:[#allocation7 + $0x5c]] }
 0x10c   : > { %v798_v24 = vadd.f32 %v796_v49, %v771_v42  ;;  %v804_v39 = vadd.f32 %v802_v44, %v777_v57  ;;  %v792_v16 = vadd.f32 %v790_v28, %v765_v8  ;;  %v793_v18 = vadd.f32 %v791_v61, %v766_v5  ;;  %v1538_v42 = vld [vmem:[#allocation2] sm:$0x3f]  ;;  %s3013_s14 = sld [smem:[#allocation7 + $0x51]] }
 0x10d   : > { %v799_v52 = vadd.f32 %v797_v11, %v772_v7  ;;  %v805_v15 = vadd.f32 %v803_v6, %v778_v54  ;;  %v1614_v32 = vstv %s2850_s25  ;;  %v1362_v55 = vstv %s2858_s28  ;;  %v1574_v7 = vld [vmem:[#allocation2 + $0x30] sm:$0x3f]  ;;  %s3038_s15 = sld [smem:[#allocation7 + $0x63]] }
 0x10e   : > { %v808_v14 = vrot.slane %v798_v24, 1  ;;  %v816_v46 = vrot.slane %v804_v39, 2  ;;  %v1398_v35 = vstv %s2863_s29  ;;  %v1435_v38 = vstv %s2871_s30  ;;  %s3050_s25 = sld [smem:[#allocation7 + $0x52]] }
 0x10f   : > { %v809_v41 = vrot.slane %v799_v52, 1  ;;  %v817_v25 = vrot.slane %v805_v15, 2  ;;  %v1472_v48 = vstv %s2873_s18  ;;  %v2930_v4 = vmul.f32 %v1356_v29, %v1353_v51  ;;  %s3068_s28 = sld [smem:[#allocation7 + $0x5b]] }
 0x110   : > { %v812_v2 = vadd.f32 %v808_v14, %v792_v16  ;;  %v2897_v47 = vpop.permute.xlu1 %879  ;;  %v2901_v9 = vpop.permute.xlu0 %854  ;;  %v2932_v45 = vmul.f32 %v1392_v10, %v1389_v58  ;;  %v1509_v57 = vstv %s2876_s12  ;;  %v1546_v59 = vstv %s2883_s17  ;;  %s3089_s29 = sld [smem:[#allocation7 + $0x3a]] }
 0x111   : > { %v813_v12 = vadd.f32 %v809_v41, %v793_v18  ;;  %v2936_v60 = vmul.f32 %v1356_v29, %v1354_v33  ;;  %v2938_v28 = vmul.f32 %v1392_v10, %v1390_v1  ;;  %v2940_v49 = vmul.f32 %v1429_v13, %v1426_v62  ;;  %s3106_s30 = sld [smem:[#allocation7 + $0x43]] }
 0x112   : > { %v820_v19 = vadd.f32 %v816_v46, %v812_v2  ;;  %v2942_v44 = vmul.f32 %v1429_v13, %v1427_v30  ;;  %v2944_v54 = vmul.f32 %v1466_v21, %v1463_v31  ;;  %v2946_v61 = vmul.f32 %v1466_v21, %v1464_v63  ;;  %s3120_s18 = sld [smem:[#allocation7 + $0x4c]] }
 0x113   : > { %v821_v20 = vadd.f32 %v817_v25, %v813_v12  ;;  %v2948_v11 = vmul.f32 %v1503_v23, %v1500_v34  ;;  %v2950_v6 = vmul.f32 %v1503_v23, %v1501_v43  ;;  %v2954_v8 = vpop.permute.xlu2 %1168  ;;  %v2956_v24 = vmul.f32 %v1540_v3, %v1537_v26  ;;  %v2038_v12 = vld [vmem:[%s2310_s6 + $0x20] sm:$0xff]  ;;  %v1611_v43 = vld [vmem:[#allocation2 + $0x30] sm:$0x3f]  ;;  %s3136_s12 = sld [smem:[#allocation7 + $0x3b]] }
 0x114   : > { %v824_v22 = vadd.f32 %v823_v53, %v820_v19  ;;  %v2958_v39 = vmul.f32 %v1540_v3, %v1538_v42  ;;  %v2962_v5 = vmul.f32 %v1577_v37, %v1574_v7  ;;  %v833_v52 = vstv %s2889_s23  ;;  %v2039_v19 = vld [vmem:[%s2310_s6 + $0x28] sm:$0xff]  ;;  %v1575_v34 = vld [vmem:[#allocation2] sm:$0x3f]  ;;  %s3023_s23 = sld [smem:[#allocation7 + $0x65]] }
 0x115   : > { %v825_v27 = vadd.f32 %v823_v53, %v821_v20  ;;  %v889_v15 = vstv %s2891_s11  ;;  %v895_v16 = vstv %s2893_s27  ;;  %v901_v14 = vstv %s2895_s9  ;;  %s3031_s11 = sld [smem:[#allocation7 + $0x5a]] }
 0x116   : > { %827 = vst [vmem:[#allocation2 + $0x18] sm:$0x3f] %v824_v22  ;;  %v839_v18 = vstv %s2899_s1  ;;  %v845_v41 = vstv %s2904_s0  ;;  %v862_v2 = vstv %s2908_s2  ;;  %v868_v46 = vstv %s2910_s3  ;;  %s2991_s2 = sld [smem:[#allocation7 + $0x4b]] }
 0x117   : > { %828 = vst [vmem:[#allocation2 + $0x10] sm:$0x3f] %v825_v27  ;;  %v856_v53 = vsel %vm325_vm2, %v2783_v36, %v2901_v9  ;;  %v834_v25 = vmul.f32 %v2038_v12, %v833_v52  ;;  %v835_v20 = vmul.f32 %v2039_v19, %v833_v52  ;;  %v874_v22 = vstv %s2912_s26  ;;  %s2997_s3 = sld [smem:[#allocation9 + $0x1d]] }
 0x118   : > { %v2926_v56 = vpop.permute.xlu1 %908  ;;  %v2928_v50 = vpop.permute.xlu0 %906  ;;  %v860_v51 = vsel %vm325_vm2, %v2901_v9, %v2783_v36  ;;  %v883_v58 = vsel %vm353_vm1, %v2897_v47, %v2815_v40  ;;  %v887_v62 = vsel %vm353_vm1, %v2815_v40, %v2897_v47  ;;  %v840_v27 = vmul.f32 %v2038_v12, %v839_v18  ;;  %s3076_s27 = sld [smem:[#allocation7 + $0x64]] }
 0x119   : > { %v841_v29 = vmul.f32 %v2039_v19, %v839_v18  ;;  %v846_v21 = vmul.f32 %v2038_v12, %v845_v41  ;;  %v847_v36 = vmul.f32 %v2039_v19, %v845_v41  ;;  %v863_v9 = vmul.f32 %v862_v2, %v856_v53  ;;  %v1612_v18 = vld [vmem:[#allocation2] sm:$0x3f]  ;;  %s3151_s17 = sld [smem:[#allocation7 + $0x44]] }
 0x11a   : > { %v869_v33 = vmul.f32 %v868_v46, %v856_v53  ;;  %v864_v1 = vmul.f32 %v862_v2, %v860_v51  ;;  %v870_v23 = vmul.f32 %v868_v46, %v860_v51  ;;  %v875_v3 = vmul.f32 %v874_v22, %v856_v53  ;;  %s3161_s9 = sld [smem:[#allocation7 + $0x4d]] }
 0x11b   : > { %v876_v40 = vmul.f32 %v874_v22, %v860_v51  ;;  %v890_v47 = vmul.f32 %v889_v15, %v883_v58  ;;  %v891_v30 = vmul.f32 %v889_v15, %v887_v62  ;;  %v896_v31 = vmul.f32 %v895_v16, %v883_v58  ;;  %v3011_v46 = vpop.permute.xlu2 %962  ;;  %s3206_s1 = sld [smem:[#allocation7 + $0x3c]] }
 0x11c   : > { %v897_v63 = vmul.f32 %v895_v16, %v887_v62  ;;  %v902_v26 = vmul.f32 %v901_v14, %v883_v58  ;;  %v916_v42 = vstv %s2952_s10  ;;  %v922_v7 = vstv %s2965_s8  ;;  %s3211_s0 = sld [smem:[#allocation7 + $0x45]] }
 0x11d   : > { %v910_v52 = vsel %vm381_vm0, %v2928_v50, %v2926_v56  ;;  %v903_v15 = vmul.f32 %v901_v14, %v887_v62  ;;  %v865_v16 = vadd.f32 %v863_v9, %v834_v25  ;;  %v871_v41 = vadd.f32 %v869_v33, %v840_v27  ;;  %s3213_s26 = sld [smem:[#allocation7 + $0x4e]] }
 0x11e   : > { %v914_v2 = vsel %vm381_vm0, %v2926_v56, %v2928_v50  ;;  %v866_v53 = vadd.f32 %v864_v1, %v835_v20  ;;  %v872_v12 = vadd.f32 %v870_v23, %v841_v29  ;;  %v877_v19 = vadd.f32 %v875_v3, %v846_v21  ;;  %v1359_v21 = vld [vmem:[#allocation2 + $0x18] sm:$0x3f]  ;;  %v1396_v23 = vld [vmem:[#allocation2 + $0x10] sm:$0x3f]  ;;  %s3215_s10 = sld [smem:[#allocation7 + $0x5d]] }
 0x11f   : > { %v878_v22 = vadd.f32 %v876_v40, %v847_v36  ;;  %v3017_v51 = vmul.f32 %v1577_v37, %v1575_v34  ;;  %v3021_v14 = vmul.f32 %v1614_v32, %v1611_v43  ;;  %v917_v25 = vmul.f32 %v916_v42, %v910_v52  ;;  %v1395_v36 = vld [vmem:[#allocation2 + $0x18] sm:$0x3f]  ;;  %s3222_s8 = sld [smem:[#allocation7 + $0x46]] }
 0x120   : > { %v2993_v10 = vpop.permute.xlu1 %1141  ;;  %v2995_v13 = vpop.permute.xlu0 %1116  ;;  %v923_v58 = vmul.f32 %v922_v7, %v910_v52  ;;  %v3027_v56 = vmul.f32 %v1614_v32, %v1612_v18  ;;  %v1583_v50 = vstv %s2977_s7  ;;  %v928_v20 = vstv %s2991_s2  ;;  %v1360_v32 = vld [vmem:[#allocation2 + $0x10] sm:$0x3f]  ;;  %v1432_v3 = vld [vmem:[#allocation2 + $0x18] sm:$0x3f]  ;;  %s3227_s7 = sld [smem:[#allocation7 + $0x66]] }
 0x121   : > { %v918_v62 = vmul.f32 %v916_v42, %v914_v2  ;;  %v892_v9 = vadd.f32 %v890_v47, %v865_v16  ;;  %v898_v33 = vadd.f32 %v896_v31, %v871_v41  ;;  %v924_v1 = vmul.f32 %v922_v7, %v914_v2  ;;  %v1433_v18 = vld [vmem:[#allocation2 + $0x10] sm:$0x3f]  ;;  %v1469_v37 = vld [vmem:[#allocation2 + $0x18] sm:$0x3f]  ;;  %s3234_s2 = sld [smem:[#allocation7 + $0x4f]] }
 0x122   : > { %v893_v40 = vadd.f32 %v891_v30, %v866_v53  ;;  %v899_v34 = vadd.f32 %v897_v63, %v872_v12  ;;  %v904_v43 = vadd.f32 %v902_v26, %v877_v19  ;;  %v905_v42 = vadd.f32 %v903_v15, %v878_v22  ;;  %v1470_v47 = vld [vmem:[#allocation2 + $0x10] sm:$0x3f] }
 0x123   : > { %v3040_v31 = vadd.f32 %v917_v25, %v892_v9  ;;  %v3042_v7 = vadd.f32 %v923_v58, %v898_v33  ;;  %v929_v16 = vmul.f32 %v928_v20, %v910_v52  ;;  %v930_v41 = vmul.f32 %v928_v20, %v914_v2  ;;  %v1506_v52 = vld [vmem:[#allocation2 + $0x18] sm:$0x3f]  ;;  %v1507_v22 = vld [vmem:[#allocation2 + $0x10] sm:$0x3f] }
 0x124   : > { %v1363_v30 = vmul.f32 %v1362_v55, %v1359_v21  ;;  %v3046_v63 = vadd.f32 %v918_v62, %v893_v40  ;;  %v1151_v26 = vstv %s2999_s13  ;;  %v1157_v53 = vstv %s3006_s21  ;;  %v1543_v2 = vld [vmem:[#allocation2 + $0x18] sm:$0x3f]  ;;  %v1544_v21 = vld [vmem:[#allocation2 + $0x10] sm:$0x3f]  ;;  %s3239_s13 = sld [smem:[#allocation7 + $0x3d]] }
 0x125   : > { %v1364_v15 = vmul.f32 %v1362_v55, %v1360_v32  ;;  %v1399_v12 = vmul.f32 %v1398_v35, %v1395_v36  ;;  %v1436_v19 = vmul.f32 %v1435_v38, %v1432_v3  ;;  %v3058_v25 = vadd.f32 %v924_v1, %v899_v34  ;;  %v3078_v32 = vpop.permute.xlu2 %987  ;;  %v1581_v3 = vld [vmem:[#allocation2 + $0x10] sm:$0x3f]  ;;  %s3247_s21 = sld [smem:[#allocation7 + $0x3e]] }
 0x126   : > { %v1400_v58 = vmul.f32 %v1398_v35, %v1396_v23  ;;  %v1437_v20 = vmul.f32 %v1435_v38, %v1433_v18  ;;  %v1473_v62 = vmul.f32 %v1472_v48, %v1469_v37  ;;  %v1474_v55 = vmul.f32 %v1472_v48, %v1470_v47  ;;  %v1580_v23 = vld [vmem:[#allocation2 + $0x18] sm:$0x3f] }
 0x127   : > { %v3070_v36 = vadd.f32 %v929_v16, %v904_v43  ;;  %v3072_v9 = vadd.f32 %v930_v41, %v905_v42  ;;  %v1163_v33 = vstv %s3023_s23  ;;  %v1095_v1 = vstv %s3013_s14  ;;  %v1617_v18 = vld [vmem:[#allocation2 + $0x18] sm:$0x3f]  ;;  %s3259_s14 = sld [smem:[#allocation7 + $0x47]] }
 0x128   : > { %v3033_v27 = vpop.permute.xlu1 %935  ;;  %v3035_v29 = vpop.permute.xlu0 %933  ;;  %v3081_v35 = vadd.f32 %v1363_v30, %v2930_v4  ;;  %v1510_v38 = vmul.f32 %v1509_v57, %v1506_v52  ;;  %v1511_v48 = vmul.f32 %v1509_v57, %v1507_v22  ;;  %v1547_v37 = vmul.f32 %v1546_v59, %v1543_v2  ;;  %s3273_s23 = sld [smem:[#allocation7 + $0x50]] }
 0x129   : > { %v3096_v43 = vadd.f32 %v1364_v15, %v2936_v60  ;;  %v3099_v4 = vadd.f32 %v1399_v12, %v2932_v45  ;;  %v3102_v57 = vadd.f32 %v1436_v19, %v2940_v49  ;;  %v1548_v42 = vmul.f32 %v1546_v59, %v1544_v21 }
 0x12a   : > { %v3109_v47 = vadd.f32 %v1400_v58, %v2938_v28  ;;  %v3112_v16 = vadd.f32 %v1437_v20, %v2942_v44  ;;  %v3115_v60 = vadd.f32 %v1473_v62, %v2944_v54  ;;  %v3118_v45 = vadd.f32 %v1474_v55, %v2946_v61 }
 0x12b   : > { %3629 = vst [vmem:[#allocation16_spill] sm:$0xff] %v3096_v43  ;;  %v3124_v59 = vmul.f32 %v1583_v50, %v1580_v23  ;;  %v3128_v49 = vmul.f32 %v1583_v50, %v1581_v3  ;;  %v1145_v28 = vsel %vm353_vm1, %v2993_v10, %v2906_v17  ;;  %v1149_v44 = vsel %vm353_vm1, %v2906_v17, %v2993_v10  ;;  %v2040_v10 = vld [vmem:[%s2310_s6 + $0x30] sm:$0xff] }
 0x12c   : > { %3630 = vst [vmem:[#allocation17_spill] sm:$0xff] %v3099_v4  ;;  %v3139_v54 = vadd.f32 %v1510_v38, %v2948_v11  ;;  %v3142_v61 = vadd.f32 %v1511_v48, %v2950_v6  ;;  %v3145_v50 = vadd.f32 %v1547_v37, %v2956_v24  ;;  %v3639_v41 = vstv %s2997_s3 }
 0x12d   : > { %3631 = vst [vmem:[#allocation18_spill] sm:$0xff] %v3102_v57  ;;  %v3149_v30 = vmul.f32 %v3639_v41, %v1617_v18  ;;  %v3154_v17 = vadd.f32 %v1548_v42, %v2958_v39  ;;  %v1096_v15 = vmul.f32 %v2040_v10, %v1095_v1  ;;  %v1124_v11 = vstv %s3050_s25  ;;  %v3188_v18 = vpop.permute.xlu2 %1224  ;;  %s3300_s25 = sld [smem:[#allocation7 + $0x67]] }
 0x12e   : > { %3632 = vst [vmem:[#allocation19_spill] sm:$0xff] %v3109_v47  ;;  %v1118_v6 = vsel %vm325_vm2, %v2865_v0, %v2995_v13  ;;  %v3163_v24 = vmul.f32 %v1151_v26, %v1145_v28  ;;  %v3165_v12 = vmul.f32 %v1151_v26, %v1149_v44  ;;  %v1101_v19 = vstv %s3031_s11  ;;  %v2041_v26 = vld [vmem:[%s2310_s6 + $0x38] sm:$0xff]  ;;  %s3198_s6 = sld [smem:[#allocation7 + $0x54]] }
 0x12f   : > { %3633 = vst [vmem:[#allocation20_spill] sm:$0xff] %v3112_v16  ;;  %v1107_v52 = vstv %s3038_s15  ;;  %v3169_v22 = vmul.f32 %v1157_v53, %v1145_v28  ;;  %v3171_v39 = vmul.f32 %v1157_v53, %v1149_v44  ;;  %v1130_v2 = vstv %s3068_s28  ;;  %s3294_s11 = sld [smem:[#allocation7 + $0x55]] }
 0x130   : > { %v3091_v40 = vpop.permute.xlu1 %960  ;;  %v3093_v34 = vpop.permute.xlu0 %1170  ;;  %3634 = vst [vmem:[#allocation21_spill] sm:$0xff] %v3115_v60  ;;  %v1122_v58 = vsel %vm325_vm2, %v2995_v13, %v2865_v0  ;;  %v3177_v20 = vmul.f32 %v1163_v33, %v1145_v28  ;;  %v3179_v62 = vmul.f32 %v1163_v33, %v1149_v44  ;;  %v1097_v55 = vmul.f32 %v2041_v26, %v1095_v1  ;;  %s3296_s15 = sld [smem:[#allocation7 + $0x5e]] }
 0x131   : > { %3635 = vst [vmem:[#allocation22_spill] sm:$0xff] %v3118_v45  ;;  %v1125_v21 = vmul.f32 %v1124_v11, %v1118_v6  ;;  %v1102_v48 = vmul.f32 %v2040_v10, %v1101_v19  ;;  %v1103_v53 = vmul.f32 %v2041_v26, %v1101_v19  ;;  %v1108_v37 = vmul.f32 %v2040_v10, %v1107_v52  ;;  %s3303_s28 = sld [smem:[#allocation8 + $0x2]] }
 0x132   : > { %3636 = vst [vmem:[#allocation23_spill] sm:$0xff] %v3139_v54  ;;  %v1136_v23 = vstv %s3076_s27  ;;  %v1109_v0 = vmul.f32 %v2041_v26, %v1107_v52  ;;  %v1126_v13 = vmul.f32 %v1124_v11, %v1122_v58  ;;  %v1131_v33 = vmul.f32 %v1130_v2, %v1118_v6  ;;  %s3309_s27 = sld [smem:[#allocation7 + $0x56]] }
 0x133   : > { %3637 = vst [vmem:[#allocation24_spill] sm:$0xff] %v3142_v61  ;;  %v943_v42 = vstv %s3089_s29  ;;  %v1132_v28 = vmul.f32 %v1130_v2, %v1122_v58  ;;  %v949_v1 = vstv %s3106_s30  ;;  %v955_v44 = vstv %s3120_s18  ;;  %s3311_s29 = sld [smem:[#allocation7 + $0x5f]] }
 0x134   : > { %3638 = vst [vmem:[#allocation25_spill] sm:$0xff] %v3145_v50  ;;  %v937_v41 = vsel %vm409_vm3, %v3035_v29, %v3033_v27  ;;  %v1127_v10 = vadd.f32 %v1125_v21, %v1096_v15  ;;  %v1137_v19 = vmul.f32 %v1136_v23, %v1118_v6  ;;  %v941_v52 = vsel %vm409_vm3, %v3033_v27, %v3035_v29  ;;  %s3313_s30 = sld [smem:[#allocation7 + $0x68]] }
 0x135   : > { %3640 = vst [vmem:[#allocation26_spill] sm:$0xff] %v3154_v17  ;;  %v1138_v17 = vmul.f32 %v1136_v23, %v1122_v58  ;;  %v970_v11 = vstv %s3136_s12  ;;  %v976_v26 = vstv %s3151_s17  ;;  %v982_v50 = vstv %s3161_s9  ;;  %s3317_s18 = sld [smem:[#allocation9 + $0x2]] }
 0x136   : > { %v964_v2 = vsel %vm437_vm4, %v3091_v40, %v3011_v46  ;;  %v944_v61 = vmul.f32 %v943_v42, %v937_v41  ;;  %v950_v54 = vmul.f32 %v949_v1, %v937_v41  ;;  %v956_v15 = vmul.f32 %v955_v44, %v937_v41  ;;  %s3319_s12 = sld [smem:[#allocation9 + $0x6]] }
 0x137   : > { %v968_v6 = vsel %vm437_vm4, %v3011_v46, %v3091_v40  ;;  %v1128_v27 = vadd.f32 %v1126_v13, %v1097_v55  ;;  %v945_v29 = vmul.f32 %v943_v42, %v941_v52  ;;  %v951_v58 = vmul.f32 %v949_v1, %v941_v52  ;;  %s3327_s17 = sld [smem:[#allocation7 + $0x57]] }
 0x138   : > { %v3182_v38 = vpop.permute.xlu1 %1197  ;;  %v3185_v3 = vpop.permute.xlu0 %1195  ;;  %v957_v21 = vmul.f32 %v955_v44, %v941_v52  ;;  %v1133_v23 = vadd.f32 %v1131_v33, %v1102_v48  ;;  %v971_v45 = vmul.f32 %v970_v11, %v964_v2  ;;  %v977_v60 = vmul.f32 %v976_v26, %v964_v2  ;;  %s3329_s9 = sld [smem:[#allocation9 + $0xa]] }
 0x139   : > { %v983_v16 = vmul.f32 %v982_v50, %v964_v2  ;;  %v1134_v41 = vadd.f32 %v1132_v28, %v1103_v53  ;;  %v972_v47 = vmul.f32 %v970_v11, %v968_v6  ;;  %v978_v43 = vmul.f32 %v976_v26, %v968_v6 }
 0x13a   : > { %v984_v46 = vmul.f32 %v982_v50, %v968_v6  ;;  %v1139_v4 = vadd.f32 %v1137_v19, %v1108_v37  ;;  %v946_v55 = vadd.f32 %v944_v61, %v3040_v31  ;;  %v952_v13 = vadd.f32 %v950_v54, %v3042_v7 }
 0x13b   : > { %v958_v42 = vadd.f32 %v956_v15, %v3070_v36  ;;  %v1140_v48 = vadd.f32 %v1138_v17, %v1109_v0  ;;  %v947_v33 = vadd.f32 %v945_v29, %v3046_v63  ;;  %v953_v53 = vadd.f32 %v951_v58, %v3058_v25  ;;  %v3232_v36 = vpop.permute.xlu2 %1249 }
 0x13c   : > { %v959_v28 = vadd.f32 %v957_v21, %v3072_v9  ;;  %v973_v50 = vadd.f32 %v971_v45, %v946_v55  ;;  %v979_v37 = vadd.f32 %v977_v60, %v952_v13  ;;  %v3230_v7 = vadd.f32 %v3163_v24, %v1127_v10 }
 0x13d   : > { %v985_v31 = vadd.f32 %v983_v16, %v958_v42  ;;  %v974_v63 = vadd.f32 %v972_v47, %v947_v33  ;;  %v980_v54 = vadd.f32 %v978_v43, %v953_v53  ;;  %v3237_v9 = vadd.f32 %v3165_v12, %v1128_v27 }
 0x13e   : > { %v986_v25 = vadd.f32 %v984_v46, %v959_v28  ;;  %v997_v60 = vstv %s3206_s1  ;;  %v1003_v16 = vstv %s3211_s0  ;;  %v3250_v47 = vadd.f32 %v3169_v22, %v1133_v23  ;;  %s3344_s1 = sld [smem:[#allocation9 + $0xe]] }
 0x13f   : > { %v3253_v43 = vadd.f32 %v3171_v39, %v1134_v41  ;;  %v3256_v17 = vadd.f32 %v3177_v20, %v1139_v4  ;;  %v1009_v24 = vstv %s3213_s26  ;;  %v1178_v12 = vstv %s3198_s6  ;;  %s3338_s6 = sld [smem:[#allocation7 + $0x60]] }
 0x140   : > { %v3217_v57 = vpop.permute.xlu1 %1222  ;;  %v990_v40 = vpop.permute.xlu0 %989  ;;  %v1184_v0 = vstv %s3215_s10  ;;  %v3271_v22 = vsel %vm381_vm0, %v3093_v34, %v2954_v8  ;;  %v1030_v52 = vstv %s3222_s8  ;;  %v3279_v2 = vadd.f32 %v3179_v62, %v1140_v48  ;;  %s3351_s0 = sld [smem:[#allocation7 + $0x69]] }
 0x141   : > { %v991_v45 = vsel %vm465_vm5, %v3078_v32, %v990_v40  ;;  %v995_v61 = vsel %vm465_vm5, %v990_v40, %v3078_v32  ;;  %v3266_v32 = vsel %vm381_vm0, %v2954_v8, %v3093_v34  ;;  %v1190_v8 = vstv %s3227_s7  ;;  %s3357_s26 = sld [smem:[#allocation7 + $0x58]] }
 0x142   : > { %v998_v4 = vmul.f32 %v997_v60, %v991_v45  ;;  %v999_v20 = vmul.f32 %v997_v60, %v995_v61  ;;  %v1004_v1 = vmul.f32 %v1003_v16, %v991_v45  ;;  %v1005_v44 = vmul.f32 %v1003_v16, %v995_v61  ;;  %s3360_s10 = sld [smem:[#allocation7 + $0x61]] }
 0x143   : > { %v1010_v19 = vmul.f32 %v1009_v24, %v991_v45  ;;  %v1179_v34 = vmul.f32 %v1178_v12, %v3266_v32  ;;  %v3284_v15 = vmul.f32 %v1178_v12, %v3271_v22  ;;  %v3287_v6 = vmul.f32 %v1184_v0, %v3266_v32  ;;  %v1044_v42 = vpop.permute.xlu2 %1043  ;;  %s3363_s8 = sld [smem:[#allocation7 + $0x6a]] }
 0x144   : > { %v3290_v27 = vmul.f32 %v1184_v0, %v3271_v22  ;;  %v1011_v29 = vmul.f32 %v1009_v24, %v995_v61  ;;  %v1036_v58 = vstv %s3234_s2  ;;  %v1000_v21 = vadd.f32 %v998_v4, %v973_v50  ;;  %s3369_s7 = sld [smem:[#allocation7 + $0x62]] }
 0x145   : > { %v1024_v23 = vstv %s3239_s13  ;;  %v1001_v46 = vadd.f32 %v999_v20, %v974_v63  ;;  %v1006_v40 = vadd.f32 %v1004_v1, %v979_v37  ;;  %v1007_v55 = vadd.f32 %v1005_v44, %v980_v54  ;;  %s3371_s2 = sld [smem:[#allocation7 + $0x6b]] }
 0x146   : > { %v1012_v13 = vadd.f32 %v1010_v19, %v985_v31  ;;  %v1051_v53 = vstv %s3247_s21  ;;  %v1057_v28 = vstv %s3259_s14  ;;  %v1013_v50 = vadd.f32 %v1011_v29, %v986_v25  ;;  %s3374_s13 = sld [smem:[#allocation7 + $0x59]] }
 0x147   : > { %v1063_v45 = vstv %s3273_s23  ;;  %v1192_v29 = vmul.f32 %v1190_v8, %v3271_v22  ;;  %s3376_s21 = sld [smem:[#allocation9 + $0x12]] }
 0x148   : > { %v1017_v39 = vpop.permute.xlu1 %1016  ;;  %v1015_v10 = vpop.permute.xlu0 %1014  ;;  %s3381_s14 = sld [smem:[#allocation9 + $0x16]] }
 0x149   : > { %v1018_v11 = vsel %vm493_vm6, %v1015_v10, %v1017_v39  ;;  %v1022_v26 = vsel %vm493_vm6, %v1017_v39, %v1015_v10  ;;  %s3384_s23 = sld [smem:[#allocation9 + $0x1a]] }
 0x14a   : > { %v1031_v62 = vmul.f32 %v1030_v52, %v1018_v11  ;;  %v1032_v41 = vmul.f32 %v1030_v52, %v1022_v26  ;;  %v1037_v48 = vmul.f32 %v1036_v58, %v1018_v11  ;;  %v1038_v33 = vmul.f32 %v1036_v58, %v1022_v26 }
 0x14b   : > { %v1025_v60 = vmul.f32 %v1024_v23, %v1018_v11  ;;  %v1026_v16 = vmul.f32 %v1024_v23, %v1022_v26  ;;  %v1191_v26 = vmul.f32 %v1190_v8, %v3266_v32  ;;  %v1199_v32 = vsel %vm409_vm3, %v3185_v3, %v3182_v38 }
 0x14c   : > { %v1033_v24 = vadd.f32 %v1031_v62, %v1006_v40  ;;  %v1034_v12 = vadd.f32 %v1032_v41, %v1007_v55  ;;  %v1039_v4 = vadd.f32 %v1037_v48, %v1012_v13  ;;  %v1040_v20 = vadd.f32 %v1038_v33, %v1013_v50 }
 0x14d   : > { %v1027_v10 = vadd.f32 %v1025_v60, %v1000_v21  ;;  %v1028_v19 = vadd.f32 %v1026_v16, %v1001_v46  ;;  %v1181_v21 = vadd.f32 %v1179_v34, %v3230_v7  ;;  %v1205_v46 = vstv %s3294_s11  ;;  %s3386_s11 = sld [smem:[#allocation9 + $0x1e]] }
 0x14e   : > { %v1211_v13 = vstv %s3296_s15  ;;  %v1182_v33 = vadd.f32 %v3284_v15, %v3237_v9  ;;  %v1187_v7 = vadd.f32 %v3287_v6, %v3250_v47  ;;  %v1188_v34 = vadd.f32 %v3290_v27, %v3253_v43  ;;  %s3392_s15 = sld [smem:[#allocation8 + $0x3]] }
 0x14f   : > { %v1203_v50 = vsel %vm409_vm3, %v3182_v38, %v3185_v3  ;;  %v1193_v16 = vadd.f32 %v1191_v26, %v3256_v17  ;;  %v1206_v47 = vmul.f32 %v1205_v46, %v1199_v32  ;;  %v1232_v6 = vstv %s3309_s27  ;;  %s3404_s27 = sld [smem:[#allocation9 + $0x7]] }
 0x150   : > { %v1042_v61 = vpop.permute.xlu1 %1041  ;;  %v3307_v63 = vpop.permute.xlu0 %1251  ;;  %v1226_v43 = vsel %vm437_vm4, %v3217_v57, %v3188_v18  ;;  %v1238_v27 = vstv %s3311_s29  ;;  %v1230_v38 = vsel %vm437_vm4, %v3188_v18, %v3217_v57  ;;  %v1212_v17 = vmul.f32 %v1211_v13, %v1199_v32  ;;  %s3406_s29 = sld [smem:[#allocation11 + $0x1]] }
 0x151   : > { %v1045_v37 = vsel %vm521_vm7, %v1042_v61, %v1044_v42  ;;  %v1049_v31 = vsel %vm521_vm7, %v1044_v42, %v1042_v61  ;;  %v1207_v61 = vmul.f32 %v1205_v46, %v1203_v50  ;;  %v1234_v57 = vmul.f32 %v1232_v6, %v1230_v38 }
 0x152   : > { %v1052_v54 = vmul.f32 %v1051_v53, %v1045_v37  ;;  %v1053_v0 = vmul.f32 %v1051_v53, %v1049_v31  ;;  %v1058_v39 = vmul.f32 %v1057_v28, %v1045_v37  ;;  %v1059_v25 = vmul.f32 %v1057_v28, %v1049_v31 }
 0x153   : > { %v1064_v1 = vmul.f32 %v1063_v45, %v1045_v37  ;;  %v1065_v44 = vmul.f32 %v1063_v45, %v1049_v31  ;;  %v1085_v53 = vstv %s3303_s28  ;;  %v1217_v28 = vstv %s3300_s25  ;;  %s3396_s25 = sld [smem:[#allocation9 + $0x3]] }
 0x154   : > { %v1060_v52 = vadd.f32 %v1058_v39, %v1033_v24  ;;  %v1061_v11 = vadd.f32 %v1059_v25, %v1034_v12  ;;  %v1054_v62 = vadd.f32 %v1052_v54, %v1027_v10  ;;  %v1055_v41 = vadd.f32 %v1053_v0, %v1028_v19  ;;  %s3401_s28 = sld [smem:[#allocation11]] }
 0x155   : > { %v1066_v58 = vadd.f32 %v1064_v1, %v1039_v4  ;;  %v1067_v23 = vadd.f32 %v1065_v44, %v1040_v20  ;;  %v1218_v24 = vmul.f32 %v1217_v28, %v1199_v32  ;;  %v1244_v12 = vstv %s3313_s30  ;;  %s3408_s30 = sld [smem:[#allocation9 + $0xb]] }
 0x156   : > { %v1070_v40 = vrot.slane %v1060_v52, 1  ;;  %v1071_v55 = vrot.slane %v1061_v11, 1  ;;  %v1194_v37 = vadd.f32 %v1192_v29, %v3279_v2  ;;  %v1213_v31 = vmul.f32 %v1211_v13, %v1203_v50 }
 0x157   : > { %v1078_v42 = vrot.slane %v1066_v58, 2  ;;  %v1079_v48 = vrot.slane %v1067_v23, 2  ;;  %v1219_v54 = vmul.f32 %v1217_v28, %v1203_v50  ;;  %v1233_v0 = vmul.f32 %v1232_v6, %v1226_v43 }
 0x158   : > { %v1074_v22 = vadd.f32 %v1070_v40, %v1054_v62  ;;  %v1075_v8 = vadd.f32 %v1071_v55, %v1055_v41  ;;  %v1277_v15 = vpop.permute.xlu0 %1276  ;;  %v1239_v18 = vmul.f32 %v1238_v27, %v1226_v43  ;;  %v1259_v39 = vstv %s3327_s17  ;;  %v1279_v23 = vpop.permute.xlu1 %1278  ;;  %s3410_s17 = sld [smem:[#allocation11 + $0x2]] }
 0x159   : > { %v1253_v25 = vsel %vm465_vm5, %v3232_v36, %v3307_v63  ;;  %v1208_v4 = vadd.f32 %v1206_v47, %v1181_v21  ;;  %v1240_v20 = vmul.f32 %v1238_v27, %v1230_v38  ;;  %v1245_v2 = vmul.f32 %v1244_v12, %v1226_v43 }
 0x15a   : > { %v1082_v60 = vadd.f32 %v1078_v42, %v1074_v22  ;;  %v1083_v9 = vadd.f32 %v1079_v48, %v1075_v8  ;;  %v1246_v1 = vmul.f32 %v1244_v12, %v1230_v38  ;;  %v1209_v44 = vadd.f32 %v1207_v61, %v1182_v33  ;;  %v1304_v22 = vpop.permute.xlu2 %1303 }
 0x15b   : > { %v1214_v10 = vadd.f32 %v1212_v17, %v1187_v7  ;;  %v1220_v19 = vadd.f32 %v1218_v24, %v1193_v16  ;;  %v1265_v52 = vstv %s3338_s6  ;;  %v1215_v11 = vadd.f32 %v1213_v31, %v1188_v34  ;;  %s3418_s6 = sld [smem:[#allocation9 + $0xf]] }
 0x15c   : > { %v1086_v3 = vadd.f32 %v1085_v53, %v1082_v60  ;;  %v1087_v45 = vadd.f32 %v1085_v53, %v1083_v9  ;;  %v1221_v26 = vadd.f32 %v1219_v54, %v1194_v37  ;;  %v1257_v29 = vsel %vm465_vm5, %v3307_v63, %v3232_v36 }
 0x15d   : > { %v1260_v58 = vmul.f32 %v1259_v39, %v1253_v25  ;;  %v1235_v62 = vadd.f32 %v1233_v0, %v1208_v4  ;;  %v1236_v41 = vadd.f32 %v1234_v57, %v1209_v44  ;;  %v1241_v40 = vadd.f32 %v1239_v18, %v1214_v10 }
 0x15e   : > { %1089 = vst [vmem:[#allocation2 + $0x8] sm:$0x3f] %v1086_v3  ;;  %v1271_v55 = vstv %s3351_s0  ;;  %v1242_v21 = vadd.f32 %v1240_v20, %v1215_v11  ;;  %v1247_v46 = vadd.f32 %v1245_v2, %v1220_v19  ;;  %v1248_v13 = vadd.f32 %v1246_v1, %v1221_v26  ;;  %s3420_s0 = sld [smem:[#allocation11 + $0x3]] }
 0x15f   : > { %1090 = vst [vmem:[#allocation2 + $0x20] sm:$0x3f] %v1087_v45  ;;  %v1266_v32 = vmul.f32 %v1265_v52, %v1253_v25  ;;  %v1267_v63 = vmul.f32 %v1265_v52, %v1257_v29  ;;  %v1292_v8 = vstv %s3360_s10  ;;  %v1280_v42 = vsel %vm493_vm6, %v1277_v15, %v1279_v23  ;;  %v1618_v45 = vld [vmem:[#allocation2 + $0x10] sm:$0x3f]  ;;  %s3438_s10 = sld [smem:[#allocation9 + $0x17]] }
 0x160   : > { %v1306_v36 = vpop.permute.xlu0 %1305  ;;  %v1284_v48 = vsel %vm493_vm6, %v1279_v23, %v1277_v15  ;;  %v1261_v33 = vmul.f32 %v1259_v39, %v1257_v29  ;;  %v1262_v7 = vadd.f32 %v1260_v58, %v1235_v62  ;;  %v1272_v34 = vmul.f32 %v1271_v55, %v1253_v25 }
 0x161   : > { %v1298_v53 = vstv %s3363_s8  ;;  %v1286_v28 = vstv %s3357_s26  ;;  %v1319_v50 = vstv %s3369_s7  ;;  %v1307_v60 = vsel %vm521_vm7, %v1304_v22, %v1306_v36  ;;  %s3426_s26 = sld [smem:[#allocation9 + $0x13]] }
 0x162   : > { %v1311_v9 = vsel %vm521_vm7, %v1306_v36, %v1304_v22  ;;  %v1268_v16 = vadd.f32 %v1266_v32, %v1241_v40  ;;  %v1293_v47 = vmul.f32 %v1292_v8, %v1280_v42  ;;  %v1294_v6 = vmul.f32 %v1292_v8, %v1284_v48  ;;  %s3441_s8 = sld [smem:[#allocation11 + $0x5]] }
 0x163   : > { %v1325_v43 = vstv %s3371_s2  ;;  %v1269_v15 = vadd.f32 %v1267_v63, %v1242_v21  ;;  %v1273_v27 = vmul.f32 %v1271_v55, %v1257_v29  ;;  %v1299_v38 = vmul.f32 %v1298_v53, %v1280_v42  ;;  %s3446_s7 = sld [smem:[#allocation9 + $0x1b]] }
 0x164   : > { %v1313_v3 = vstv %s3374_s13  ;;  %v1287_v61 = vmul.f32 %v1286_v28, %v1280_v42  ;;  %v1288_v17 = vmul.f32 %v1286_v28, %v1284_v48  ;;  %v1320_v24 = vmul.f32 %v1319_v50, %v1307_v60  ;;  %s3523_s13 = sld [smem:[#allocation11 + $0x7]] }
 0x165   : > { %v1321_v12 = vmul.f32 %v1319_v50, %v1311_v9  ;;  %v1263_v37 = vadd.f32 %v1261_v33, %v1236_v41  ;;  %v1274_v31 = vadd.f32 %v1272_v34, %v1247_v46  ;;  %v1300_v54 = vmul.f32 %v1298_v53, %v1284_v48  ;;  %v1367_v33 = vld [vmem:[#allocation2 + $0x8] sm:$0x3f] }
 0x166   : > { %v1326_v0 = vmul.f32 %v1325_v43, %v1307_v60  ;;  %v1295_v57 = vadd.f32 %v1293_v47, %v1268_v16  ;;  %v1296_v18 = vadd.f32 %v1294_v6, %v1269_v15  ;;  %v1314_v39 = vmul.f32 %v1313_v3, %v1307_v60  ;;  %v1440_v34 = vld [vmem:[#allocation2 + $0x8] sm:$0x3f]  ;;  %v1368_v60 = vld [vmem:[#allocation2 + $0x20] sm:$0x3f] }
 0x167   : > { %v1315_v25 = vmul.f32 %v1313_v3, %v1311_v9  ;;  %v3414_v4 = vadd.f32 %v3124_v59, %v2962_v5  ;;  %v3641_v20 = vstv %s2997_s3  ;;  %v1275_v1 = vadd.f32 %v1273_v27, %v1248_v13  ;;  %s3428_s3 = sld [smem:[#allocation11 + $0x4]]  ;;  %v1441_v16 = vld [vmem:[#allocation2 + $0x20] sm:$0x3f]  ;;  %v1477_v27 = vld [vmem:[#allocation2 + $0x8] sm:$0x3f] }
 0x168   : > { %v1622_v2 = vmul.f32 %v3641_v20, %v1618_v45  ;;  %v1301_v44 = vadd.f32 %v1299_v38, %v1274_v31  ;;  %v1289_v10 = vadd.f32 %v1287_v61, %v1262_v7  ;;  %v1290_v19 = vadd.f32 %v1288_v17, %v1263_v37  ;;  %v1403_v7 = vld [vmem:[#allocation2 + $0x8] sm:$0x3f]  ;;  %v1478_v38 = vld [vmem:[#allocation2 + $0x20] sm:$0x3f] }
 0x169   : > { %v1322_v52 = vadd.f32 %v1320_v24, %v1295_v57  ;;  %v1323_v11 = vadd.f32 %v1321_v12, %v1296_v18  ;;  %v3424_v26 = vadd.f32 %v3128_v49, %v3017_v51  ;;  %v1302_v5 = vadd.f32 %v1300_v54, %v1275_v1  ;;  %v1514_v3 = vld [vmem:[#allocation2 + $0x8] sm:$0x3f]  ;;  %v1515_v31 = vld [vmem:[#allocation2 + $0x20] sm:$0x3f] }
 0x16a   : > { %v1327_v59 = vmul.f32 %v1325_v43, %v1311_v9  ;;  %v1328_v29 = vadd.f32 %v1326_v0, %v1301_v44  ;;  %v1316_v58 = vadd.f32 %v1314_v39, %v1289_v10  ;;  %v1317_v23 = vadd.f32 %v1315_v25, %v1290_v19  ;;  %v1404_v9 = vld [vmem:[#allocation2 + $0x20] sm:$0x3f]  ;;  %v1551_v54 = vld [vmem:[#allocation2 + $0x8] sm:$0x3f] }
 0x16b   : > { %v1332_v62 = vrot.slane %v1322_v52, 1  ;;  %v1333_v41 = vrot.slane %v1323_v11, 1  ;;  %v3432_v40 = vadd.f32 %v3149_v30, %v3021_v14  ;;  %v3435_v51 = vadd.f32 %v1622_v2, %v3027_v56  ;;  %v1552_v20 = vld [vmem:[#allocation2 + $0x20] sm:$0x3f]  ;;  %v1588_v19 = vld [vmem:[#allocation2 + $0x8] sm:$0x3f] }
 0x16c   : > { %v1370_v49 = vstv %s3317_s18  ;;  %v1329_v55 = vadd.f32 %v1327_v59, %v1302_v5  ;;  %v1406_v21 = vstv %s3319_s12  ;;  %v1340_v32 = vrot.slane %v1328_v29, 2  ;;  %s3451_s18 = sld [smem:[#allocation9 + $0x1f]]  ;;  %v1589_v29 = vld [vmem:[#allocation2 + $0x20] sm:$0x3f]  ;;  %s1947_s12 = sshll.u32 %s3658_s22, 7 }
 0x16d   : > { %v1336_v46 = vadd.f32 %v1332_v62, %v1316_v58  ;;  %v1337_v13 = vadd.f32 %v1333_v41, %v1317_v23  ;;  %v1443_v14 = vstv %s3329_s9  ;;  %v1480_v30 = vstv %s3344_s1  ;;  %v3642_v62 = vld [vmem:[#allocation17_spill] sm:$0xff]  ;;  %s3506_s22 = sld [smem:[#allocation11 + $0x6]]  ;;  %s3513_s2 = scalar_lea.vmem %s3602_s5, %s1947_s12 }
 0x16e   : > { %v1347_v22 = vstv %s3392_s15  ;;  %v1341_v56 = vrot.slane %v1329_v55, 2  ;;  %v1517_v36 = vstv %s3376_s21  ;;  %v1554_v63 = vstv %s3381_s14  ;;  %v1625_v55 = vld [vmem:[#allocation2 + $0x8] sm:$0x3f] }
 0x16f   : > { %v1591_v8 = vstv %s3384_s23  ;;  %v1344_v42 = vadd.f32 %v1340_v32, %v1336_v46  ;;  %v1628_v48 = vstv %s3386_s11  ;;  %v1378_v53 = vstv %s3396_s25  ;;  %v3643_v46 = vld [vmem:[#allocation16_spill] sm:$0xff]  ;;  %v3644_v32 = vld [vmem:[#allocation19_spill] sm:$0xff] }
 0x170   : > { %v1384_v28 = vstv %s3401_s28  ;;  %v1345_v50 = vadd.f32 %v1341_v56, %v1337_v13  ;;  %v1414_v47 = vstv %s3404_s27  ;;  %v1420_v6 = vstv %s3406_s29 }
 0x171   : > { %v1451_v43 = vstv %s3408_s30  ;;  %v1348_v15 = vadd.f32 %v1347_v22, %v1344_v42  ;;  %v1457_v45 = vstv %s3410_s17  ;;  %v1488_v61 = vstv %s3418_s6 }
 0x172   : > { %v1494_v17 = vstv %s3420_s0  ;;  %v1349_v24 = vadd.f32 %v1347_v22, %v1345_v50  ;;  %v1371_v12 = vmul.f32 %v1370_v49, %v1367_v33  ;;  %v1407_v37 = vmul.f32 %v1406_v21, %v1403_v7  ;;  %v3647_v33 = vld [vmem:[#allocation21_spill] sm:$0xff] }
 0x173   : > { %v1525_v0 = vstv %s3426_s26  ;;  %v1531_v57 = vstv %s3428_s3  ;;  %1351 = vst [vmem:[#allocation2 + $0x28] sm:$0x3f] %v1348_v15  ;;  %v1372_v18 = vmul.f32 %v1370_v49, %v1368_v60  ;;  %v1408_v39 = vmul.f32 %v1406_v21, %v1404_v9  ;;  %v3650_v9 = vld [vmem:[#allocation24_spill] sm:$0xff]  ;;  %v3651_v15 = vld [vmem:[#allocation25_spill] sm:$0xff] }
 0x174   : > { %v1444_v25 = vmul.f32 %v1443_v14, %v1440_v34  ;;  %v1562_v2 = vstv %s3438_s10  ;;  %1352 = vst [vmem:[#allocation2 + $0x38] sm:$0x3f] %v1349_v24  ;;  %v1445_v1 = vmul.f32 %v1443_v14, %v1441_v16  ;;  %v1481_v44 = vmul.f32 %v1480_v30, %v1477_v27 }
 0x175   : > { %v1482_v10 = vmul.f32 %v1480_v30, %v1478_v38  ;;  %v1568_v52 = vstv %s3441_s8  ;;  %v1518_v11 = vmul.f32 %v1517_v36, %v1514_v3  ;;  %v1519_v5 = vmul.f32 %v1517_v36, %v1515_v31  ;;  %v3645_v30 = vld [vmem:[#allocation18_spill] sm:$0xff]  ;;  %v3646_v36 = vld [vmem:[#allocation20_spill] sm:$0xff] }
 0x176   : > { %v1555_v59 = vmul.f32 %v1554_v63, %v1551_v54  ;;  %v1599_v58 = vstv %s3446_s7  ;;  %v1373_v23 = vadd.f32 %v1371_v12, %v3081_v35  ;;  %v1409_v41 = vadd.f32 %v1407_v37, %v3642_v62  ;;  %v3648_v35 = vld [vmem:[#allocation22_spill] sm:$0xff] }
 0x177   : > { %v1556_v49 = vmul.f32 %v1554_v63, %v1552_v20  ;;  %v1636_v21 = vstv %s3451_s18  ;;  %v1374_v13 = vadd.f32 %v1372_v18, %v3643_v46  ;;  %v1410_v14 = vadd.f32 %v1408_v39, %v3644_v32  ;;  %v3649_v63 = vld [vmem:[#allocation23_spill] sm:$0xff]  ;;  %v3652_v37 = vld [vmem:[#allocation26_spill] sm:$0xff] }
 0x178   : > { %v1446_v22 = vadd.f32 %v1444_v25, %v3645_v30  ;;  %v1592_v56 = vmul.f32 %v1591_v8, %v1588_v19  ;;  %v1447_v42 = vadd.f32 %v1445_v1, %v3646_v36  ;;  %v1483_v7 = vadd.f32 %v1481_v44, %v3647_v33  ;;  %v1626_v44 = vld [vmem:[#allocation2 + $0x20] sm:$0x3f] }
 0x179   : > { %v1484_v34 = vadd.f32 %v1482_v10, %v3648_v35  ;;  %v3482_v50 = vmul.f32 %v1591_v8, %v1589_v29  ;;  %v1520_v60 = vadd.f32 %v1518_v11, %v3649_v63  ;;  %v1521_v16 = vadd.f32 %v1519_v5, %v3650_v9 }
 0x17a   : > { %v1557_v27 = vadd.f32 %v1555_v59, %v3651_v15  ;;  %v3490_v38 = vmul.f32 %v1628_v48, %v1625_v55  ;;  %v1375_v3 = vld [vmem:[#allocation2 + $0x28] sm:$0x3f]  ;;  %v1558_v31 = vadd.f32 %v1556_v49, %v3652_v37  ;;  %v1594_v1 = vadd.f32 %v1592_v56, %v3414_v4 }
 0x17b   : > { %v1411_v24 = vld [vmem:[#allocation2 + $0x28] sm:$0x3f]  ;;  %v1376_v8 = vld [vmem:[#allocation2 + $0x38] sm:$0x3f]  ;;  %v1379_v54 = vmul.f32 %v1378_v53, %v1375_v3  ;;  %v1630_v32 = vmul.f32 %v1628_v48, %v1626_v44 }
 0x17c   : > { %v1448_v12 = vld [vmem:[#allocation2 + $0x28] sm:$0x3f]  ;;  %v1412_v18 = vld [vmem:[#allocation2 + $0x38] sm:$0x3f]  ;;  %v1415_v39 = vmul.f32 %v1414_v47, %v1411_v24  ;;  %v1380_v10 = vmul.f32 %v1378_v53, %v1376_v8  ;;  %v1595_v8 = vadd.f32 %v3482_v50, %v3424_v26  ;;  %v1605_v50 = vstv %s3506_s22 }
 0x17d   : > { %v1449_v25 = vld [vmem:[#allocation2 + $0x38] sm:$0x3f]  ;;  %v1452_v20 = vmul.f32 %v1451_v43, %v1448_v12  ;;  %v1416_v19 = vmul.f32 %v1414_v47, %v1412_v18  ;;  %v1485_v5 = vld [vmem:[#allocation2 + $0x28] sm:$0x3f]  ;;  %v1381_v29 = vadd.f32 %v1379_v54, %v1373_v23  ;;  %v1632_v26 = vadd.f32 %v1630_v32, %v3435_v51 }
 0x17e   : > { %v1453_v11 = vmul.f32 %v1451_v43, %v1449_v25  ;;  %v1486_v59 = vld [vmem:[#allocation2 + $0x38] sm:$0x3f]  ;;  %v1417_v62 = vadd.f32 %v1415_v39, %v1409_v41  ;;  %v1489_v4 = vmul.f32 %v1488_v61, %v1485_v5  ;;  %v1382_v53 = vadd.f32 %v1380_v10, %v1374_v13  ;;  %v1522_v46 = vld [vmem:[#allocation2 + $0x28] sm:$0x3f] }
 0x17f   : > { %v1454_v49 = vadd.f32 %v1452_v20, %v1446_v22  ;;  %v1418_v47 = vadd.f32 %v1416_v19, %v1410_v14  ;;  %v1490_v55 = vmul.f32 %v1488_v61, %v1486_v59  ;;  %v1523_v23 = vld [vmem:[#allocation2 + $0x38] sm:$0x3f]  ;;  %v1559_v41 = vld [vmem:[#allocation2 + $0x28] sm:$0x3f]  ;;  %v1385_v30 = vadd.f32 %v1384_v28, %v1381_v29 }
 0x180   : > { %v1455_v43 = vadd.f32 %v1453_v11, %v1447_v42  ;;  %v1421_v13 = vadd.f32 %v1420_v6, %v1417_v62  ;;  %v1491_v22 = vadd.f32 %v1489_v4, %v1483_v7  ;;  %v1560_v14 = vld [vmem:[#allocation2 + $0x38] sm:$0x3f]  ;;  %v1596_v56 = vld [vmem:[#allocation2 + $0x28] sm:$0x3f]  ;;  %v1386_v36 = vadd.f32 %v1384_v28, %v1382_v53 }
 0x181   : > { %v1597_v61 = vld [vmem:[#allocation2 + $0x38] sm:$0x3f]  ;;  %v1422_v48 = vadd.f32 %v1420_v6, %v1418_v47  ;;  %v1458_v42 = vadd.f32 %v1457_v45, %v1454_v49  ;;  %v1492_v33 = vadd.f32 %v1490_v55, %v1484_v34  ;;  %v1633_v35 = vld [vmem:[#allocation2 + $0x28] sm:$0x3f]  ;;  %1387 = vst [vmem:[%s3513_s2] sm:$0x3f] %v1385_v30  ;;  %v1526_v63 = vmul.f32 %v1525_v0, %v1522_v46 }
 0x182   : > { %v1459_v7 = vadd.f32 %v1457_v45, %v1455_v43  ;;  %v1527_v9 = vmul.f32 %v1525_v0, %v1523_v23  ;;  %v1563_v15 = vmul.f32 %v1562_v2, %v1559_v41  ;;  %v1634_v28 = vld [vmem:[#allocation2 + $0x38] sm:$0x3f]  ;;  %1388 = vst [vmem:[%s3513_s2 + $0x8] sm:$0x3f] %v1386_v36  ;;  %v1495_v6 = vadd.f32 %v1494_v17, %v1491_v22 }
 0x183   : > { %v1564_v34 = vmul.f32 %v1562_v2, %v1560_v14  ;;  %v1600_v3 = vmul.f32 %v1599_v58, %v1596_v56  ;;  %v1601_v45 = vmul.f32 %v1599_v58, %v1597_v61  ;;  %1900 = vst [vmem:[%s3513_s2 + $0x10] sm:$0x3f] %v1421_v13  ;;  %v1528_v24 = vadd.f32 %v1526_v63, %v1520_v60 }
 0x184   : > { %v1529_v0 = vadd.f32 %v1527_v9, %v1521_v16  ;;  %v1565_v12 = vadd.f32 %v1563_v15, %v1557_v27  ;;  %v1637_v37 = vmul.f32 %v1636_v21, %v1633_v35  ;;  %1901 = vst [vmem:[%s3513_s2 + $0x18] sm:$0x3f] %v1422_v48  ;;  %v1496_v2 = vadd.f32 %v1494_v17, %v1492_v33 }
 0x185   : > { %v1566_v58 = vadd.f32 %v1564_v34, %v1558_v31  ;;  %v1638_v54 = vmul.f32 %v1636_v21, %v1634_v28  ;;  %v1631_v60 = vadd.f32 %v3490_v38, %v3432_v40  ;;  %1907 = vst [vmem:[%s3513_s2 + $0x20] sm:$0x3f] %v1458_v42  ;;  %v1532_v16 = vadd.f32 %v1531_v57, %v1528_v24 }
 0x186   : > { %v1602_v27 = vadd.f32 %v1600_v3, %v1594_v1  ;;  %1908 = vst [vmem:[%s3513_s2 + $0x28] sm:$0x3f] %v1459_v7  ;;  %v1533_v17 = vadd.f32 %v1531_v57, %v1529_v0  ;;  %v1603_v31 = vadd.f32 %v1601_v45, %v1595_v8  ;;  %v1569_v40 = vadd.f32 %v1568_v52, %v1565_v12 }
 0x187   : > { %1914 = vst [vmem:[%s3513_s2 + $0x30] sm:$0x3f] %v1495_v6  ;;  %v1639_v21 = vadd.f32 %v1637_v37, %v1631_v60  ;;  %v1642_v38 = vstv %s3523_s13  ;;  %v1570_v18 = vadd.f32 %v1568_v52, %v1566_v58  ;;  %v1640_v51 = vadd.f32 %v1638_v54, %v1632_v26 }
 0x188   : > { %1915 = vst [vmem:[%s3513_s2 + $0x38] sm:$0x3f] %v1496_v2  ;;  %v1606_v39 = vadd.f32 %v1605_v50, %v1602_v27  ;;  %v1607_v25 = vadd.f32 %v1605_v50, %v1603_v31 }
 0x189   : > { %1921 = vst [vmem:[%s3513_s2 + $0x40] sm:$0x3f] %v1532_v16  ;;  %v1643_v57 = vadd.f32 %v1642_v38, %v1639_v21  ;;  %v1644_v20 = vadd.f32 %v1642_v38, %v1640_v51 }
 0x18a   : > { %1922 = vst [vmem:[%s3513_s2 + $0x48] sm:$0x3f] %v1533_v17 }
 0x18b   : > { %1928 = vst [vmem:[%s3513_s2 + $0x50] sm:$0x3f] %v1569_v40 }
 0x18c   : > { %1929 = vst [vmem:[%s3513_s2 + $0x58] sm:$0x3f] %v1570_v18 }
 0x18d   : > { %1935 = vst [vmem:[%s3513_s2 + $0x60] sm:$0x3f] %v1606_v39 }
 0x18e   : > { %1936 = vst [vmem:[%s3513_s2 + $0x68] sm:$0x3f] %v1607_v25 }
 0x18f   : > { %1942 = vst [vmem:[%s3513_s2 + $0x70] sm:$0x3f] %v1643_v57 }
 0x190   : > { %1943 = vst [vmem:[%s3513_s2 + $0x78] sm:$0x3f] %v1644_v20 }
 0x191 PF: > { %p18_p4 = scmp.ge.s32.totalorder %s2276_s16, 4   ;;  %s3653_s18 = smov %s2170_s19 }
 0x192   : > { %s3654_s19 = smov %s2174_s20  ;;  %s3655_s20 = smov %s2285_s24 }
 0x193   : > { %s3656_s21 = smov %s2276_s16  ;;  %20 = sbr.rel (!%p18_p4) target bundleno = 11 (0xb), region = 111 }
 0x198   :  { %1669 = vsyncpa [#allocation4], 1 }
 0x199   :  { %1671 = vsyncpa [#allocation4 + $0x1], 1 }
 0x19a   :  { %1672 = vsyncpa [#allocation5], 1 }
 0x19b   :  { %1674 = vsyncpa [#allocation5 + $0x1], 1 }
 0x19c   :  { %1675 = vsyncpa [#allocation6], 1 }
 0x19d   :  { %1677 = vsyncpa [#allocation6 + $0x1], 1 }
 0x19e   :  { %1678 = vsyncpa [#allocation10], 1 }

</bundles_post_ra>
